<compile_context>
chip_gen: v7x
topology: tpu7x:2x2x1
jax: 0.10.0
libtpu: 0.0.40
codegen_flags: <defaults>
</compile_context>

<pallas_src>
import functools

import jax
import jax.numpy as jnp
from jax.experimental import pallas as pl
from jax.experimental.pallas import tpu as pltpu

_TM_CAP = 256                      # row tile cap for row-tiled kernels
_VMEM_LIMIT = 64 * 1024 * 1024     # raised scoped-VMEM limit (portable across v5e/v6e/v7x)


def _cparams(sem):
    return pltpu.CompilerParams(dimension_semantics=sem, vmem_limit_bytes=_VMEM_LIMIT)


def _round_up(x, m):
    return ((x + m - 1) // m) * m


def _row_tiling(m, cap=_TM_CAP):
    """Pick a large sublane-aligned row tile; returns (tile, padded_rows)."""
    m8 = _round_up(m, 8)
    if m8 <= cap:
        return m8, m8
    nblk = -(-m8 // cap)
    tm = _round_up(-(-m8 // nblk), 8)
    return tm, tm * nblk


def _pad_rows_to(x, mp):
    if mp != x.shape[0]:
        x = jnp.pad(x, ((0, mp - x.shape[0]), (0, 0)))
    return x


# -----------------------------------------------------------------------------
# Pallas kernels
# -----------------------------------------------------------------------------
def _linear_kernel(x_ref, wT_ref, b_ref, o_ref, *, act):
    y = jnp.dot(x_ref[...], wT_ref[...], preferred_element_type=jnp.float32) + b_ref[...]
    if act == "tanh":
        y = jnp.tanh(y)
    elif act == "relu":
        y = jnp.maximum(y, 0.0)
    o_ref[...] = y


def _layernorm_kernel(x_ref, g_ref, b_ref, o_ref):
    x = x_ref[...]
    mean = jnp.mean(x, axis=-1, keepdims=True)
    var = jnp.mean((x - mean) ** 2, axis=-1, keepdims=True)
    o_ref[...] = (x - mean) * jax.lax.rsqrt(var + 1e-5) * g_ref[...] + b_ref[...]


def _ln_linear_kernel(x_ref, g_ref, b_ref, wT_ref, wb_ref, o_ref):
    # fused LayerNorm -> Linear (used for path_norm + struct_k/struct_v projection)
    x = x_ref[...]
    mean = jnp.mean(x, axis=-1, keepdims=True)
    var = jnp.mean((x - mean) ** 2, axis=-1, keepdims=True)
    xn = (x - mean) * jax.lax.rsqrt(var + 1e-5) * g_ref[...] + b_ref[...]
    o_ref[...] = jnp.dot(xn, wT_ref[...], preferred_element_type=jnp.float32) + wb_ref[...]


def _classifier_kernel(x_ref, w1_ref, b1_ref, w2_ref, b2_ref, o_ref):
    # fused 2-layer classifier (link + label classifiers packed block-diagonally)
    h = jnp.tanh(jnp.dot(x_ref[...], w1_ref[...], preferred_element_type=jnp.float32)
                 + b1_ref[...])
    o_ref[...] = jnp.dot(h, w2_ref[...], preferred_element_type=jnp.float32) + b2_ref[...]


def _bigru_kernel(gx_ref, whh_ref, bhh_ref, o_ref, h_ref):
    # Both GRU directions run in one recurrence (direction is a leading batch dim of 2).
    # gx_ref: (T, 2, Bp, 3H) precomputed input projections (dir 1 is already time-reversed)
    # whh_ref: (2, H, 3H); bhh_ref: (2, 1, 3H); h_ref scratch: (2, Bp, H)
    T = gx_ref.shape[0]
    H = h_ref.shape[-1]
    h_ref[...] = jnp.zeros_like(h_ref)

    def body(t, carry):
        gx = gx_ref[t]                                       # (2, Bp, 3H)
        h = h_ref[...]                                       # (2, Bp, H)
        gh = jnp.einsum("dbh,dhk->dbk", h, whh_ref[...],
                        preferred_element_type=jnp.float32) + bhh_ref[...]
        r = jax.nn.sigmoid(gx[:, :, 0:H] + gh[:, :, 0:H])
        z = jax.nn.sigmoid(gx[:, :, H:2 * H] + gh[:, :, H:2 * H])
        n = jnp.tanh(gx[:, :, 2 * H:3 * H] + r * gh[:, :, 2 * H:3 * H])
        h_new = (1.0 - z) * n + z * h
        h_ref[...] = h_new
        o_ref[t] = h_new
        return carry

    jax.lax.fori_loop(0, T, body, 0)


def _attn_kernel(q_ref, k_ref, v_ref, skv_ref, bias_ref, o_ref, *, scale, d):
    # per (batch, query-tile) structure-aware attention; all contractions on the MXU
    q = q_ref[0] * scale                  # (heads, tq, d)
    k = k_ref[0]                          # (heads, N, d)
    v = v_ref[0]
    skv = skv_ref[0]                      # (tq, N, 2d) -> struct_k | struct_v
    sk = skv[..., :d]
    sv = skv[..., d:]
    bias = bias_ref[0, 0]                 # (1, N)

    w = jnp.einsum("hqd,hkd->hqk", q, k, preferred_element_type=jnp.float32)
    w = w + jnp.einsum("hqd,qkd->hqk", q, sk, preferred_element_type=jnp.float32)
    w = w + bias
    w = w - jnp.max(w, axis=-1, keepdims=True)
    e = jnp.exp(w)
    p = e * pl.reciprocal(jnp.sum(e, axis=-1, keepdims=True), approx=True)

    out = jnp.einsum("hqk,hkd->hqd", p, v, preferred_element_type=jnp.float32)
    out = out + jnp.einsum("hqk,qkd->hqd", p, sv, preferred_element_type=jnp.float32)
    o_ref[0] = out


def _path_update_kernel(ni_ref, nj_ref, hx_ref, wxi_ref, wxj_ref, wh_ref,
                        bx_ref, bh_ref, o_ref, *, P):
    # Builds pair(i,j) = [nodes_j, nodes_i] implicitly (never materialized in HBM):
    # x_proj[i,j] = nodes_j @ Wx_j + nodes_i @ Wx_i; gate order along 3P is [r, z, c/u].
    ni = ni_ref[0]                        # (ti, H)
    nj = nj_ref[0]                        # (N, H)
    proj_i = jnp.dot(ni, wxi_ref[...], preferred_element_type=jnp.float32)   # (ti, 3P)
    proj_j = jnp.dot(nj, wxj_ref[...], preferred_element_type=jnp.float32)   # (N, 3P)
    x_proj = proj_i[:, None, :] + proj_j[None, :, :] + bx_ref[...]           # (ti, N, 3P)

    hx = hx_ref[0]                        # (ti, N, P)
    ti = hx.shape[0]
    wh_b = jnp.broadcast_to(wh_ref[...], (ti,) + wh_ref.shape)               # (ti, P, 3P)
    h_proj = jax.lax.dot_general(hx, wh_b, (((2,), (1,)), ((0,), (0,))),
                                 preferred_element_type=jnp.float32) + bh_ref[...]

    r = jax.nn.sigmoid(x_proj[..., :P] + h_proj[..., :P])
    z = jax.nn.sigmoid(x_proj[..., P:2 * P] + h_proj[..., P:2 * P])
    u = jnp.tanh(x_proj[..., 2 * P:] + r * h_proj[..., 2 * P:])
    o_ref[0] = z * hx + (1.0 - z) * u


# -----------------------------------------------------------------------------
# Wrappers around pallas_call
# -----------------------------------------------------------------------------
def linear(x, wT, b, act="none"):
    """y = act(x @ wT + b), wT already stored as (in, out)."""
    orig = x.shape
    K = orig[-1]
    Nout = wT.shape[1]
    x2 = x.reshape(-1, K).astype(jnp.float32)
    M = x2.shape[0]
    tm, Mp = _row_tiling(M)
    x2 = _pad_rows_to(x2, Mp)
    out = pl.pallas_call(
        functools.partial(_linear_kernel, act=act),
        out_shape=jax.ShapeDtypeStruct((Mp, Nout), jnp.float32),
        grid=(Mp // tm,),
        in_specs=[pl.BlockSpec((tm, K), lambda i: (i, 0)),
                  pl.BlockSpec((K, Nout), lambda i: (0, 0)),
                  pl.BlockSpec((1, Nout), lambda i: (0, 0))],
        out_specs=pl.BlockSpec((tm, Nout), lambda i: (i, 0)),
        compiler_params=_cparams(("parallel",)),
    )(x2, wT, b.reshape(1, Nout))
    return out[:M].reshape(*orig[:-1], Nout)


def layer_norm(x, g, b):
    orig = x.shape
    D = orig[-1]
    x2 = x.reshape(-1, D).astype(jnp.float32)
    M = x2.shape[0]
    tm, Mp = _row_tiling(M)
    x2 = _pad_rows_to(x2, Mp)
    out = pl.pallas_call(
        _layernorm_kernel,
        out_shape=jax.ShapeDtypeStruct((Mp, D), jnp.float32),
        grid=(Mp // tm,),
        in_specs=[pl.BlockSpec((tm, D), lambda i: (i, 0)),
                  pl.BlockSpec((1, D), lambda i: (0, 0)),
                  pl.BlockSpec((1, D), lambda i: (0, 0))],
        out_specs=pl.BlockSpec((tm, D), lambda i: (i, 0)),
        compiler_params=_cparams(("parallel",)),
    )(x2, g.reshape(1, D), b.reshape(1, D))
    return out[:M].reshape(orig)


def ln_linear(x, g, b, wT, wb):
    """Fused LayerNorm + Linear over the last dim."""
    orig = x.shape
    D = orig[-1]
    Nout = wT.shape[1]
    x2 = x.reshape(-1, D).astype(jnp.float32)
    M = x2.shape[0]
    tm, Mp = _row_tiling(M)
    x2 = _pad_rows_to(x2, Mp)
    out = pl.pallas_call(
        _ln_linear_kernel,
        out_shape=jax.ShapeDtypeStruct((Mp, Nout), jnp.float32),
        grid=(Mp // tm,),
        in_specs=[pl.BlockSpec((tm, D), lambda i: (i, 0)),
                  pl.BlockSpec((1, D), lambda i: (0, 0)),
                  pl.BlockSpec((1, D), lambda i: (0, 0)),
                  pl.BlockSpec((D, Nout), lambda i: (0, 0)),
                  pl.BlockSpec((1, Nout), lambda i: (0, 0))],
        out_specs=pl.BlockSpec((tm, Nout), lambda i: (i, 0)),
        compiler_params=_cparams(("parallel",)),
    )(x2, g.reshape(1, D), b.reshape(1, D), wT, wb.reshape(1, Nout))
    return out[:M].reshape(*orig[:-1], Nout)


def bi_gru(x, p):
    """Bidirectional GRU (batch_first, zero init state). x: (Bp, T, D) -> (Bp, T, 2H).
    Both directions run in a single recurrence kernel (direction = leading dim of 2)."""
    Bp, T, D = x.shape
    Hd = p['w_hh'].shape[1]
    gx_all = linear(x.reshape(-1, D), p['w_ih'], p['b_ih']).reshape(Bp, T, 2, 3 * Hd)
    gx_f = gx_all[:, :, 0]                    # (Bp, T, 3H)
    gx_b = gx_all[:, ::-1, 1]                 # backward direction consumes reversed time
    gx = jnp.stack([gx_f, gx_b], axis=0)      # (2, Bp, T, 3H)
    gx = jnp.transpose(gx, (2, 0, 1, 3))      # (T, 2, Bp, 3H)
    Bp8 = _round_up(Bp, 8)
    if Bp8 != Bp:
        gx = jnp.pad(gx, ((0, 0), (0, 0), (0, Bp8 - Bp), (0, 0)))
    out = pl.pallas_call(
        _bigru_kernel,
        out_shape=jax.ShapeDtypeStruct((T, 2, Bp8, Hd), jnp.float32),
        grid=(1,),
        in_specs=[pl.BlockSpec((T, 2, Bp8, 3 * Hd), lambda i: (0, 0, 0, 0)),
                  pl.BlockSpec((2, Hd, 3 * Hd), lambda i: (0, 0, 0)),
                  pl.BlockSpec((2, 1, 3 * Hd), lambda i: (0, 0, 0))],
        out_specs=pl.BlockSpec((T, 2, Bp8, Hd), lambda i: (0, 0, 0, 0)),
        scratch_shapes=[pltpu.VMEM((2, Bp8, Hd), jnp.float32)],
        compiler_params=_cparams(("arbitrary",)),
    )(gx, p['w_hh'], p['b_hh'])
    out = out[:, :, :Bp]                                   # (T, 2, Bp, H)
    out_f = jnp.transpose(out[:, 0], (1, 0, 2))            # (Bp, T, H)
    out_b = jnp.transpose(out[::-1, 1], (1, 0, 2))         # reverse time back
    return jnp.concatenate([out_f, out_b], axis=-1)


def structure_aware_attention(nodes, bias, paths, p, head_num):
    B, N, H = nodes.shape
    d = H // head_num

    qkv = linear(nodes, p['qkv_w'], p['qkv_b'])            # fused q/k/v projection (B,N,3H)
    q, k, v = qkv[..., :H], qkv[..., H:2 * H], qkv[..., 2 * H:]

    def split_heads(x):
        return jnp.transpose(x.reshape(B, N, head_num, d), (0, 2, 1, 3))

    q, k, v = split_heads(q), split_heads(k), split_heads(v)

    # fused path LayerNorm + struct_k/struct_v projection: paths read from HBM once
    skv = ln_linear(paths, p['path_norm_g'], p['path_norm_b'], p['skv_w'], p['skv_b'])

    # query tiling bounds VMEM for large graphs; tq == N for small ones
    tq = N if N <= 128 else 128
    Nq = _round_up(N, tq)
    if Nq != N:
        q = jnp.pad(q, ((0, 0), (0, 0), (0, Nq - N), (0, 0)))
        skv = jnp.pad(skv, ((0, 0), (0, Nq - N), (0, 0), (0, 0)))

    attn = pl.pallas_call(
        functools.partial(_attn_kernel, scale=float(d) ** -0.5, d=d),
        out_shape=jax.ShapeDtypeStruct((B, head_num, Nq, d), jnp.float32),
        grid=(B, Nq // tq),
        in_specs=[pl.BlockSpec((1, head_num, tq, d), lambda b, qi: (b, 0, qi, 0)),
                  pl.BlockSpec((1, head_num, N, d), lambda b, qi: (b, 0, 0, 0)),
                  pl.BlockSpec((1, head_num, N, d), lambda b, qi: (b, 0, 0, 0)),
                  pl.BlockSpec((1, tq, N, 2 * d), lambda b, qi: (b, qi, 0, 0)),
                  pl.BlockSpec((1, 1, 1, N), lambda b, qi: (b, 0, 0, 0))],
        out_specs=pl.BlockSpec((1, head_num, tq, d), lambda b, qi: (b, 0, qi, 0)),
        compiler_params=_cparams(("parallel", "parallel")),
    )(q, k, v, skv, bias)

    attn = attn[:, :, :N]
    combined = jnp.transpose(attn, (0, 2, 1, 3)).reshape(B, N, H)
    out = linear(combined, p['o_w'], p['o_b'], act="relu")
    return layer_norm(nodes + out, p['norm_g'], p['norm_b'])


def path_update(nodes, hx, p):
    """GRU-style path update; the (B,N,N,2H) node-pair tensor is never materialized in HBM."""
    B, N, H = nodes.shape
    P = hx.shape[-1]
    ti = N if N <= 128 else 128
    Ni = _round_up(N, ti)
    nodes_i = nodes
    hx_p = hx
    if Ni != N:
        nodes_i = jnp.pad(nodes, ((0, 0), (0, Ni - N), (0, 0)))
        hx_p = jnp.pad(hx, ((0, 0), (0, Ni - N), (0, 0), (0, 0)))
    out = pl.pallas_call(
        functools.partial(_path_update_kernel, P=P),
        out_shape=jax.ShapeDtypeStruct((B, Ni, N, P), jnp.float32),
        grid=(B, Ni // ti),
        in_specs=[pl.BlockSpec((1, ti, H), lambda b, ii: (b, ii, 0)),
                  pl.BlockSpec((1, N, H), lambda b, ii: (b, 0, 0)),
                  pl.BlockSpec((1, ti, N, P), lambda b, ii: (b, ii, 0, 0)),
                  pl.BlockSpec((H, 3 * P), lambda b, ii: (0, 0)),
                  pl.BlockSpec((H, 3 * P), lambda b, ii: (0, 0)),
                  pl.BlockSpec((P, 3 * P), lambda b, ii: (0, 0)),
                  pl.BlockSpec((1, 3 * P), lambda b, ii: (0, 0)),
                  pl.BlockSpec((1, 3 * P), lambda b, ii: (0, 0))],
        out_specs=pl.BlockSpec((1, ti, N, P), lambda b, ii: (b, ii, 0, 0)),
        compiler_params=_cparams(("parallel", "parallel")),
    )(nodes_i, nodes, hx_p,
      p['wx_i'], p['wx_j'], p['wh'],
      p['bx'].reshape(1, 3 * P), p['bh'].reshape(1, 3 * P))
    return out[:, :N]


def path_embedding(speakers, turns, p, valid_dist, node_num):
    B = speakers.shape[0]
    sp = p['speaker'][speakers]
    tu = p['turn'][turns]
    idx = jnp.arange(node_num)
    rel = idx[None, :] - idx[:, None]
    rel = jnp.clip(rel, -valid_dist - 1, valid_dist + 1) + valid_dist + 1
    pos = p['position'][rel]
    pos = jnp.broadcast_to(pos[None], (B, node_num, node_num, pos.shape[-1]))
    return jnp.concatenate([sp, tu, pos], axis=-1)


def dual_classifier(x, p):
    """Both 2-layer classifiers fused into one kernel (block-diag 2nd layer)."""
    orig = x.shape
    K = orig[-1]
    Hc = p['w1'].shape[1]
    Nout = p['w2'].shape[1]
    x2 = x.reshape(-1, K).astype(jnp.float32)
    M = x2.shape[0]
    tm, Mp = _row_tiling(M)
    x2 = _pad_rows_to(x2, Mp)
    out = pl.pallas_call(
        _classifier_kernel,
        out_shape=jax.ShapeDtypeStruct((Mp, Nout), jnp.float32),
        grid=(Mp // tm,),
        in_specs=[pl.BlockSpec((tm, K), lambda i: (i, 0)),
                  pl.BlockSpec((K, Hc), lambda i: (0, 0)),
                  pl.BlockSpec((1, Hc), lambda i: (0, 0)),
                  pl.BlockSpec((Hc, Nout), lambda i: (0, 0)),
                  pl.BlockSpec((1, Nout), lambda i: (0, 0))],
        out_specs=pl.BlockSpec((tm, Nout), lambda i: (i, 0)),
        compiler_params=_cparams(("parallel",)),
    )(x2, p['w1'], p['b1'].reshape(1, Hc), p['w2'], p['b2'].reshape(1, Nout))
    return out[:M].reshape(*orig[:-1], Nout)


# -----------------------------------------------------------------------------
# StudentModel forward
# -----------------------------------------------------------------------------
def forward(params, texts, lengths, edu_nums, speakers, turns, cfg):
    B, E, L = texts.shape
    N = E + 1
    H = cfg['hidden_size']
    Hg = H // 2

    emb = params['emb'][texts.reshape(B * E, L)]            # (B*E, L, glove)
    sent_out = bi_gru(emb, params['sent_gru'])              # (B*E, L, H); dropout = identity
    idx = jnp.arange(B * E)
    fwd_last = sent_out[idx, lengths.reshape(-1) - 1, :Hg]  # last forward state
    bwd_first = sent_out[:, 0, Hg:]                         # first backward state
    dialog_input = jnp.concatenate([fwd_last, bwd_first], axis=-1)          # (B*E, H)
    root = jnp.broadcast_to(params['root'][None, None, :], (B, 1, H))
    dialog_input = jnp.concatenate([root, dialog_input.reshape(B, E, H)], axis=1)  # (B, N, H)
    dialog_output = bi_gru(dialog_input, params['dialog_gru'])              # (B, N, H)

    node_nums = edu_nums + 1
    valid = jnp.arange(N)[None, :] < node_nums[:, None]
    bias = jnp.where(valid, 0.0, -1e9).astype(jnp.float32)[:, None, None, :]  # (B,1,1,N)

    nodes = layer_norm(dialog_input + dialog_output, params['norm_g'], params['norm_b'])
    const_path = path_embedding(speakers, turns, params['path_emb'], cfg['valid_dist'], N)
    struct_path = jnp.zeros_like(const_path)

    memory = []
    for _ in range(cfg['num_layers']):
        nodes = structure_aware_attention(nodes, bias, struct_path + const_path,
                                          params['gnn'], cfg['num_heads'])
        struct_path = path_update(nodes, struct_path, params['path_update'])
        memory.append(struct_path)
        # inter-layer dropout: identity in eval mode

    predicted_path = jnp.concatenate(
        [struct_path, jnp.transpose(struct_path, (0, 2, 1, 3))], axis=-1)    # (B, N, N, 2P)
    scores = dual_classifier(predicted_path, params['cls'])                  # (B, N, N, 1+R)
    link_scores = scores[..., 0]
    label_scores = scores[..., 1:]
    # TODO(synk): compute_loss / get_mask / predict() are training & decoding glue, not implemented.
    return {'link_scores': link_scores, 'label_scores': label_scores, 'memory': memory}


# -----------------------------------------------------------------------------
# Deterministic parameter init (weights stored pre-transposed / pre-fused)
# -----------------------------------------------------------------------------
def init_params(key, cfg):
    H = cfg['hidden_size']
    P = cfg['path_hidden_size']
    Hg = H // 2
    G = cfg['glove_embedding_size']
    R = cfg['parent_relation_dims']
    vd = cfg['valid_dist']
    d = H // cfg['num_heads']
    keys = iter(jax.random.split(key, 80))

    def mat(shape, scale=0.1):
        return jax.random.normal(next(keys), shape, jnp.float32) * scale

    def gru_params(in_dim, hid):
        # w_ih: (in, 6*hid) = [fwd | bwd] fused input projection; w_hh: (2, hid, 3*hid).
        # Gate order along 3*hid is [r, z, n], as in torch.nn.GRU.
        return {
            'w_ih': mat((in_dim, 6 * hid)),
            'b_ih': mat((6 * hid,), 0.01),
            'w_hh': mat((2, hid, 3 * hid)),
            'b_hh': mat((2, 1, 3 * hid), 0.01),
        }

    params = {
        'emb': mat((cfg['vocab_size'], G)),
        'sent_gru': gru_params(G, Hg),
        'dialog_gru': gru_params(H, Hg),
        'root': jnp.zeros((H,), jnp.float32),
        'norm_g': jnp.ones((H,), jnp.float32),
        'norm_b': jnp.zeros((H,), jnp.float32),
        'path_emb': {
            'speaker': mat((2, P // 4)),
            'turn': mat((2, P // 4)),
            'position': mat((2 * vd + 3, P // 2)),
        },
    }

    # StructureAwareAttention: q/k/v fused into one (H,3H) projection; struct_k/struct_v
    # fused into one (P,2d) projection applied after the path LayerNorm.
    params['gnn'] = {
        'qkv_w': mat((H, 3 * H)), 'qkv_b': mat((3 * H,), 0.01),
        'o_w': mat((H, H)), 'o_b': mat((H,), 0.01),
        'skv_w': mat((P, 2 * d)), 'skv_b': mat((2 * d,), 0.01),
        'path_norm_g': jnp.ones((P,), jnp.float32),
        'path_norm_b': jnp.zeros((P,), jnp.float32),
        'norm_g': jnp.ones((H,), jnp.float32),
        'norm_b': jnp.zeros((H,), jnp.float32),
    }

    # PathUpdateModel: r/z/c fused; wx_j / wx_i act on the two halves of the node pair,
    # wh acts on hx. Gate order along 3P: [r, z, c/u]. bh carries only the u-gate bias.
    bh = jnp.zeros((3 * P,), jnp.float32).at[2 * P:].set(mat((P,), 0.01))
    params['path_update'] = {
        'wx_j': mat((H, 3 * P)), 'wx_i': mat((H, 3 * P)),
        'wh': mat((P, 3 * P)),
        'bx': mat((3 * P,), 0.01),
        'bh': bh,
    }

    # link + label classifiers fused: shared hidden matmul (2P -> 2P), block-diag 2nd layer.
    w2 = jnp.zeros((2 * P, 1 + R), jnp.float32)
    w2 = w2.at[:P, :1].set(mat((P, 1))).at[P:, 1:].set(mat((P, R)))
    params['cls'] = {
        'w1': mat((2 * P, 2 * P)), 'b1': mat((2 * P,), 0.01),
        'w2': w2, 'b2': mat((1 + R,), 0.01),
    }
    return params


# -----------------------------------------------------------------------------
# Main
# -----------------------------------------------------------------------------
if __name__ == "__main__":
    cfg = dict(
        vocab_size=50,
        glove_embedding_size=32,
        hidden_size=32,
        path_hidden_size=16,
        num_heads=4,
        num_layers=2,
        parent_relation_dims=5,
        valid_dist=3,
        max_edu_dist=4,
        dropout=0.0,
    )
    B, E, L = 2, 4, 6
    N = E + 1

    key = jax.random.PRNGKey(0)
    kp, kt, kl, ks, ku = jax.random.split(key, 5)
    params = init_params(kp, cfg)
    texts = jax.random.randint(kt, (B, E, L), 0, cfg['vocab_size'], dtype=jnp.int32)
    lengths = jax.random.randint(kl, (B, E), 1, L + 1, dtype=jnp.int32)
    edu_nums = jnp.array([E, E - 1], dtype=jnp.int32)
    speakers = jax.random.randint(ks, (B, N, N), 0, 2, dtype=jnp.int32)
    turns = jax.random.randint(ku, (B, N, N), 0, 2, dtype=jnp.int32)

    run = jax.jit(functools.partial(forward, cfg=cfg))
    out = run(params, texts, lengths, edu_nums, speakers, turns)
    jax.block_until_ready(out['link_scores'])
    jax.block_until_ready(out['label_scores'])
    jax.block_until_ready(out['memory'])

    assert out['link_scores'].shape == (B, N, N)
    assert out['label_scores'].shape == (B, N, N, cfg['parent_relation_dims'])
    assert len(out['memory']) == cfg['num_layers']
    print("KERNEL_OK")
</pallas_src>

<mosaic_0001>
module attributes {stable_mosaic.version = 11 : i64} {
  func.func @_linear_kernel(%arg0: i32, %arg1: memref<48x32xf32, #tpu.memory_space<vmem>>, %arg2: memref<32x96xf32, #tpu.memory_space<vmem>>, %arg3: memref<1x96xf32, #tpu.memory_space<vmem>>, %arg4: memref<48x96xf32, #tpu.memory_space<vmem>>) attributes {dimension_semantics = [#tpu.dimension_semantics<parallel>], iteration_bounds = array<i64: 1>, scalar_prefetch = 0 : i64, scratch_operands = 0 : i64, tpu.core_type = #tpu.core_type<tc>, window_params = [{transform_indices = @transform_0, window_bounds = array<i64: 48, 32>}, {pipeline_mode = #tpu.pipeline_mode<synchronous>, transform_indices = @transform_1, window_bounds = array<i64: 32, 96>}, {pipeline_mode = #tpu.pipeline_mode<synchronous>, transform_indices = @transform_2, window_bounds = array<i64: 1, 96>}, {transform_indices = @transform_3, window_bounds = array<i64: 48, 96>}]} {
    %c0 = arith.constant 0 : index
    %c0_0 = arith.constant 0 : index
    %0 = vector.load %arg1[%c0, %c0_0] : memref<48x32xf32, #tpu.memory_space<vmem>>, vector<48x32xf32>
    %c0_1 = arith.constant 0 : index
    %c0_2 = arith.constant 0 : index
    %1 = vector.load %arg2[%c0_1, %c0_2] : memref<32x96xf32, #tpu.memory_space<vmem>>, vector<32x96xf32>
    %cst = arith.constant dense<0.000000e+00> : vector<48x96xf32>
    %2 = tpu.matmul %0, %1, %cst {dimension_numbers = #tpu.dot_dimension_numbers<[1], [0], [0], [1], [0, 0, 1, 1], [], []>} : vector<48x32xf32>, vector<32x96xf32>, vector<48x96xf32> -> vector<48x96xf32>
    %c0_3 = arith.constant 0 : index
    %c0_4 = arith.constant 0 : index
    %3 = vector.load %arg3[%c0_3, %c0_4] : memref<1x96xf32, #tpu.memory_space<vmem>>, vector<1x96xf32>
    %4 = vector.broadcast %3 : vector<1x96xf32> to vector<48x96xf32>
    %5 = arith.addf %2, %4 : vector<48x96xf32>
    %c0_5 = arith.constant 0 : index
    %c0_6 = arith.constant 0 : index
    %6 = vector.load %arg4[%c0_5, %c0_6] : memref<48x96xf32, #tpu.memory_space<vmem>>, vector<48x96xf32>
    tpu.vector_store %arg4[%c0_5, %c0_6], %5 {strides = array<i32>} : memref<48x96xf32, #tpu.memory_space<vmem>>, vector<48x96xf32>,
    return
  }
  func.func @transform_0(%arg0: i32) -> (i32, i32) {
    %c0_i32 = arith.constant 0 : i32
    %c0_i32_0 = arith.constant 0 : i32
    return %arg0, %c0_i32 : i32, i32
  }
  func.func @transform_1(%arg0: i32) -> (i32, i32) {
    %c0_i32 = arith.constant 0 : i32
    %c0_i32_0 = arith.constant 0 : i32
    %c0_i32_1 = arith.constant 0 : i32
    return %c0_i32, %c0_i32_0 : i32, i32
  }
  func.func @transform_2(%arg0: i32) -> (i32, i32) {
    %c0_i32 = arith.constant 0 : i32
    %c0_i32_0 = arith.constant 0 : i32
    %c0_i32_1 = arith.constant 0 : i32
    return %c0_i32, %c0_i32_0 : i32, i32
  }
  func.func @transform_3(%arg0: i32) -> (i32, i32) {
    %c0_i32 = arith.constant 0 : i32
    %c0_i32_0 = arith.constant 0 : i32
    return %arg0, %c0_i32 : i32, i32
  }
}

module attributes {stable_mosaic.version = 11 : i64} {
  func.func @_bigru_kernel(%arg0: i32, %arg1: memref<6x2x8x48xf32, #tpu.memory_space<vmem>>, %arg2: memref<2x16x48xf32, #tpu.memory_space<vmem>>, %arg3: memref<2x1x48xf32, #tpu.memory_space<vmem>>, %arg4: memref<6x2x8x16xf32, #tpu.memory_space<vmem>>, %arg5: memref<2x8x16xf32, #tpu.memory_space<vmem>>) attributes {dimension_semantics = [#tpu.dimension_semantics<arbitrary>], iteration_bounds = array<i64: 1>, scalar_prefetch = 0 : i64, scratch_operands = 1 : i64, tpu.core_type = #tpu.core_type<tc>, window_params = [{pipeline_mode = #tpu.pipeline_mode<synchronous>, transform_indices = @transform_0, window_bounds = array<i64: 6, 2, 8, 48>}, {pipeline_mode = #tpu.pipeline_mode<synchronous>, transform_indices = @transform_1, window_bounds = array<i64: 2, 16, 48>}, {pipeline_mode = #tpu.pipeline_mode<synchronous>, transform_indices = @transform_2, window_bounds = array<i64: 2, 1, 48>}, {pipeline_mode = #tpu.pipeline_mode<synchronous>, transform_indices = @transform_3, window_bounds = array<i64: 6, 2, 8, 16>}]} {
    %cst = arith.constant 0.000000e+00 : f32
    %0 = vector.broadcast %cst : f32 to vector<2x8x16xf32>
    %c0 = arith.constant 0 : index
    %c0_0 = arith.constant 0 : index
    %c0_1 = arith.constant 0 : index
    %1 = vector.load %arg5[%c0, %c0_0, %c0_1] : memref<2x8x16xf32, #tpu.memory_space<vmem>>, vector<2x8x16xf32>
    tpu.vector_store %arg5[%c0, %c0_0, %c0_1], %0 {strides = array<i32>} : memref<2x8x16xf32, #tpu.memory_space<vmem>>, vector<2x8x16xf32>,
    %c0_i32 = arith.constant 0 : i32
    %c6_i32 = arith.constant 6 : i32
    %2 = arith.addi %c0_i32, %c6_i32 : i32
    %c1_i32 = arith.constant 1 : i32
    scf.for %arg6 = %c0_i32 to %2 step %c1_i32  : i32 {
      %3 = arith.index_cast %arg6 : i32 to index
      %c0_3 = arith.constant 0 : index
      %c0_4 = arith.constant 0 : index
      %c0_5 = arith.constant 0 : index
      %4 = vector.load %arg1[%3, %c0_3, %c0_4, %c0_5] : memref<6x2x8x48xf32, #tpu.memory_space<vmem>>, vector<1x2x8x48xf32>
      %5 = vector.shape_cast %4 : vector<1x2x8x48xf32> to vector<2x8x48xf32>
      %c0_6 = arith.constant 0 : index
      %c0_7 = arith.constant 0 : index
      %c0_8 = arith.constant 0 : index
      %6 = vector.load %arg5[%c0_6, %c0_7, %c0_8] : memref<2x8x16xf32, #tpu.memory_space<vmem>>, vector<2x8x16xf32>
      %c0_9 = arith.constant 0 : index
      %c0_10 = arith.constant 0 : index
      %c0_11 = arith.constant 0 : index
      %7 = vector.load %arg2[%c0_9, %c0_10, %c0_11] : memref<2x16x48xf32, #tpu.memory_space<vmem>>, vector<2x16x48xf32>
      "tpu.trace_start"() <{level = 10 : i32, message = "dbh,dhk->dbk"}> : () -> ()
      %cst_12 = arith.constant dense<0.000000e+00> : vector<2x8x48xf32>
      %8 = tpu.matmul %6, %7, %cst_12 {dimension_numbers = #tpu.dot_dimension_numbers<[2], [1], [1], [2], [0, 0, 0, 1, 1, 2], [0], [0]>} : vector<2x8x16xf32>, vector<2x16x48xf32>, vector<2x8x48xf32> -> vector<2x8x48xf32>
      "tpu.trace_stop"() : () -> ()
      %c0_13 = arith.constant 0 : index
      %c0_14 = arith.constant 0 : index
      %c0_15 = arith.constant 0 : index
      %9 = vector.load %arg3[%c0_13, %c0_14, %c0_15] : memref<2x1x48xf32, #tpu.memory_space<vmem>>, vector<2x1x48xf32>
      %10 = vector.broadcast %9 : vector<2x1x48xf32> to vector<2x8x48xf32>
      %11 = arith.addf %8, %10 : vector<2x8x48xf32>
      %12 = vector.extract_strided_slice %5 {offsets = [0, 0, 0], sizes = [2, 8, 16], strides = [1, 1, 1]} : vector<2x8x48xf32> to vector<2x8x16xf32>
      %13 = vector.extract_strided_slice %11 {offsets = [0, 0, 0], sizes = [2, 8, 16], strides = [1, 1, 1]} : vector<2x8x48xf32> to vector<2x8x16xf32>
      %14 = arith.addf %12, %13 : vector<2x8x16xf32>
      %15 = arith.negf %14 : vector<2x8x16xf32>
      %16 = math.exp %15 : vector<2x8x16xf32>
      %cst_16 = arith.constant 1.000000e+00 : f32
      %17 = vector.broadcast %cst_16 : f32 to vector<2x8x16xf32>
      %18 = arith.addf %17, %16 : vector<2x8x16xf32>
      %19 = arith.divf %17, %18 : vector<2x8x16xf32>
      %20 = vector.extract_strided_slice %5 {offsets = [0, 0, 16], sizes = [2, 8, 16], strides = [1, 1, 1]} : vector<2x8x48xf32> to vector<2x8x16xf32>
      %21 = vector.extract_strided_slice %11 {offsets = [0, 0, 16], sizes = [2, 8, 16], strides = [1, 1, 1]} : vector<2x8x48xf32> to vector<2x8x16xf32>
      %22 = arith.addf %20, %21 : vector<2x8x16xf32>
      %23 = arith.negf %22 : vector<2x8x16xf32>
      %24 = math.exp %23 : vector<2x8x16xf32>
      %cst_17 = arith.constant 1.000000e+00 : f32
      %25 = vector.broadcast %cst_17 : f32 to vector<2x8x16xf32>
      %26 = arith.addf %25, %24 : vector<2x8x16xf32>
      %27 = arith.divf %25, %26 : vector<2x8x16xf32>
      %28 = vector.extract_strided_slice %5 {offsets = [0, 0, 32], sizes = [2, 8, 16], strides = [1, 1, 1]} : vector<2x8x48xf32> to vector<2x8x16xf32>
      %29 = vector.extract_strided_slice %11 {offsets = [0, 0, 32], sizes = [2, 8, 16], strides = [1, 1, 1]} : vector<2x8x48xf32> to vector<2x8x16xf32>
      %30 = arith.mulf %19, %29 : vector<2x8x16xf32>
      %31 = arith.addf %28, %30 : vector<2x8x16xf32>
      %32 = math.tanh %31 : vector<2x8x16xf32>
      %cst_18 = arith.constant 1.000000e+00 : f32
      %33 = vector.broadcast %cst_18 : f32 to vector<2x8x16xf32>
      %34 = arith.subf %33, %27 : vector<2x8x16xf32>
      %35 = arith.mulf %34, %32 : vector<2x8x16xf32>
      %36 = arith.mulf %27, %6 : vector<2x8x16xf32>
      %37 = arith.addf %35, %36 : vector<2x8x16xf32>
      %c0_19 = arith.constant 0 : index
      %c0_20 = arith.constant 0 : index
      %c0_21 = arith.constant 0 : index
      %38 = vector.load %arg5[%c0_19, %c0_20, %c0_21] : memref<2x8x16xf32, #tpu.memory_space<vmem>>, vector<2x8x16xf32>
      tpu.vector_store %arg5[%c0_19, %c0_20, %c0_21], %37 {strides = array<i32>} : memref<2x8x16xf32, #tpu.memory_space<vmem>>, vector<2x8x16xf32>,
      %39 = arith.index_cast %arg6 : i32 to index
      %c0_22 = arith.constant 0 : index
      %c0_23 = arith.constant 0 : index
      %c0_24 = arith.constant 0 : index
      %40 = vector.load %arg4[%39, %c0_22, %c0_23, %c0_24] : memref<6x2x8x16xf32, #tpu.memory_space<vmem>>, vector<1x2x8x16xf32>
      %41 = vector.shape_cast %40 : vector<1x2x8x16xf32> to vector<2x8x16xf32>
      %42 = vector.shape_cast %37 : vector<2x8x16xf32> to vector<1x2x8x16xf32>
      tpu.vector_store %arg4[%39, %c0_22, %c0_23, %c0_24], %42 {strides = array<i32>} : memref<6x2x8x16xf32, #tpu.memory_space<vmem>>, vector<1x2x8x16xf32>,
    }
    %c6_i32_2 = arith.constant 6 : i32
    return
  }
  func.func @transform_0(%arg0: i32) -> (i32, i32, i32, i32) {
    %c0_i32 = arith.constant 0 : i32
    %c0_i32_0 = arith.constant 0 : i32
    %c0_i32_1 = arith.constant 0 : i32
    %c0_i32_2 = arith.constant 0 : i32
    %c0_i32_3 = arith.constant 0 : i32
    return %c0_i32, %c0_i32_0, %c0_i32_1, %c0_i32_2 : i32, i32, i32, i32
  }
  func.func @transform_1(%arg0: i32) -> (i32, i32, i32) {
    %c0_i32 = arith.constant 0 : i32
    %c0_i32_0 = arith.constant 0 : i32
    %c0_i32_1 = arith.constant 0 : i32
    %c0_i32_2 = arith.constant 0 : i32
    return %c0_i32, %c0_i32_0, %c0_i32_1 : i32, i32, i32
  }
  func.func @transform_2(%arg0: i32) -> (i32, i32, i32) {
    %c0_i32 = arith.constant 0 : i32
    %c0_i32_0 = arith.constant 0 : i32
    %c0_i32_1 = arith.constant 0 : i32
    %c0_i32_2 = arith.constant 0 : i32
    return %c0_i32, %c0_i32_0, %c0_i32_1 : i32, i32, i32
  }
  func.func @transform_3(%arg0: i32) -> (i32, i32, i32, i32) {
    %c0_i32 = arith.constant 0 : i32
    %c0_i32_0 = arith.constant 0 : i32
    %c0_i32_1 = arith.constant 0 : i32
    %c0_i32_2 = arith.constant 0 : i32
    %c0_i32_3 = arith.constant 0 : i32
    return %c0_i32, %c0_i32_0, %c0_i32_1, %c0_i32_2 : i32, i32, i32, i32
  }
}

module attributes {stable_mosaic.version = 11 : i64} {
  func.func @_linear_kernel(%arg0: i32, %arg1: memref<16x32xf32, #tpu.memory_space<vmem>>, %arg2: memref<32x96xf32, #tpu.memory_space<vmem>>, %arg3: memref<1x96xf32, #tpu.memory_space<vmem>>, %arg4: memref<16x96xf32, #tpu.memory_space<vmem>>) attributes {dimension_semantics = [#tpu.dimension_semantics<parallel>], iteration_bounds = array<i64: 1>, scalar_prefetch = 0 : i64, scratch_operands = 0 : i64, tpu.core_type = #tpu.core_type<tc>, window_params = [{transform_indices = @transform_0, window_bounds = array<i64: 16, 32>}, {pipeline_mode = #tpu.pipeline_mode<synchronous>, transform_indices = @transform_1, window_bounds = array<i64: 32, 96>}, {pipeline_mode = #tpu.pipeline_mode<synchronous>, transform_indices = @transform_2, window_bounds = array<i64: 1, 96>}, {transform_indices = @transform_3, window_bounds = array<i64: 16, 96>}]} {
    %c0 = arith.constant 0 : index
    %c0_0 = arith.constant 0 : index
    %0 = vector.load %arg1[%c0, %c0_0] : memref<16x32xf32, #tpu.memory_space<vmem>>, vector<16x32xf32>
    %c0_1 = arith.constant 0 : index
    %c0_2 = arith.constant 0 : index
    %1 = vector.load %arg2[%c0_1, %c0_2] : memref<32x96xf32, #tpu.memory_space<vmem>>, vector<32x96xf32>
    %cst = arith.constant dense<0.000000e+00> : vector<16x96xf32>
    %2 = tpu.matmul %0, %1, %cst {dimension_numbers = #tpu.dot_dimension_numbers<[1], [0], [0], [1], [0, 0, 1, 1], [], []>} : vector<16x32xf32>, vector<32x96xf32>, vector<16x96xf32> -> vector<16x96xf32>
    %c0_3 = arith.constant 0 : index
    %c0_4 = arith.constant 0 : index
    %3 = vector.load %arg3[%c0_3, %c0_4] : memref<1x96xf32, #tpu.memory_space<vmem>>, vector<1x96xf32>
    %4 = vector.broadcast %3 : vector<1x96xf32> to vector<16x96xf32>
    %5 = arith.addf %2, %4 : vector<16x96xf32>
    %c0_5 = arith.constant 0 : index
    %c0_6 = arith.constant 0 : index
    %6 = vector.load %arg4[%c0_5, %c0_6] : memref<16x96xf32, #tpu.memory_space<vmem>>, vector<16x96xf32>
    tpu.vector_store %arg4[%c0_5, %c0_6], %5 {strides = array<i32>} : memref<16x96xf32, #tpu.memory_space<vmem>>, vector<16x96xf32>,
    return
  }
  func.func @transform_0(%arg0: i32) -> (i32, i32) {
    %c0_i32 = arith.constant 0 : i32
    %c0_i32_0 = arith.constant 0 : i32
    return %arg0, %c0_i32 : i32, i32
  }
  func.func @transform_1(%arg0: i32) -> (i32, i32) {
    %c0_i32 = arith.constant 0 : i32
    %c0_i32_0 = arith.constant 0 : i32
    %c0_i32_1 = arith.constant 0 : i32
    return %c0_i32, %c0_i32_0 : i32, i32
  }
  func.func @transform_2(%arg0: i32) -> (i32, i32) {
    %c0_i32 = arith.constant 0 : i32
    %c0_i32_0 = arith.constant 0 : i32
    %c0_i32_1 = arith.constant 0 : i32
    return %c0_i32, %c0_i32_0 : i32, i32
  }
  func.func @transform_3(%arg0: i32) -> (i32, i32) {
    %c0_i32 = arith.constant 0 : i32
    %c0_i32_0 = arith.constant 0 : i32
    return %arg0, %c0_i32 : i32, i32
  }
}

module attributes {stable_mosaic.version = 11 : i64} {
  func.func @_bigru_kernel(%arg0: i32, %arg1: memref<5x2x8x48xf32, #tpu.memory_space<vmem>>, %arg2: memref<2x16x48xf32, #tpu.memory_space<vmem>>, %arg3: memref<2x1x48xf32, #tpu.memory_space<vmem>>, %arg4: memref<5x2x8x16xf32, #tpu.memory_space<vmem>>, %arg5: memref<2x8x16xf32, #tpu.memory_space<vmem>>) attributes {dimension_semantics = [#tpu.dimension_semantics<arbitrary>], iteration_bounds = array<i64: 1>, scalar_prefetch = 0 : i64, scratch_operands = 1 : i64, tpu.core_type = #tpu.core_type<tc>, window_params = [{pipeline_mode = #tpu.pipeline_mode<synchronous>, transform_indices = @transform_0, window_bounds = array<i64: 5, 2, 8, 48>}, {pipeline_mode = #tpu.pipeline_mode<synchronous>, transform_indices = @transform_1, window_bounds = array<i64: 2, 16, 48>}, {pipeline_mode = #tpu.pipeline_mode<synchronous>, transform_indices = @transform_2, window_bounds = array<i64: 2, 1, 48>}, {pipeline_mode = #tpu.pipeline_mode<synchronous>, transform_indices = @transform_3, window_bounds = array<i64: 5, 2, 8, 16>}]} {
    %cst = arith.constant 0.000000e+00 : f32
    %0 = vector.broadcast %cst : f32 to vector<2x8x16xf32>
    %c0 = arith.constant 0 : index
    %c0_0 = arith.constant 0 : index
    %c0_1 = arith.constant 0 : index
    %1 = vector.load %arg5[%c0, %c0_0, %c0_1] : memref<2x8x16xf32, #tpu.memory_space<vmem>>, vector<2x8x16xf32>
    tpu.vector_store %arg5[%c0, %c0_0, %c0_1], %0 {strides = array<i32>} : memref<2x8x16xf32, #tpu.memory_space<vmem>>, vector<2x8x16xf32>,
    %c0_i32 = arith.constant 0 : i32
    %c5_i32 = arith.constant 5 : i32
    %2 = arith.addi %c0_i32, %c5_i32 : i32
    %c1_i32 = arith.constant 1 : i32
    scf.for %arg6 = %c0_i32 to %2 step %c1_i32  : i32 {
      %3 = arith.index_cast %arg6 : i32 to index
      %c0_3 = arith.constant 0 : index
      %c0_4 = arith.constant 0 : index
      %c0_5 = arith.constant 0 : index
      %4 = vector.load %arg1[%3, %c0_3, %c0_4, %c0_5] : memref<5x2x8x48xf32, #tpu.memory_space<vmem>>, vector<1x2x8x48xf32>
      %5 = vector.shape_cast %4 : vector<1x2x8x48xf32> to vector<2x8x48xf32>
      %c0_6 = arith.constant 0 : index
      %c0_7 = arith.constant 0 : index
      %c0_8 = arith.constant 0 : index
      %6 = vector.load %arg5[%c0_6, %c0_7, %c0_8] : memref<2x8x16xf32, #tpu.memory_space<vmem>>, vector<2x8x16xf32>
      %c0_9 = arith.constant 0 : index
      %c0_10 = arith.constant 0 : index
      %c0_11 = arith.constant 0 : index
      %7 = vector.load %arg2[%c0_9, %c0_10, %c0_11] : memref<2x16x48xf32, #tpu.memory_space<vmem>>, vector<2x16x48xf32>
      "tpu.trace_start"() <{level = 10 : i32, message = "dbh,dhk->dbk"}> : () -> ()
      %cst_12 = arith.constant dense<0.000000e+00> : vector<2x8x48xf32>
      %8 = tpu.matmul %6, %7, %cst_12 {dimension_numbers = #tpu.dot_dimension_numbers<[2], [1], [1], [2], [0, 0, 0, 1, 1, 2], [0], [0]>} : vector<2x8x16xf32>, vector<2x16x48xf32>, vector<2x8x48xf32> -> vector<2x8x48xf32>
      "tpu.trace_stop"() : () -> ()
      %c0_13 = arith.constant 0 : index
      %c0_14 = arith.constant 0 : index
      %c0_15 = arith.constant 0 : index
      %9 = vector.load %arg3[%c0_13, %c0_14, %c0_15] : memref<2x1x48xf32, #tpu.memory_space<vmem>>, vector<2x1x48xf32>
      %10 = vector.broadcast %9 : vector<2x1x48xf32> to vector<2x8x48xf32>
      %11 = arith.addf %8, %10 : vector<2x8x48xf32>
      %12 = vector.extract_strided_slice %5 {offsets = [0, 0, 0], sizes = [2, 8, 16], strides = [1, 1, 1]} : vector<2x8x48xf32> to vector<2x8x16xf32>
      %13 = vector.extract_strided_slice %11 {offsets = [0, 0, 0], sizes = [2, 8, 16], strides = [1, 1, 1]} : vector<2x8x48xf32> to vector<2x8x16xf32>
      %14 = arith.addf %12, %13 : vector<2x8x16xf32>
      %15 = arith.negf %14 : vector<2x8x16xf32>
      %16 = math.exp %15 : vector<2x8x16xf32>
      %cst_16 = arith.constant 1.000000e+00 : f32
      %17 = vector.broadcast %cst_16 : f32 to vector<2x8x16xf32>
      %18 = arith.addf %17, %16 : vector<2x8x16xf32>
      %19 = arith.divf %17, %18 : vector<2x8x16xf32>
      %20 = vector.extract_strided_slice %5 {offsets = [0, 0, 16], sizes = [2, 8, 16], strides = [1, 1, 1]} : vector<2x8x48xf32> to vector<2x8x16xf32>
      %21 = vector.extract_strided_slice %11 {offsets = [0, 0, 16], sizes = [2, 8, 16], strides = [1, 1, 1]} : vector<2x8x48xf32> to vector<2x8x16xf32>
      %22 = arith.addf %20, %21 : vector<2x8x16xf32>
      %23 = arith.negf %22 : vector<2x8x16xf32>
      %24 = math.exp %23 : vector<2x8x16xf32>
      %cst_17 = arith.constant 1.000000e+00 : f32
      %25 = vector.broadcast %cst_17 : f32 to vector<2x8x16xf32>
      %26 = arith.addf %25, %24 : vector<2x8x16xf32>
      %27 = arith.divf %25, %26 : vector<2x8x16xf32>
      %28 = vector.extract_strided_slice %5 {offsets = [0, 0, 32], sizes = [2, 8, 16], strides = [1, 1, 1]} : vector<2x8x48xf32> to vector<2x8x16xf32>
      %29 = vector.extract_strided_slice %11 {offsets = [0, 0, 32], sizes = [2, 8, 16], strides = [1, 1, 1]} : vector<2x8x48xf32> to vector<2x8x16xf32>
      %30 = arith.mulf %19, %29 : vector<2x8x16xf32>
      %31 = arith.addf %28, %30 : vector<2x8x16xf32>
      %32 = math.tanh %31 : vector<2x8x16xf32>
      %cst_18 = arith.constant 1.000000e+00 : f32
      %33 = vector.broadcast %cst_18 : f32 to vector<2x8x16xf32>
      %34 = arith.subf %33, %27 : vector<2x8x16xf32>
      %35 = arith.mulf %34, %32 : vector<2x8x16xf32>
      %36 = arith.mulf %27, %6 : vector<2x8x16xf32>
      %37 = arith.addf %35, %36 : vector<2x8x16xf32>
      %c0_19 = arith.constant 0 : index
      %c0_20 = arith.constant 0 : index
      %c0_21 = arith.constant 0 : index
      %38 = vector.load %arg5[%c0_19, %c0_20, %c0_21] : memref<2x8x16xf32, #tpu.memory_space<vmem>>, vector<2x8x16xf32>
      tpu.vector_store %arg5[%c0_19, %c0_20, %c0_21], %37 {strides = array<i32>} : memref<2x8x16xf32, #tpu.memory_space<vmem>>, vector<2x8x16xf32>,
      %39 = arith.index_cast %arg6 : i32 to index
      %c0_22 = arith.constant 0 : index
      %c0_23 = arith.constant 0 : index
      %c0_24 = arith.constant 0 : index
      %40 = vector.load %arg4[%39, %c0_22, %c0_23, %c0_24] : memref<5x2x8x16xf32, #tpu.memory_space<vmem>>, vector<1x2x8x16xf32>
      %41 = vector.shape_cast %40 : vector<1x2x8x16xf32> to vector<2x8x16xf32>
      %42 = vector.shape_cast %37 : vector<2x8x16xf32> to vector<1x2x8x16xf32>
      tpu.vector_store %arg4[%39, %c0_22, %c0_23, %c0_24], %42 {strides = array<i32>} : memref<5x2x8x16xf32, #tpu.memory_space<vmem>>, vector<1x2x8x16xf32>,
    }
    %c5_i32_2 = arith.constant 5 : i32
    return
  }
  func.func @transform_0(%arg0: i32) -> (i32, i32, i32, i32) {
    %c0_i32 = arith.constant 0 : i32
    %c0_i32_0 = arith.constant 0 : i32
    %c0_i32_1 = arith.constant 0 : i32
    %c0_i32_2 = arith.constant 0 : i32
    %c0_i32_3 = arith.constant 0 : i32
    return %c0_i32, %c0_i32_0, %c0_i32_1, %c0_i32_2 : i32, i32, i32, i32
  }
  func.func @transform_1(%arg0: i32) -> (i32, i32, i32) {
    %c0_i32 = arith.constant 0 : i32
    %c0_i32_0 = arith.constant 0 : i32
    %c0_i32_1 = arith.constant 0 : i32
    %c0_i32_2 = arith.constant 0 : i32
    return %c0_i32, %c0_i32_0, %c0_i32_1 : i32, i32, i32
  }
  func.func @transform_2(%arg0: i32) -> (i32, i32, i32) {
    %c0_i32 = arith.constant 0 : i32
    %c0_i32_0 = arith.constant 0 : i32
    %c0_i32_1 = arith.constant 0 : i32
    %c0_i32_2 = arith.constant 0 : i32
    return %c0_i32, %c0_i32_0, %c0_i32_1 : i32, i32, i32
  }
  func.func @transform_3(%arg0: i32) -> (i32, i32, i32, i32) {
    %c0_i32 = arith.constant 0 : i32
    %c0_i32_0 = arith.constant 0 : i32
    %c0_i32_1 = arith.constant 0 : i32
    %c0_i32_2 = arith.constant 0 : i32
    %c0_i32_3 = arith.constant 0 : i32
    return %c0_i32, %c0_i32_0, %c0_i32_1, %c0_i32_2 : i32, i32, i32, i32
  }
}

module attributes {stable_mosaic.version = 11 : i64} {
  func.func @_layernorm_kernel(%arg0: i32, %arg1: memref<16x32xf32, #tpu.memory_space<vmem>>, %arg2: memref<1x32xf32, #tpu.memory_space<vmem>>, %arg3: memref<1x32xf32, #tpu.memory_space<vmem>>, %arg4: memref<16x32xf32, #tpu.memory_space<vmem>>) attributes {dimension_semantics = [#tpu.dimension_semantics<parallel>], iteration_bounds = array<i64: 1>, scalar_prefetch = 0 : i64, scratch_operands = 0 : i64, tpu.core_type = #tpu.core_type<tc>, window_params = [{transform_indices = @transform_0, window_bounds = array<i64: 16, 32>}, {pipeline_mode = #tpu.pipeline_mode<synchronous>, transform_indices = @transform_1, window_bounds = array<i64: 1, 32>}, {pipeline_mode = #tpu.pipeline_mode<synchronous>, transform_indices = @transform_2, window_bounds = array<i64: 1, 32>}, {transform_indices = @transform_3, window_bounds = array<i64: 16, 32>}]} {
    %c0 = arith.constant 0 : index
    %c0_0 = arith.constant 0 : index
    %0 = vector.load %arg1[%c0, %c0_0] : memref<16x32xf32, #tpu.memory_space<vmem>>, vector<16x32xf32>
    %cst = arith.constant dense<0.000000e+00> : vector<16xf32>
    %1 = vector.multi_reduction <add>, %0, %cst [1] : vector<16x32xf32> to vector<16xf32>
    %2 = vector.shape_cast %1 : vector<16xf32> to vector<16x1xf32>
    %cst_1 = arith.constant 3.200000e+01 : f32
    %3 = vector.broadcast %cst_1 : f32 to vector<16x1xf32>
    %4 = arith.divf %2, %3 : vector<16x1xf32>
    %5 = vector.broadcast %4 : vector<16x1xf32> to vector<16x32xf32>
    %6 = arith.subf %0, %5 : vector<16x32xf32>
    %7 = arith.mulf %6, %6 : vector<16x32xf32>
    %cst_2 = arith.constant dense<0.000000e+00> : vector<16xf32>
    %8 = vector.multi_reduction <add>, %7, %cst_2 [1] : vector<16x32xf32> to vector<16xf32>
    %9 = vector.shape_cast %8 : vector<16xf32> to vector<16x1xf32>
    %cst_3 = arith.constant 3.200000e+01 : f32
    %10 = vector.broadcast %cst_3 : f32 to vector<16x1xf32>
    %11 = arith.divf %9, %10 : vector<16x1xf32>
    %12 = vector.broadcast %4 : vector<16x1xf32> to vector<16x32xf32>
    %13 = arith.subf %0, %12 : vector<16x32xf32>
    %cst_4 = arith.constant 9.99999974E-6 : f32
    %14 = vector.broadcast %cst_4 : f32 to vector<16x1xf32>
    %15 = arith.addf %11, %14 : vector<16x1xf32>
    %16 = math.rsqrt %15 : vector<16x1xf32>
    %17 = vector.broadcast %16 : vector<16x1xf32> to vector<16x32xf32>
    %18 = arith.mulf %13, %17 : vector<16x32xf32>
    %c0_5 = arith.constant 0 : index
    %c0_6 = arith.constant 0 : index
    %19 = vector.load %arg2[%c0_5, %c0_6] : memref<1x32xf32, #tpu.memory_space<vmem>>, vector<1x32xf32>
    %20 = vector.broadcast %19 : vector<1x32xf32> to vector<16x32xf32>
    %21 = arith.mulf %18, %20 : vector<16x32xf32>
    %c0_7 = arith.constant 0 : index
    %c0_8 = arith.constant 0 : index
    %22 = vector.load %arg3[%c0_7, %c0_8] : memref<1x32xf32, #tpu.memory_space<vmem>>, vector<1x32xf32>
    %23 = vector.broadcast %22 : vector<1x32xf32> to vector<16x32xf32>
    %24 = arith.addf %21, %23 : vector<16x32xf32>
    %c0_9 = arith.constant 0 : index
    %c0_10 = arith.constant 0 : index
    %25 = vector.load %arg4[%c0_9, %c0_10] : memref<16x32xf32, #tpu.memory_space<vmem>>, vector<16x32xf32>
    tpu.vector_store %arg4[%c0_9, %c0_10], %24 {strides = array<i32>} : memref<16x32xf32, #tpu.memory_space<vmem>>, vector<16x32xf32>,
    return
  }
  func.func @transform_0(%arg0: i32) -> (i32, i32) {
    %c0_i32 = arith.constant 0 : i32
    %c0_i32_0 = arith.constant 0 : i32
    return %arg0, %c0_i32 : i32, i32
  }
  func.func @transform_1(%arg0: i32) -> (i32, i32) {
    %c0_i32 = arith.constant 0 : i32
    %c0_i32_0 = arith.constant 0 : i32
    %c0_i32_1 = arith.constant 0 : i32
    return %c0_i32, %c0_i32_0 : i32, i32
  }
  func.func @transform_2(%arg0: i32) -> (i32, i32) {
    %c0_i32 = arith.constant 0 : i32
    %c0_i32_0 = arith.constant 0 : i32
    %c0_i32_1 = arith.constant 0 : i32
    return %c0_i32, %c0_i32_0 : i32, i32
  }
  func.func @transform_3(%arg0: i32) -> (i32, i32) {
    %c0_i32 = arith.constant 0 : i32
    %c0_i32_0 = arith.constant 0 : i32
    return %arg0, %c0_i32 : i32, i32
  }
}

module attributes {stable_mosaic.version = 11 : i64} {
  func.func @_linear_kernel(%arg0: i32, %arg1: memref<16x32xf32, #tpu.memory_space<vmem>>, %arg2: memref<32x32xf32, #tpu.memory_space<vmem>>, %arg3: memref<1x32xf32, #tpu.memory_space<vmem>>, %arg4: memref<16x32xf32, #tpu.memory_space<vmem>>) attributes {dimension_semantics = [#tpu.dimension_semantics<parallel>], iteration_bounds = array<i64: 1>, scalar_prefetch = 0 : i64, scratch_operands = 0 : i64, tpu.core_type = #tpu.core_type<tc>, window_params = [{transform_indices = @transform_0, window_bounds = array<i64: 16, 32>}, {pipeline_mode = #tpu.pipeline_mode<synchronous>, transform_indices = @transform_1, window_bounds = array<i64: 32, 32>}, {pipeline_mode = #tpu.pipeline_mode<synchronous>, transform_indices = @transform_2, window_bounds = array<i64: 1, 32>}, {transform_indices = @transform_3, window_bounds = array<i64: 16, 32>}]} {
    %c0 = arith.constant 0 : index
    %c0_0 = arith.constant 0 : index
    %0 = vector.load %arg1[%c0, %c0_0] : memref<16x32xf32, #tpu.memory_space<vmem>>, vector<16x32xf32>
    %c0_1 = arith.constant 0 : index
    %c0_2 = arith.constant 0 : index
    %1 = vector.load %arg2[%c0_1, %c0_2] : memref<32x32xf32, #tpu.memory_space<vmem>>, vector<32x32xf32>
    %cst = arith.constant dense<0.000000e+00> : vector<16x32xf32>
    %2 = tpu.matmul %0, %1, %cst {dimension_numbers = #tpu.dot_dimension_numbers<[1], [0], [0], [1], [0, 0, 1, 1], [], []>} : vector<16x32xf32>, vector<32x32xf32>, vector<16x32xf32> -> vector<16x32xf32>
    %c0_3 = arith.constant 0 : index
    %c0_4 = arith.constant 0 : index
    %3 = vector.load %arg3[%c0_3, %c0_4] : memref<1x32xf32, #tpu.memory_space<vmem>>, vector<1x32xf32>
    %4 = vector.broadcast %3 : vector<1x32xf32> to vector<16x32xf32>
    %5 = arith.addf %2, %4 : vector<16x32xf32>
    %cst_5 = arith.constant 0.000000e+00 : f32
    %6 = vector.broadcast %cst_5 : f32 to vector<16x32xf32>
    %7 = arith.maximumf %5, %6 : vector<16x32xf32>
    %c0_6 = arith.constant 0 : index
    %c0_7 = arith.constant 0 : index
    %8 = vector.load %arg4[%c0_6, %c0_7] : memref<16x32xf32, #tpu.memory_space<vmem>>, vector<16x32xf32>
    tpu.vector_store %arg4[%c0_6, %c0_7], %7 {strides = array<i32>} : memref<16x32xf32, #tpu.memory_space<vmem>>, vector<16x32xf32>,
    return
  }
  func.func @transform_0(%arg0: i32) -> (i32, i32) {
    %c0_i32 = arith.constant 0 : i32
    %c0_i32_0 = arith.constant 0 : i32
    return %arg0, %c0_i32 : i32, i32
  }
  func.func @transform_1(%arg0: i32) -> (i32, i32) {
    %c0_i32 = arith.constant 0 : i32
    %c0_i32_0 = arith.constant 0 : i32
    %c0_i32_1 = arith.constant 0 : i32
    return %c0_i32, %c0_i32_0 : i32, i32
  }
  func.func @transform_2(%arg0: i32) -> (i32, i32) {
    %c0_i32 = arith.constant 0 : i32
    %c0_i32_0 = arith.constant 0 : i32
    %c0_i32_1 = arith.constant 0 : i32
    return %c0_i32, %c0_i32_0 : i32, i32
  }
  func.func @transform_3(%arg0: i32) -> (i32, i32) {
    %c0_i32 = arith.constant 0 : i32
    %c0_i32_0 = arith.constant 0 : i32
    return %arg0, %c0_i32 : i32, i32
  }
}

module attributes {stable_mosaic.version = 11 : i64} {
  func.func @_ln_linear_kernel(%arg0: i32, %arg1: memref<56x16xf32, #tpu.memory_space<vmem>>, %arg2: memref<1x16xf32, #tpu.memory_space<vmem>>, %arg3: memref<1x16xf32, #tpu.memory_space<vmem>>, %arg4: memref<16x16xf32, #tpu.memory_space<vmem>>, %arg5: memref<1x16xf32, #tpu.memory_space<vmem>>, %arg6: memref<56x16xf32, #tpu.memory_space<vmem>>) attributes {dimension_semantics = [#tpu.dimension_semantics<parallel>], iteration_bounds = array<i64: 1>, scalar_prefetch = 0 : i64, scratch_operands = 0 : i64, tpu.core_type = #tpu.core_type<tc>, window_params = [{transform_indices = @transform_0, window_bounds = array<i64: 56, 16>}, {pipeline_mode = #tpu.pipeline_mode<synchronous>, transform_indices = @transform_1, window_bounds = array<i64: 1, 16>}, {pipeline_mode = #tpu.pipeline_mode<synchronous>, transform_indices = @transform_2, window_bounds = array<i64: 1, 16>}, {pipeline_mode = #tpu.pipeline_mode<synchronous>, transform_indices = @transform_3, window_bounds = array<i64: 16, 16>}, {pipeline_mode = #tpu.pipeline_mode<synchronous>, transform_indices = @transform_4, window_bounds = array<i64: 1, 16>}, {transform_indices = @transform_5, window_bounds = array<i64: 56, 16>}]} {
    %c0 = arith.constant 0 : index
    %c0_0 = arith.constant 0 : index
    %0 = vector.load %arg1[%c0, %c0_0] : memref<56x16xf32, #tpu.memory_space<vmem>>, vector<56x16xf32>
    %cst = arith.constant dense<0.000000e+00> : vector<56xf32>
    %1 = vector.multi_reduction <add>, %0, %cst [1] : vector<56x16xf32> to vector<56xf32>
    %2 = vector.shape_cast %1 : vector<56xf32> to vector<56x1xf32>
    %cst_1 = arith.constant 1.600000e+01 : f32
    %3 = vector.broadcast %cst_1 : f32 to vector<56x1xf32>
    %4 = arith.divf %2, %3 : vector<56x1xf32>
    %5 = vector.broadcast %4 : vector<56x1xf32> to vector<56x16xf32>
    %6 = arith.subf %0, %5 : vector<56x16xf32>
    %7 = arith.mulf %6, %6 : vector<56x16xf32>
    %cst_2 = arith.constant dense<0.000000e+00> : vector<56xf32>
    %8 = vector.multi_reduction <add>, %7, %cst_2 [1] : vector<56x16xf32> to vector<56xf32>
    %9 = vector.shape_cast %8 : vector<56xf32> to vector<56x1xf32>
    %cst_3 = arith.constant 1.600000e+01 : f32
    %10 = vector.broadcast %cst_3 : f32 to vector<56x1xf32>
    %11 = arith.divf %9, %10 : vector<56x1xf32>
    %12 = vector.broadcast %4 : vector<56x1xf32> to vector<56x16xf32>
    %13 = arith.subf %0, %12 : vector<56x16xf32>
    %cst_4 = arith.constant 9.99999974E-6 : f32
    %14 = vector.broadcast %cst_4 : f32 to vector<56x1xf32>
    %15 = arith.addf %11, %14 : vector<56x1xf32>
    %16 = math.rsqrt %15 : vector<56x1xf32>
    %17 = vector.broadcast %16 : vector<56x1xf32> to vector<56x16xf32>
    %18 = arith.mulf %13, %17 : vector<56x16xf32>
    %c0_5 = arith.constant 0 : index
    %c0_6 = arith.constant 0 : index
    %19 = vector.load %arg2[%c0_5, %c0_6] : memref<1x16xf32, #tpu.memory_space<vmem>>, vector<1x16xf32>
    %20 = vector.broadcast %19 : vector<1x16xf32> to vector<56x16xf32>
    %21 = arith.mulf %18, %20 : vector<56x16xf32>
    %c0_7 = arith.constant 0 : index
    %c0_8 = arith.constant 0 : index
    %22 = vector.load %arg3[%c0_7, %c0_8] : memref<1x16xf32, #tpu.memory_space<vmem>>, vector<1x16xf32>
    %23 = vector.broadcast %22 : vector<1x16xf32> to vector<56x16xf32>
    %24 = arith.addf %21, %23 : vector<56x16xf32>
    %c0_9 = arith.constant 0 : index
    %c0_10 = arith.constant 0 : index
    %25 = vector.load %arg4[%c0_9, %c0_10] : memref<16x16xf32, #tpu.memory_space<vmem>>, vector<16x16xf32>
    %cst_11 = arith.constant dense<0.000000e+00> : vector<56x16xf32>
    %26 = tpu.matmul %24, %25, %cst_11 {dimension_numbers = #tpu.dot_dimension_numbers<[1], [0], [0], [1], [0, 0, 1, 1], [], []>} : vector<56x16xf32>, vector<16x16xf32>, vector<56x16xf32> -> vector<56x16xf32>
    %c0_12 = arith.constant 0 : index
    %c0_13 = arith.constant 0 : index
    %27 = vector.load %arg5[%c0_12, %c0_13] : memref<1x16xf32, #tpu.memory_space<vmem>>, vector<1x16xf32>
    %28 = vector.broadcast %27 : vector<1x16xf32> to vector<56x16xf32>
    %29 = arith.addf %26, %28 : vector<56x16xf32>
    %c0_14 = arith.constant 0 : index
    %c0_15 = arith.constant 0 : index
    %30 = vector.load %arg6[%c0_14, %c0_15] : memref<56x16xf32, #tpu.memory_space<vmem>>, vector<56x16xf32>
    tpu.vector_store %arg6[%c0_14, %c0_15], %29 {strides = array<i32>} : memref<56x16xf32, #tpu.memory_space<vmem>>, vector<56x16xf32>,
    return
  }
  func.func @transform_0(%arg0: i32) -> (i32, i32) {
    %c0_i32 = arith.constant 0 : i32
    %c0_i32_0 = arith.constant 0 : i32
    return %arg0, %c0_i32 : i32, i32
  }
  func.func @transform_1(%arg0: i32) -> (i32, i32) {
    %c0_i32 = arith.constant 0 : i32
    %c0_i32_0 = arith.constant 0 : i32
    %c0_i32_1 = arith.constant 0 : i32
    return %c0_i32, %c0_i32_0 : i32, i32
  }
  func.func @transform_2(%arg0: i32) -> (i32, i32) {
    %c0_i32 = arith.constant 0 : i32
    %c0_i32_0 = arith.constant 0 : i32
    %c0_i32_1 = arith.constant 0 : i32
    return %c0_i32, %c0_i32_0 : i32, i32
  }
  func.func @transform_3(%arg0: i32) -> (i32, i32) {
    %c0_i32 = arith.constant 0 : i32
    %c0_i32_0 = arith.constant 0 : i32
    %c0_i32_1 = arith.constant 0 : i32
    return %c0_i32, %c0_i32_0 : i32, i32
  }
  func.func @transform_4(%arg0: i32) -> (i32, i32) {
    %c0_i32 = arith.constant 0 : i32
    %c0_i32_0 = arith.constant 0 : i32
    %c0_i32_1 = arith.constant 0 : i32
    return %c0_i32, %c0_i32_0 : i32, i32
  }
  func.func @transform_5(%arg0: i32) -> (i32, i32) {
    %c0_i32 = arith.constant 0 : i32
    %c0_i32_0 = arith.constant 0 : i32
    return %arg0, %c0_i32 : i32, i32
  }
}

module attributes {stable_mosaic.version = 11 : i64} {
  func.func @_attn_kernel(%arg0: i32, %arg1: i32, %arg2: memref<1x4x5x8xf32, #tpu.memory_space<vmem>>, %arg3: memref<1x4x5x8xf32, #tpu.memory_space<vmem>>, %arg4: memref<1x4x5x8xf32, #tpu.memory_space<vmem>>, %arg5: memref<1x5x5x16xf32, #tpu.memory_space<vmem>>, %arg6: memref<1x1x1x5xf32, #tpu.memory_space<vmem>>, %arg7: memref<1x4x5x8xf32, #tpu.memory_space<vmem>>) attributes {dimension_semantics = [#tpu.dimension_semantics<parallel>, #tpu.dimension_semantics<parallel>], iteration_bounds = array<i64: 2, 1>, scalar_prefetch = 0 : i64, scratch_operands = 0 : i64, tpu.core_type = #tpu.core_type<tc>, window_params = [{transform_indices = @transform_0, window_bounds = array<i64: 1, 4, 5, 8>}, {transform_indices = @transform_1, window_bounds = array<i64: 1, 4, 5, 8>}, {transform_indices = @transform_2, window_bounds = array<i64: 1, 4, 5, 8>}, {transform_indices = @transform_3, window_bounds = array<i64: 1, 5, 5, 16>}, {transform_indices = @transform_4, window_bounds = array<i64: 1, 1, 1, 5>}, {transform_indices = @transform_5, window_bounds = array<i64: 1, 4, 5, 8>}]} {
    %c0 = arith.constant 0 : index
    %c0_0 = arith.constant 0 : index
    %c0_1 = arith.constant 0 : index
    %c0_2 = arith.constant 0 : index
    %0 = vector.load %arg2[%c0, %c0_0, %c0_1, %c0_2] : memref<1x4x5x8xf32, #tpu.memory_space<vmem>>, vector<1x4x5x8xf32>
    %1 = vector.shape_cast %0 : vector<1x4x5x8xf32> to vector<4x5x8xf32>
    %cst = arith.constant 0.353553385 : f32
    %2 = vector.broadcast %cst : f32 to vector<4x5x8xf32>
    %3 = arith.mulf %1, %2 : vector<4x5x8xf32>
    %c0_3 = arith.constant 0 : index
    %c0_4 = arith.constant 0 : index
    %c0_5 = arith.constant 0 : index
    %c0_6 = arith.constant 0 : index
    %4 = vector.load %arg3[%c0_3, %c0_4, %c0_5, %c0_6] : memref<1x4x5x8xf32, #tpu.memory_space<vmem>>, vector<1x4x5x8xf32>
    %5 = vector.shape_cast %4 : vector<1x4x5x8xf32> to vector<4x5x8xf32>
    %c0_7 = arith.constant 0 : index
    %c0_8 = arith.constant 0 : index
    %c0_9 = arith.constant 0 : index
    %c0_10 = arith.constant 0 : index
    %6 = vector.load %arg4[%c0_7, %c0_8, %c0_9, %c0_10] : memref<1x4x5x8xf32, #tpu.memory_space<vmem>>, vector<1x4x5x8xf32>
    %7 = vector.shape_cast %6 : vector<1x4x5x8xf32> to vector<4x5x8xf32>
    %c0_11 = arith.constant 0 : index
    %c0_12 = arith.constant 0 : index
    %c0_13 = arith.constant 0 : index
    %c0_14 = arith.constant 0 : index
    %8 = vector.load %arg5[%c0_11, %c0_12, %c0_13, %c0_14] : memref<1x5x5x16xf32, #tpu.memory_space<vmem>>, vector<1x5x5x16xf32>
    %9 = vector.shape_cast %8 : vector<1x5x5x16xf32> to vector<5x5x16xf32>
    %10 = vector.extract_strided_slice %9 {offsets = [0, 0, 0], sizes = [5, 5, 8], strides = [1, 1, 1]} : vector<5x5x16xf32> to vector<5x5x8xf32>
    %11 = vector.extract_strided_slice %9 {offsets = [0, 0, 8], sizes = [5, 5, 8], strides = [1, 1, 1]} : vector<5x5x16xf32> to vector<5x5x8xf32>
    %c0_15 = arith.constant 0 : index
    %c0_16 = arith.constant 0 : index
    %c0_17 = arith.constant 0 : index
    %c0_18 = arith.constant 0 : index
    %12 = vector.load %arg6[%c0_15, %c0_16, %c0_17, %c0_18] : memref<1x1x1x5xf32, #tpu.memory_space<vmem>>, vector<1x1x1x5xf32>
    %13 = vector.shape_cast %12 : vector<1x1x1x5xf32> to vector<1x5xf32>
    "tpu.trace_start"() <{level = 10 : i32, message = "hqd,hkd->hqk"}> : () -> ()
    %cst_19 = arith.constant dense<0.000000e+00> : vector<4x5x5xf32>
    %14 = tpu.matmul %3, %5, %cst_19 {dimension_numbers = #tpu.dot_dimension_numbers<[2], [2], [1], [1], [0, 0, 0, 1, 1, 1], [0], [0]>} : vector<4x5x8xf32>, vector<4x5x8xf32>, vector<4x5x5xf32> -> vector<4x5x5xf32>
    "tpu.trace_stop"() : () -> ()
    "tpu.trace_start"() <{level = 10 : i32, message = "hqd,qkd->hqk"}> : () -> ()
    %cst_20 = arith.constant dense<0.000000e+00> : vector<5x5x4xf32>
    %15 = tpu.matmul %10, %3, %cst_20 {dimension_numbers = #tpu.dot_dimension_numbers<[2], [2], [1], [0], [0, 0, 0, 1, 1, 0], [0], [1]>} : vector<5x5x8xf32>, vector<4x5x8xf32>, vector<5x5x4xf32> -> vector<5x5x4xf32>
    %16 = tpu.transpose %15, [2, 0, 1] : vector<5x5x4xf32> -> vector<4x5x5xf32>
    "tpu.trace_stop"() : () -> ()
    %17 = arith.addf %14, %16 : vector<4x5x5xf32>
    %18 = vector.shape_cast %13 : vector<1x5xf32> to vector<1x1x5xf32>
    %19 = vector.broadcast %18 : vector<1x1x5xf32> to vector<4x5x5xf32>
    %20 = arith.addf %17, %19 : vector<4x5x5xf32>
    %cst_21 = arith.constant dense<0xFF800000> : vector<4x5xf32>
    %21 = vector.multi_reduction <maximumf>, %20, %cst_21 [2] : vector<4x5x5xf32> to vector<4x5xf32>
    %22 = vector.shape_cast %21 : vector<4x5xf32> to vector<4x5x1xf32>
    %23 = vector.broadcast %22 : vector<4x5x1xf32> to vector<4x5x5xf32>
    %24 = arith.subf %20, %23 : vector<4x5x5xf32>
    %25 = math.exp %24 : vector<4x5x5xf32>
    %cst_22 = arith.constant dense<0.000000e+00> : vector<4x5xf32>
    %26 = vector.multi_reduction <add>, %25, %cst_22 [2] : vector<4x5x5xf32> to vector<4x5xf32>
    %27 = vector.shape_cast %26 : vector<4x5xf32> to vector<4x5x1xf32>
    %28 = tpu.reciprocal %27 {approx = true} : vector<4x5x1xf32> -> vector<4x5x1xf32>
    %29 = vector.broadcast %28 : vector<4x5x1xf32> to vector<4x5x5xf32>
    %30 = arith.mulf %25, %29 : vector<4x5x5xf32>
    "tpu.trace_start"() <{level = 10 : i32, message = "hqk,hkd->hqd"}> : () -> ()
    %cst_23 = arith.constant dense<0.000000e+00> : vector<4x5x8xf32>
    %31 = tpu.matmul %30, %7, %cst_23 {dimension_numbers = #tpu.dot_dimension_numbers<[2], [1], [1], [2], [0, 0, 0, 1, 1, 2], [0], [0]>} : vector<4x5x5xf32>, vector<4x5x8xf32>, vector<4x5x8xf32> -> vector<4x5x8xf32>
    "tpu.trace_stop"() : () -> ()
    "tpu.trace_start"() <{level = 10 : i32, message = "hqk,qkd->hqd"}> : () -> ()
    %cst_24 = arith.constant dense<0.000000e+00> : vector<5x8x4xf32>
    %32 = tpu.matmul %11, %30, %cst_24 {dimension_numbers = #tpu.dot_dimension_numbers<[1], [2], [2], [0], [0, 0, 0, 2, 1, 0], [0], [1]>} : vector<5x5x8xf32>, vector<4x5x5xf32>, vector<5x8x4xf32> -> vector<5x8x4xf32>
    %33 = tpu.transpose %32, [2, 0, 1] : vector<5x8x4xf32> -> vector<4x5x8xf32>
    "tpu.trace_stop"() : () -> ()
    %34 = arith.addf %31, %33 : vector<4x5x8xf32>
    %c0_25 = arith.constant 0 : index
    %c0_26 = arith.constant 0 : index
    %c0_27 = arith.constant 0 : index
    %c0_28 = arith.constant 0 : index
    %35 = vector.load %arg7[%c0_25, %c0_26, %c0_27, %c0_28] : memref<1x4x5x8xf32, #tpu.memory_space<vmem>>, vector<1x4x5x8xf32>
    %36 = vector.shape_cast %35 : vector<1x4x5x8xf32> to vector<4x5x8xf32>
    %37 = vector.shape_cast %34 : vector<4x5x8xf32> to vector<1x4x5x8xf32>
    tpu.vector_store %arg7[%c0_25, %c0_26, %c0_27, %c0_28], %37 {strides = array<i32>} : memref<1x4x5x8xf32, #tpu.memory_space<vmem>>, vector<1x4x5x8xf32>,
    return
  }
  func.func @transform_0(%arg0: i32, %arg1: i32) -> (i32, i32, i32, i32) {
    %c0_i32 = arith.constant 0 : i32
    %c0_i32_0 = arith.constant 0 : i32
    %c0_i32_1 = arith.constant 0 : i32
    return %arg0, %c0_i32, %arg1, %c0_i32_0 : i32, i32, i32, i32
  }
  func.func @transform_1(%arg0: i32, %arg1: i32) -> (i32, i32, i32, i32) {
    %c0_i32 = arith.constant 0 : i32
    %c0_i32_0 = arith.constant 0 : i32
    %c0_i32_1 = arith.constant 0 : i32
    %c0_i32_2 = arith.constant 0 : i32
    return %arg0, %c0_i32, %c0_i32_0, %c0_i32_1 : i32, i32, i32, i32
  }
  func.func @transform_2(%arg0: i32, %arg1: i32) -> (i32, i32, i32, i32) {
    %c0_i32 = arith.constant 0 : i32
    %c0_i32_0 = arith.constant 0 : i32
    %c0_i32_1 = arith.constant 0 : i32
    %c0_i32_2 = arith.constant 0 : i32
    return %arg0, %c0_i32, %c0_i32_0, %c0_i32_1 : i32, i32, i32, i32
  }
  func.func @transform_3(%arg0: i32, %arg1: i32) -> (i32, i32, i32, i32) {
    %c0_i32 = arith.constant 0 : i32
    %c0_i32_0 = arith.constant 0 : i32
    %c0_i32_1 = arith.constant 0 : i32
    return %arg0, %arg1, %c0_i32, %c0_i32_0 : i32, i32, i32, i32
  }
  func.func @transform_4(%arg0: i32, %arg1: i32) -> (i32, i32, i32, i32) {
    %c0_i32 = arith.constant 0 : i32
    %c0_i32_0 = arith.constant 0 : i32
    %c0_i32_1 = arith.constant 0 : i32
    %c0_i32_2 = arith.constant 0 : i32
    return %arg0, %c0_i32, %c0_i32_0, %c0_i32_1 : i32, i32, i32, i32
  }
  func.func @transform_5(%arg0: i32, %arg1: i32) -> (i32, i32, i32, i32) {
    %c0_i32 = arith.constant 0 : i32
    %c0_i32_0 = arith.constant 0 : i32
    %c0_i32_1 = arith.constant 0 : i32
    return %arg0, %c0_i32, %arg1, %c0_i32_0 : i32, i32, i32, i32
  }
}

module attributes {stable_mosaic.version = 11 : i64} {
  func.func @_path_update_kernel(%arg0: i32, %arg1: i32, %arg2: memref<1x5x32xf32, #tpu.memory_space<vmem>>, %arg3: memref<1x5x32xf32, #tpu.memory_space<vmem>>, %arg4: memref<1x5x5x16xf32, #tpu.memory_space<vmem>>, %arg5: memref<32x48xf32, #tpu.memory_space<vmem>>, %arg6: memref<32x48xf32, #tpu.memory_space<vmem>>, %arg7: memref<16x48xf32, #tpu.memory_space<vmem>>, %arg8: memref<1x48xf32, #tpu.memory_space<vmem>>, %arg9: memref<1x48xf32, #tpu.memory_space<vmem>>, %arg10: memref<1x5x5x16xf32, #tpu.memory_space<vmem>>) attributes {dimension_semantics = [#tpu.dimension_semantics<parallel>, #tpu.dimension_semantics<parallel>], iteration_bounds = array<i64: 2, 1>, scalar_prefetch = 0 : i64, scratch_operands = 0 : i64, tpu.core_type = #tpu.core_type<tc>, window_params = [{transform_indices = @transform_0, window_bounds = array<i64: 1, 5, 32>}, {transform_indices = @transform_1, window_bounds = array<i64: 1, 5, 32>}, {transform_indices = @transform_2, window_bounds = array<i64: 1, 5, 5, 16>}, {pipeline_mode = #tpu.pipeline_mode<synchronous>, transform_indices = @transform_3, window_bounds = array<i64: 32, 48>}, {pipeline_mode = #tpu.pipeline_mode<synchronous>, transform_indices = @transform_4, window_bounds = array<i64: 32, 48>}, {pipeline_mode = #tpu.pipeline_mode<synchronous>, transform_indices = @transform_5, window_bounds = array<i64: 16, 48>}, {pipeline_mode = #tpu.pipeline_mode<synchronous>, transform_indices = @transform_6, window_bounds = array<i64: 1, 48>}, {pipeline_mode = #tpu.pipeline_mode<synchronous>, transform_indices = @transform_7, window_bounds = array<i64: 1, 48>}, {transform_indices = @transform_8, window_bounds = array<i64: 1, 5, 5, 16>}]} {
    %c0 = arith.constant 0 : index
    %c0_0 = arith.constant 0 : index
    %c0_1 = arith.constant 0 : index
    %0 = vector.load %arg2[%c0, %c0_0, %c0_1] : memref<1x5x32xf32, #tpu.memory_space<vmem>>, vector<1x5x32xf32>
    %1 = vector.shape_cast %0 : vector<1x5x32xf32> to vector<5x32xf32>
    %c0_2 = arith.constant 0 : index
    %c0_3 = arith.constant 0 : index
    %c0_4 = arith.constant 0 : index
    %2 = vector.load %arg3[%c0_2, %c0_3, %c0_4] : memref<1x5x32xf32, #tpu.memory_space<vmem>>, vector<1x5x32xf32>
    %3 = vector.shape_cast %2 : vector<1x5x32xf32> to vector<5x32xf32>
    %c0_5 = arith.constant 0 : index
    %c0_6 = arith.constant 0 : index
    %4 = vector.load %arg5[%c0_5, %c0_6] : memref<32x48xf32, #tpu.memory_space<vmem>>, vector<32x48xf32>
    %cst = arith.constant dense<0.000000e+00> : vector<5x48xf32>
    %5 = tpu.matmul %1, %4, %cst {dimension_numbers = #tpu.dot_dimension_numbers<[1], [0], [0], [1], [0, 0, 1, 1], [], []>} : vector<5x32xf32>, vector<32x48xf32>, vector<5x48xf32> -> vector<5x48xf32>
    %c0_7 = arith.constant 0 : index
    %c0_8 = arith.constant 0 : index
    %6 = vector.load %arg6[%c0_7, %c0_8] : memref<32x48xf32, #tpu.memory_space<vmem>>, vector<32x48xf32>
    %cst_9 = arith.constant dense<0.000000e+00> : vector<5x48xf32>
    %7 = tpu.matmul %3, %6, %cst_9 {dimension_numbers = #tpu.dot_dimension_numbers<[1], [0], [0], [1], [0, 0, 1, 1], [], []>} : vector<5x32xf32>, vector<32x48xf32>, vector<5x48xf32> -> vector<5x48xf32>
    %8 = vector.shape_cast %5 : vector<5x48xf32> to vector<5x1x48xf32>
    %9 = vector.shape_cast %7 : vector<5x48xf32> to vector<1x5x48xf32>
    %10 = vector.broadcast %8 : vector<5x1x48xf32> to vector<5x5x48xf32>
    %11 = vector.broadcast %9 : vector<1x5x48xf32> to vector<5x5x48xf32>
    %12 = arith.addf %10, %11 : vector<5x5x48xf32>
    %c0_10 = arith.constant 0 : index
    %c0_11 = arith.constant 0 : index
    %13 = vector.load %arg8[%c0_10, %c0_11] : memref<1x48xf32, #tpu.memory_space<vmem>>, vector<1x48xf32>
    %14 = vector.shape_cast %13 : vector<1x48xf32> to vector<1x1x48xf32>
    %15 = vector.broadcast %14 : vector<1x1x48xf32> to vector<5x5x48xf32>
    %16 = arith.addf %12, %15 : vector<5x5x48xf32>
    %c0_12 = arith.constant 0 : index
    %c0_13 = arith.constant 0 : index
    %c0_14 = arith.constant 0 : index
    %c0_15 = arith.constant 0 : index
    %17 = vector.load %arg4[%c0_12, %c0_13, %c0_14, %c0_15] : memref<1x5x5x16xf32, #tpu.memory_space<vmem>>, vector<1x5x5x16xf32>
    %18 = vector.shape_cast %17 : vector<1x5x5x16xf32> to vector<5x5x16xf32>
    %c0_16 = arith.constant 0 : index
    %c0_17 = arith.constant 0 : index
    %19 = vector.load %arg7[%c0_16, %c0_17] : memref<16x48xf32, #tpu.memory_space<vmem>>, vector<16x48xf32>
    %20 = vector.shape_cast %19 : vector<16x48xf32> to vector<1x16x48xf32>
    %21 = vector.broadcast %20 : vector<1x16x48xf32> to vector<5x16x48xf32>
    %cst_18 = arith.constant dense<0.000000e+00> : vector<5x5x48xf32>
    %22 = tpu.matmul %18, %21, %cst_18 {dimension_numbers = #tpu.dot_dimension_numbers<[2], [1], [1], [2], [0, 0, 0, 1, 1, 2], [0], [0]>} : vector<5x5x16xf32>, vector<5x16x48xf32>, vector<5x5x48xf32> -> vector<5x5x48xf32>
    %c0_19 = arith.constant 0 : index
    %c0_20 = arith.constant 0 : index
    %23 = vector.load %arg9[%c0_19, %c0_20] : memref<1x48xf32, #tpu.memory_space<vmem>>, vector<1x48xf32>
    %24 = vector.shape_cast %23 : vector<1x48xf32> to vector<1x1x48xf32>
    %25 = vector.broadcast %24 : vector<1x1x48xf32> to vector<5x5x48xf32>
    %26 = arith.addf %22, %25 : vector<5x5x48xf32>
    %27 = vector.extract_strided_slice %16 {offsets = [0, 0, 0], sizes = [5, 5, 16], strides = [1, 1, 1]} : vector<5x5x48xf32> to vector<5x5x16xf32>
    %28 = vector.extract_strided_slice %26 {offsets = [0, 0, 0], sizes = [5, 5, 16], strides = [1, 1, 1]} : vector<5x5x48xf32> to vector<5x5x16xf32>
    %29 = arith.addf %27, %28 : vector<5x5x16xf32>
    %30 = arith.negf %29 : vector<5x5x16xf32>
    %31 = math.exp %30 : vector<5x5x16xf32>
    %cst_21 = arith.constant 1.000000e+00 : f32
    %32 = vector.broadcast %cst_21 : f32 to vector<5x5x16xf32>
    %33 = arith.addf %32, %31 : vector<5x5x16xf32>
    %34 = arith.divf %32, %33 : vector<5x5x16xf32>
    %35 = vector.extract_strided_slice %16 {offsets = [0, 0, 16], sizes = [5, 5, 16], strides = [1, 1, 1]} : vector<5x5x48xf32> to vector<5x5x16xf32>
    %36 = vector.extract_strided_slice %26 {offsets = [0, 0, 16], sizes = [5, 5, 16], strides = [1, 1, 1]} : vector<5x5x48xf32> to vector<5x5x16xf32>
    %37 = arith.addf %35, %36 : vector<5x5x16xf32>
    %38 = arith.negf %37 : vector<5x5x16xf32>
    %39 = math.exp %38 : vector<5x5x16xf32>
    %cst_22 = arith.constant 1.000000e+00 : f32
    %40 = vector.broadcast %cst_22 : f32 to vector<5x5x16xf32>
    %41 = arith.addf %40, %39 : vector<5x5x16xf32>
    %42 = arith.divf %40, %41 : vector<5x5x16xf32>
    %43 = vector.extract_strided_slice %16 {offsets = [0, 0, 32], sizes = [5, 5, 16], strides = [1, 1, 1]} : vector<5x5x48xf32> to vector<5x5x16xf32>
    %44 = vector.extract_strided_slice %26 {offsets = [0, 0, 32], sizes = [5, 5, 16], strides = [1, 1, 1]} : vector<5x5x48xf32> to vector<5x5x16xf32>
    %45 = arith.mulf %34, %44 : vector<5x5x16xf32>
    %46 = arith.addf %43, %45 : vector<5x5x16xf32>
    %47 = math.tanh %46 : vector<5x5x16xf32>
    %48 = arith.mulf %42, %18 : vector<5x5x16xf32>
    %cst_23 = arith.constant 1.000000e+00 : f32
    %49 = vector.broadcast %cst_23 : f32 to vector<5x5x16xf32>
    %50 = arith.subf %49, %42 : vector<5x5x16xf32>
    %51 = arith.mulf %50, %47 : vector<5x5x16xf32>
    %52 = arith.addf %48, %51 : vector<5x5x16xf32>
    %c0_24 = arith.constant 0 : index
    %c0_25 = arith.constant 0 : index
    %c0_26 = arith.constant 0 : index
    %c0_27 = arith.constant 0 : index
    %53 = vector.load %arg10[%c0_24, %c0_25, %c0_26, %c0_27] : memref<1x5x5x16xf32, #tpu.memory_space<vmem>>, vector<1x5x5x16xf32>
    %54 = vector.shape_cast %53 : vector<1x5x5x16xf32> to vector<5x5x16xf32>
    %55 = vector.shape_cast %52 : vector<5x5x16xf32> to vector<1x5x5x16xf32>
    tpu.vector_store %arg10[%c0_24, %c0_25, %c0_26, %c0_27], %55 {strides = array<i32>} : memref<1x5x5x16xf32, #tpu.memory_space<vmem>>, vector<1x5x5x16xf32>,
    return
  }
  func.func @transform_0(%arg0: i32, %arg1: i32) -> (i32, i32, i32) {
    %c0_i32 = arith.constant 0 : i32
    %c0_i32_0 = arith.constant 0 : i32
    return %arg0, %arg1, %c0_i32 : i32, i32, i32
  }
  func.func @transform_1(%arg0: i32, %arg1: i32) -> (i32, i32, i32) {
    %c0_i32 = arith.constant 0 : i32
    %c0_i32_0 = arith.constant 0 : i32
    %c0_i32_1 = arith.constant 0 : i32
    return %arg0, %c0_i32, %c0_i32_0 : i32, i32, i32
  }
  func.func @transform_2(%arg0: i32, %arg1: i32) -> (i32, i32, i32, i32) {
    %c0_i32 = arith.constant 0 : i32
    %c0_i32_0 = arith.constant 0 : i32
    %c0_i32_1 = arith.constant 0 : i32
    return %arg0, %arg1, %c0_i32, %c0_i32_0 : i32, i32, i32, i32
  }
  func.func @transform_3(%arg0: i32, %arg1: i32) -> (i32, i32) {
    %c0_i32 = arith.constant 0 : i32
    %c0_i32_0 = arith.constant 0 : i32
    %c0_i32_1 = arith.constant 0 : i32
    return %c0_i32, %c0_i32_0 : i32, i32
  }
  func.func @transform_4(%arg0: i32, %arg1: i32) -> (i32, i32) {
    %c0_i32 = arith.constant 0 : i32
    %c0_i32_0 = arith.constant 0 : i32
    %c0_i32_1 = arith.constant 0 : i32
    return %c0_i32, %c0_i32_0 : i32, i32
  }
  func.func @transform_5(%arg0: i32, %arg1: i32) -> (i32, i32) {
    %c0_i32 = arith.constant 0 : i32
    %c0_i32_0 = arith.constant 0 : i32
    %c0_i32_1 = arith.constant 0 : i32
    return %c0_i32, %c0_i32_0 : i32, i32
  }
  func.func @transform_6(%arg0: i32, %arg1: i32) -> (i32, i32) {
    %c0_i32 = arith.constant 0 : i32
    %c0_i32_0 = arith.constant 0 : i32
    %c0_i32_1 = arith.constant 0 : i32
    return %c0_i32, %c0_i32_0 : i32, i32
  }
  func.func @transform_7(%arg0: i32, %arg1: i32) -> (i32, i32) {
    %c0_i32 = arith.constant 0 : i32
    %c0_i32_0 = arith.constant 0 : i32
    %c0_i32_1 = arith.constant 0 : i32
    return %c0_i32, %c0_i32_0 : i32, i32
  }
  func.func @transform_8(%arg0: i32, %arg1: i32) -> (i32, i32, i32, i32) {
    %c0_i32 = arith.constant 0 : i32
    %c0_i32_0 = arith.constant 0 : i32
    %c0_i32_1 = arith.constant 0 : i32
    return %arg0, %arg1, %c0_i32, %c0_i32_0 : i32, i32, i32, i32
  }
}

module attributes {stable_mosaic.version = 11 : i64} {
  func.func @_classifier_kernel(%arg0: i32, %arg1: memref<56x32xf32, #tpu.memory_space<vmem>>, %arg2: memref<32x32xf32, #tpu.memory_space<vmem>>, %arg3: memref<1x32xf32, #tpu.memory_space<vmem>>, %arg4: memref<32x6xf32, #tpu.memory_space<vmem>>, %arg5: memref<1x6xf32, #tpu.memory_space<vmem>>, %arg6: memref<56x6xf32, #tpu.memory_space<vmem>>) attributes {dimension_semantics = [#tpu.dimension_semantics<parallel>], iteration_bounds = array<i64: 1>, scalar_prefetch = 0 : i64, scratch_operands = 0 : i64, tpu.core_type = #tpu.core_type<tc>, window_params = [{transform_indices = @transform_0, window_bounds = array<i64: 56, 32>}, {pipeline_mode = #tpu.pipeline_mode<synchronous>, transform_indices = @transform_1, window_bounds = array<i64: 32, 32>}, {pipeline_mode = #tpu.pipeline_mode<synchronous>, transform_indices = @transform_2, window_bounds = array<i64: 1, 32>}, {pipeline_mode = #tpu.pipeline_mode<synchronous>, transform_indices = @transform_3, window_bounds = array<i64: 32, 6>}, {pipeline_mode = #tpu.pipeline_mode<synchronous>, transform_indices = @transform_4, window_bounds = array<i64: 1, 6>}, {transform_indices = @transform_5, window_bounds = array<i64: 56, 6>}]} {
    %c0 = arith.constant 0 : index
    %c0_0 = arith.constant 0 : index
    %0 = vector.load %arg1[%c0, %c0_0] : memref<56x32xf32, #tpu.memory_space<vmem>>, vector<56x32xf32>
    %c0_1 = arith.constant 0 : index
    %c0_2 = arith.constant 0 : index
    %1 = vector.load %arg2[%c0_1, %c0_2] : memref<32x32xf32, #tpu.memory_space<vmem>>, vector<32x32xf32>
    %cst = arith.constant dense<0.000000e+00> : vector<56x32xf32>
    %2 = tpu.matmul %0, %1, %cst {dimension_numbers = #tpu.dot_dimension_numbers<[1], [0], [0], [1], [0, 0, 1, 1], [], []>} : vector<56x32xf32>, vector<32x32xf32>, vector<56x32xf32> -> vector<56x32xf32>
    %c0_3 = arith.constant 0 : index
    %c0_4 = arith.constant 0 : index
    %3 = vector.load %arg3[%c0_3, %c0_4] : memref<1x32xf32, #tpu.memory_space<vmem>>, vector<1x32xf32>
    %4 = vector.broadcast %3 : vector<1x32xf32> to vector<56x32xf32>
    %5 = arith.addf %2, %4 : vector<56x32xf32>
    %6 = math.tanh %5 : vector<56x32xf32>
    %c0_5 = arith.constant 0 : index
    %c0_6 = arith.constant 0 : index
    %7 = vector.load %arg4[%c0_5, %c0_6] : memref<32x6xf32, #tpu.memory_space<vmem>>, vector<32x6xf32>
    %cst_7 = arith.constant dense<0.000000e+00> : vector<56x6xf32>
    %8 = tpu.matmul %6, %7, %cst_7 {dimension_numbers = #tpu.dot_dimension_numbers<[1], [0], [0], [1], [0, 0, 1, 1], [], []>} : vector<56x32xf32>, vector<32x6xf32>, vector<56x6xf32> -> vector<56x6xf32>
    %c0_8 = arith.constant 0 : index
    %c0_9 = arith.constant 0 : index
    %9 = vector.load %arg5[%c0_8, %c0_9] : memref<1x6xf32, #tpu.memory_space<vmem>>, vector<1x6xf32>
    %10 = vector.broadcast %9 : vector<1x6xf32> to vector<56x6xf32>
    %11 = arith.addf %8, %10 : vector<56x6xf32>
    %c0_10 = arith.constant 0 : index
    %c0_11 = arith.constant 0 : index
    %12 = vector.load %arg6[%c0_10, %c0_11] : memref<56x6xf32, #tpu.memory_space<vmem>>, vector<56x6xf32>
    tpu.vector_store %arg6[%c0_10, %c0_11], %11 {strides = array<i32>} : memref<56x6xf32, #tpu.memory_space<vmem>>, vector<56x6xf32>,
    return
  }
  func.func @transform_0(%arg0: i32) -> (i32, i32) {
    %c0_i32 = arith.constant 0 : i32
    %c0_i32_0 = arith.constant 0 : i32
    return %arg0, %c0_i32 : i32, i32
  }
  func.func @transform_1(%arg0: i32) -> (i32, i32) {
    %c0_i32 = arith.constant 0 : i32
    %c0_i32_0 = arith.constant 0 : i32
    %c0_i32_1 = arith.constant 0 : i32
    return %c0_i32, %c0_i32_0 : i32, i32
  }
  func.func @transform_2(%arg0: i32) -> (i32, i32) {
    %c0_i32 = arith.constant 0 : i32
    %c0_i32_0 = arith.constant 0 : i32
    %c0_i32_1 = arith.constant 0 : i32
    return %c0_i32, %c0_i32_0 : i32, i32
  }
  func.func @transform_3(%arg0: i32) -> (i32, i32) {
    %c0_i32 = arith.constant 0 : i32
    %c0_i32_0 = arith.constant 0 : i32
    %c0_i32_1 = arith.constant 0 : i32
    return %c0_i32, %c0_i32_0 : i32, i32
  }
  func.func @transform_4(%arg0: i32) -> (i32, i32) {
    %c0_i32 = arith.constant 0 : i32
    %c0_i32_0 = arith.constant 0 : i32
    %c0_i32_1 = arith.constant 0 : i32
    return %c0_i32, %c0_i32_0 : i32, i32
  }
  func.func @transform_5(%arg0: i32) -> (i32, i32) {
    %c0_i32 = arith.constant 0 : i32
    %c0_i32_0 = arith.constant 0 : i32
    return %arg0, %c0_i32 : i32, i32
  }
}

</mosaic_0001>

<bundles_post_ra>
// kernel: custom-call.8
= control target key start
LH: loop header
LB: loop body
LE: loop exit
PB: predicated region body
PF: predicated region fallthrough
CT: control target
= control target key end

     0   :  { %s6_s0 = inlined_call_operand.vmem [shape: f32[8,16], index: 0, kind: output, shape index: {}]  }

// kernel: forward.18
= control target key start
LH: loop header
LB: loop body
LE: loop exit
PB: predicated region body
PF: predicated region fallthrough
CT: control target
= control target key end

     0   :  { %8 = vsyncpa [#allocation3], 0  ;;  %s458_s0 = inlined_call_operand.hbm [shape: f32[48,32], index: 0, kind: input, shape index: {}]   ;;  %s459_s1 = inlined_call_operand.hbm [shape: f32[32,96], index: 1, kind: input, shape index: {}]   ;;  %s460_s2 = inlined_call_operand.hbm [shape: f32[1,96], index: 2, kind: input, shape index: {}]   ;;  %s461_s3 = inlined_call_operand.hbm [shape: f32[48,96], index: 3, kind: output, shape index: {}]  }
   0x1   :  { %9 = vsyncpa [#allocation6], 0 }
   0x2   :  { %10 = vsyncpa [#allocation4], 0  ;;  %s356_s12 = smov [#allocation5]   ;;  %s357_s14 = smov [#allocation2]  }
   0x3   :  { %s28_s13 = sshll.u32 %s356_s12, 4  ;;  %s16_s15 = sshll.u32 %s357_s14, 4  ;;  %s29_s13 = int_to_ptr.vmem [resolvable:$true] %s28_s13  ;;  %s382_s15 = int_to_ptr.vmem [resolvable:$true] %s16_s15 }
   0x4   :  { %s262_s18 = scalar_lea.hbm %s459_s1, 512 }
   0x5   :  { %p263_p0 = scmp.ne.s32.totalorder %s459_s1, %s262_s18  ;;  %p266_p1 = scmp.lt.u32.totalorder %s262_s18, %s459_s1 }
   0x7   :  { %p268_p2 = pnand %p266_p1, %p263_p0 }
   0x9   :  { %271 = shalt.err (!%p268_p2)
}
   0xa   :  { %s272_s23 = scalar_lea.vmem %s29_s13, 512  ;;  %p277_p4 = scmp.lt.s32.totalorder %s29_s13, %s29_s13 }
   0xb   :  { %p273_p3 = scmp.ne.s32.totalorder %s29_s13, %s272_s23  ;;  %p278_p5 = scmp.lt.s32.totalorder %s272_s23, %s272_s23 }
   0xd   :  { %p279_p6 = por %p278_p5, %p277_p4 }
   0xf   :  { %p280_p7 = pnand %p279_p6, %p273_p3 }
  0x11   :  { %283 = shalt.err (!%p280_p7)
}
  0x12   :  { %s358_s24 = smov 128   ;;  %s359_s25 = smov 8  }
  0x13   :  { %34 = dma.hbm_to_vmem [thread:$0]  %s459_s1, 512, %s29_s13, [#allocation6], %s358_s24, %s358_s24, %s359_s25  }
  0x14   :  { %s284_s30 = scalar_lea.hbm %s458_s0, 768 }
  0x15   :  { %p285_p8 = scmp.ne.s32.totalorder %s458_s0, %s284_s30  ;;  %p288_p9 = scmp.lt.u32.totalorder %s284_s30, %s458_s0 }
  0x17   :  { %p290_p10 = pnand %p288_p9, %p285_p8 }
  0x19   :  { %293 = shalt.err (!%p290_p10)
}
  0x1a   :  { %s294_s8 = scalar_lea.vmem %s382_s15, 768  ;;  %p299_p12 = scmp.lt.s32.totalorder %s382_s15, %s382_s15 }
  0x1b   :  { %p295_p11 = scmp.ne.s32.totalorder %s382_s15, %s294_s8  ;;  %p300_p13 = scmp.lt.s32.totalorder %s294_s8, %s294_s8 }
  0x1d   :  { %p301_p0 = por %p300_p13, %p299_p12 }
  0x1f   :  { %p302_p1 = pnand %p301_p0, %p295_p11 }
  0x21   :  { %305 = shalt.err (!%p302_p1)
}
  0x22   :  { %22 = dma.hbm_to_vmem [thread:$0]  %s458_s0, 768, %s382_s15, [#allocation3], %s358_s24, %s358_s24, %s359_s25  }
  0x23   :  { %s360_s10 = smov [#allocation7]   ;;  %s306_s14 = scalar_lea.hbm %s460_s2, 16 }
  0x24   :  { %s41_s11 = sshll.u32 %s360_s10, 4  ;;  %p307_p2 = scmp.ne.s32.totalorder %s460_s2, %s306_s14  ;;  %s42_s11 = int_to_ptr.vmem [resolvable:$true] %s41_s11 }
  0x25   :  { %p310_p3 = scmp.lt.u32.totalorder %s306_s14, %s460_s2 }
  0x27   :  { %p312_p4 = pnand %p310_p3, %p307_p2 }
  0x29   :  { %315 = shalt.err (!%p312_p4)
}
  0x2a   :  { %s316_s20 = scalar_lea.vmem %s42_s11, 16  ;;  %s320_s0 = scalar_lea.vmem %s42_s11, 32 }
  0x2b   :  { %p317_p5 = scmp.ne.s32.totalorder %s42_s11, %s316_s20  ;;  %p321_p6 = scmp.lt.s32.totalorder %s42_s11, %s42_s11 }
  0x2c   :  { %p322_p7 = scmp.lt.s32.totalorder %s320_s0, %s316_s20 }
  0x2e   :  { %p323_p8 = por %p322_p7, %p321_p6 }
  0x30   :  { %p324_p9 = pnand %p323_p8, %p317_p5 }
  0x32   :  { %327 = shalt.err (!%p324_p9)
}
  0x33   :  { %44 = dma.hbm_to_vmem [thread:$0]  %s460_s2, 16, %s42_s11, [#allocation6]  }
  0x34   :  { %350 = dma.done.wait [#allocation3], 768  }
  0x35   :  { %351 = vsyncadd [#allocation3], 4294966528 }
  0x36   :  { %352 = dma.done.wait [#allocation6], 528  }
  0x37   :  { %353 = vsyncadd [#allocation6], 4294966768  ;;  %vm71_vm0 = vcmask 261120   ;;  %v60_v0 = vld [vmem:[#allocation5] sm:$0xff]  ;;  %v61_v1 = vld [vmem:[#allocation5 + $0x8] sm:$0xff]  ;;  %vm185_vm1 = vcmask 785408  }
  0x38   :  { %v62_v2 = vld [vmem:[#allocation5 + $0x10] sm:$0xff]  ;;  %v244_v3 = vpack.c.bf16 %v61_v1, %v60_v0  ;;  %v63_v4 = vld [vmem:[#allocation5 + $0x18] sm:$0xff]  ;;  %v56_v5 = vld [vmem:[#allocation2 + $0x10] sm:$0xff]  ;;  %s361_s2 = smov [#allocation8]  }
  0x39   :  { %v248_v6 = vpack.c.bf16 %v63_v4, %v62_v2  ;;  %238 = vmatprep.mubr.msk.f32.mxu1 %vm71_vm0, %v56_v5  ;;  %v54_v7 = vld [vmem:[#allocation2] sm:$0xff]  ;;  %v57_v8 = vld [vmem:[#allocation2 + $0x18] sm:$0xff]  ;;  %v55_v9 = vld [vmem:[#allocation2 + $0x8] sm:$0xff]  ;;  %s197_s22 = sshll.u32 %s361_s2, 4  ;;  %s198_s22 = int_to_ptr.vmem [resolvable:$true] %s197_s22 }
  0x3a   :  { %252 = vmatprep.subr.bf16.mxu1 %v244_v3  ;;  %245 = vmatprep.subr.bf16.mxu0 %v244_v3  ;;  %v58_v10 = vld [vmem:[#allocation2 + $0x20] sm:$0xff]  ;;  %v59_v11 = vld [vmem:[#allocation2 + $0x28] sm:$0xff]  ;;  %v210_v12 = vld [vmem:[#allocation7] ss:$0 sm:$0xff]  ;;  %s328_s23 = scalar_lea.vmem %s198_s22, 768  ;;  %p333_p11 = scmp.lt.s32.totalorder %s198_s22, %s198_s22 }
  0x3b   :  { %254 = vmatpush3.bf16.msra.mxu1 %v244_v3  ;;  %247 = vmatpush3.bf16.msra.mxu0 %v244_v3  ;;  %p329_p10 = scmp.ne.s32.totalorder %s198_s22, %s328_s23  ;;  %p334_p12 = scmp.lt.s32.totalorder %s328_s23, %s328_s23 }
  0x3c   :  { %253 = vmatprep.subr.bf16.mxu1 %v248_v6  ;;  %249 = vmatprep.subr.bf16.mxu0 %v248_v6 }
  0x3d   :  { %235 = vmatprep.mubr.msk.f32.mxu0 %vm71_vm0, %v54_v7  ;;  %p335_p13 = por %p334_p12, %p333_p11 }
  0x3f   :  { %255 = vmatpush3.bf16.msra.mxu1 %v248_v6  ;;  %251 = vmatpush3.bf16.msra.mxu0 %v248_v6  ;;  %p336_p0 = pnand %p335_p13, %p329_p10 }
  0x42   :  { %239 = vmatmul.mubr.msk.f32.vlgmr.msra.gmra.mrb[0].mxu1 %vm71_vm0, %v57_v8  ;;  %236 = vmatmul.mubr.msk.f32.vlgmr.msra.gmra.mrb[0].mxu0 %vm71_vm0, %v55_v9 }
  0x43   :  { %241 = vmatprep.mubr.msk.f32.mxu1 %vm71_vm0, %v58_v10 }
  0x46   :  { %242 = vmatmul.mubr.msk.f32.gmra.mrb[2].mxu1 %vm71_vm0, %v59_v11 }
 0x115   :  { %v240_v13 = vpop.f32.mrb[0].mxu1  ;;  %v237_v14 = vpop.f32.mrb[0].mxu0 }
 0x116   :  { %v172_v15 = vadd.f32 %v240_v13, %v210_v12  ;;  %v166_v16 = vpop.f32.mrb[1].mxu1  ;;  %v162_v17 = vadd.f32 %v237_v14, %v210_v12  ;;  %v156_v18 = vpop.f32.mrb[1].mxu0 }
 0x117   :  { %v167_v19 = vadd.f32 %v210_v12, %v166_v16  ;;  %v157_v20 = vadd.f32 %v210_v12, %v156_v18 }
 0x118   :  { %189 = vst.msk [vmem:[#allocation8 + $0x18] sm:$0xff] %vm185_vm1, %v172_v15  ;;  %187 = vst.msk [vmem:[#allocation8 + $0x8] sm:$0xff] %vm185_vm1, %v162_v17 }
 0x119   :  { %188 = vst.msk [vmem:[#allocation8 + $0x10] sm:$0xff] %vm185_vm1, %v167_v19  ;;  %186 = vst.msk [vmem:[#allocation8] sm:$0xff] %vm185_vm1, %v157_v20  ;;  %v243_v21 = vpop.f32.mrb[2].mxu1 }
 0x11a   :  { %v182_v22 = vadd.f32 %v243_v21, %v210_v12  ;;  %v176_v23 = vpop.f32.mrb[3].mxu1 }
 0x11b   :  { %v177_v24 = vadd.f32 %v210_v12, %v176_v23 }
 0x11c   :  { %191 = vst.msk [vmem:[#allocation8 + $0x28] sm:$0xff] %vm185_vm1, %v182_v22 }
 0x11d   :  { %190 = vst.msk [vmem:[#allocation8 + $0x20] sm:$0xff] %vm185_vm1, %v177_v24 }
 0x11e   :  { %339 = shalt.err (!%p336_p0)
}
 0x11f   :  { %s340_s28 = scalar_lea.hbm %s461_s3, 768 }
 0x120   :  { %p341_p1 = scmp.ne.s32.totalorder %s461_s3, %s340_s28  ;;  %p344_p2 = scmp.lt.u32.totalorder %s340_s28, %s461_s3 }
 0x122   :  { %p346_p3 = pnand %p344_p2, %p341_p1 }
 0x124   :  { %349 = shalt.err (!%p346_p3)
}
 0x125   :  { %203 = dma.vmem_to_hbm [thread:$0]  %s198_s22, 768, %s461_s3, [#allocation4], %s358_s24, %s358_s24, %s359_s25  }
 0x126   :  { %354 = dma.done.wait [#allocation4], 768  }
 0x127   :  { %355 = vsyncadd [#allocation4], 4294966528 }
 0x128   :  { %207 = vsyncpa [#allocation3], 1 }
 0x129   :  { %208 = vsyncpa [#allocation6], 1 }
 0x12a   :  { %209 = vsyncpa [#allocation4], 1 }

// kernel: forward.19
= control target key start
LH: loop header
LB: loop body
LE: loop exit
PB: predicated region body
PF: predicated region fallthrough
CT: control target
= control target key end

     0   :  { %8 = vsyncpa [#allocation4], 0  ;;  %s625_s0 = inlined_call_operand.hbm [shape: f32[6,2,8,48], index: 0, kind: input, shape index: {}]   ;;  %s626_s1 = inlined_call_operand.hbm [shape: f32[2,16,48], index: 1, kind: input, shape index: {}]   ;;  %s627_s2 = inlined_call_operand.hbm [shape: f32[2,1,48], index: 2, kind: input, shape index: {}]   ;;  %s628_s3 = inlined_call_operand.hbm [shape: f32[6,2,8,16], index: 3, kind: output, shape index: {}]  }
   0x1   :  { %9 = vsyncpa [#allocation7], 0 }
   0x2   :  { %10 = vsyncpa [#allocation5], 0  ;;  %s504_s12 = smov [#allocation6]   ;;  %s505_s14 = smov [#allocation3]  }
   0x3   :  { %s28_s13 = sshll.u32 %s504_s12, 4  ;;  %s16_s15 = sshll.u32 %s505_s14, 4  ;;  %s29_s13 = int_to_ptr.vmem [resolvable:$true] %s28_s13  ;;  %s540_s15 = int_to_ptr.vmem [resolvable:$true] %s16_s15 }
   0x4   :  { %s402_s18 = scalar_lea.hbm %s626_s1, 512 }
   0x5   :  { %p403_p0 = scmp.ne.s32.totalorder %s626_s1, %s402_s18  ;;  %p406_p1 = scmp.lt.u32.totalorder %s402_s18, %s626_s1 }
   0x7   :  { %p408_p2 = pnand %p406_p1, %p403_p0 }
   0x9   :  { %411 = shalt.err (!%p408_p2)
}
   0xa   :  { %s412_s23 = scalar_lea.vmem %s29_s13, 512  ;;  %p417_p4 = scmp.lt.s32.totalorder %s29_s13, %s29_s13 }
   0xb   :  { %p413_p3 = scmp.ne.s32.totalorder %s29_s13, %s412_s23  ;;  %p418_p5 = scmp.lt.s32.totalorder %s412_s23, %s412_s23 }
   0xd   :  { %p419_p6 = por %p418_p5, %p417_p4 }
   0xf   :  { %p420_p7 = pnand %p419_p6, %p413_p3 }
  0x11   :  { %423 = shalt.err (!%p420_p7)
}
  0x12   :  { %s506_s24 = smov 128   ;;  %s507_s25 = smov 8  }
  0x13   :  { %34 = dma.hbm_to_vmem [thread:$0]  %s626_s1, 512, %s29_s13, [#allocation7], %s506_s24, %s506_s24, %s507_s25  }
  0x14   :  { %s424_s30 = scalar_lea.hbm %s625_s0, 1536 }
  0x15   :  { %p425_p8 = scmp.ne.s32.totalorder %s625_s0, %s424_s30  ;;  %p428_p9 = scmp.lt.u32.totalorder %s424_s30, %s625_s0 }
  0x17   :  { %p430_p10 = pnand %p428_p9, %p425_p8 }
  0x19   :  { %433 = shalt.err (!%p430_p10)
}
  0x1a   :  { %s434_s8 = scalar_lea.vmem %s540_s15, 1536  ;;  %p439_p12 = scmp.lt.s32.totalorder %s540_s15, %s540_s15 }
  0x1b   :  { %p435_p11 = scmp.ne.s32.totalorder %s540_s15, %s434_s8  ;;  %p440_p13 = scmp.lt.s32.totalorder %s434_s8, %s434_s8 }
  0x1d   :  { %p441_p0 = por %p440_p13, %p439_p12 }
  0x1f   :  { %p442_p1 = pnand %p441_p0, %p435_p11 }
  0x21   :  { %445 = shalt.err (!%p442_p1)
}
  0x22   :  { %22 = dma.hbm_to_vmem [thread:$0]  %s625_s0, 1536, %s540_s15, [#allocation4], %s506_s24, %s506_s24, %s507_s25  }
  0x23   :  { %s508_s10 = smov [#allocation8]   ;;  %s446_s14 = scalar_lea.hbm %s627_s2, 32 }
  0x24   :  { %s40_s11 = sshll.u32 %s508_s10, 4  ;;  %p447_p2 = scmp.ne.s32.totalorder %s627_s2, %s446_s14  ;;  %s41_s11 = int_to_ptr.vmem [resolvable:$true] %s40_s11 }
  0x25   :  { %p450_p3 = scmp.lt.u32.totalorder %s446_s14, %s627_s2 }
  0x27   :  { %p452_p4 = pnand %p450_p3, %p447_p2 }
  0x29   :  { %455 = shalt.err (!%p452_p4)
}
  0x2a   :  { %s456_s20 = scalar_lea.vmem %s41_s11, 32  ;;  %p461_p6 = scmp.lt.s32.totalorder %s41_s11, %s41_s11 }
  0x2b   :  { %p457_p5 = scmp.ne.s32.totalorder %s41_s11, %s456_s20  ;;  %p462_p7 = scmp.lt.s32.totalorder %s456_s20, %s456_s20 }
  0x2d   :  { %p463_p8 = por %p462_p7, %p461_p6 }
  0x2f   :  { %p464_p9 = pnand %p463_p8, %p457_p5 }
  0x31   :  { %467 = shalt.err (!%p464_p9)
}
  0x32   :  { %s509_s0 = smov 16   ;;  %s510_s15 = smov 1  }
  0x33   :  { %46 = dma.hbm_to_vmem [thread:$0]  %s627_s2, 32, %s41_s11, [#allocation7], %s509_s0, %s509_s0, %s510_s15  }
  0x34   :  { %494 = dma.done.wait [#allocation4], 1536  }
  0x35   :  { %495 = vsyncadd [#allocation4], 4294965760 }
  0x36   :  { %496 = dma.done.wait [#allocation7], 544  }
  0x37   :  { %497 = vsyncadd [#allocation7], 4294966752  ;;  %vm56_vm0 = vcmask 130048   ;;  %v511_v0 = vmov 0.0   ;;  %s591_s23 = smov 0  }
  0x38   :  { %57 = vst.msk [vmem:[#allocation2] sm:$0xff] %vm56_vm0, %v511_v0  ;;  %58 = vst.msk [vmem:[#allocation2 + $0x8] sm:$0xff] %vm56_vm0, %v511_v0 }
  0x39 LB: > { %v71_v1 = vld [vmem:[#allocation6] sm:$0xff]  ;;  %v72_v2 = vld [vmem:[#allocation6 + $0x8] sm:$0xff]  ;;  %v512_v3 = vmov 0.0|0.0   ;;  %vm513_vm1 = vmmov 0   ;;  %v514_v5 = vmov 0.0   ;;  %v73_v6 = vld [vmem:[#allocation6 + $0x10] sm:$0xff]  ;;  %s502_s23 = sphi %s591_s23, %s64_s23  }
  0x3a   : > { %360 = vmatprep.subr.bf16.mxu0 %v512_v3  ;;  %v361_v4 = vpack.c.bf16 %v72_v2, %v71_v1  ;;  %350 = vmatprep.mubr.msk.f32.mxu0 %vm513_vm1, %v514_v5  ;;  %v74_v7 = vld [vmem:[#allocation6 + $0x18] sm:$0xff]  ;;  %v334_v11 = vld [vmem:[#allocation8] ss:$0 sm:$0xff]  ;;  %v335_v13 = vld [vmem:[#allocation8 + $0x1] ss:$0 sm:$0xff]  ;;  %s515_s2 = smov 96  }
  0x3b   : > { %363 = vmatprep.subr.bf16.mxu1 %v512_v3  ;;  %v364_v8 = vpack.c.bf16 %v74_v7, %v73_v6  ;;  %357 = vmatprep.mubr.msk.f32.mxu1 %vm513_vm1, %v514_v5  ;;  %s333_s26 = sshll.u32 %s502_s23, 4  ;;  %s516_s28 = smov 32  }
  0x3c   : > { %362 = vmatpush3.bf16.msra.mxu0 %v361_v4  ;;  %s66_s27 = scalar_lea.vmem [#allocation3], %s333_s26  ;;  %s517_s29 = smov 112  }
  0x3d   : > { %365 = vmatpush3.bf16.msra.mxu1 %v364_v8  ;;  %v67_v19 = vld [vmem:[%s66_s27] sm:$0xff]  ;;  %v68_v21 = vld [vmem:[%s66_s27 + $0x8] sm:$0xff]  ;;  %s518_s30 = smov 16   ;;  %s303_s4 = scalar_lea.vmem [#allocation9], %s333_s26 }
  0x3e   : > { %s64_s23 = sadd.s32 1, %s502_s23  }
  0x3f   : > { %v69_v9 = vld [vmem:[#allocation2] sm:$0xff]  ;;  %v70_v10 = vld [vmem:[#allocation2 + $0x8] sm:$0xff]  ;;  %p61_p10 = scmp.ge.s32.totalorder %s64_s23, 6  }
  0x40   : > { %351 = vmatmul.mubr.msk.f32.vlgmr.msra.gmra.mrb[0].mxu0 %vm56_vm0, %v69_v9  ;;  %358 = vmatmul.mubr.msk.f32.vlgmr.msra.gmra.mrb[0].mxu1 %vm56_vm0, %v70_v10  ;;  %s519_s5 = smov (%p61_p10), [#allocation9]  }
  0x41   :  { %s311_s6 = sshll.u32 (%p61_p10), %s519_s5, 4  ;;  %s312_s6 = int_to_ptr.vmem [resolvable:$true] %s311_s6 }
  0x42   :  { %s468_s7 = scalar_lea.vmem (%p61_p10), %s312_s6, 1536  ;;  %p473_p12 = scmp.lt.s32.totalorder (%p61_p10), %s312_s6, %s312_s6 }
  0x43   :  { %p469_p11 = scmp.ne.s32.totalorder (%p61_p10), %s312_s6, %s468_s7  ;;  %p474_p13 = scmp.lt.s32.totalorder (%p61_p10), %s468_s7, %s468_s7 }
  0x45   :  { %p475_p0 = por (%p61_p10), %p474_p13, %p473_p12 }
  0x47   :  { %p476_p1 = pnand (%p61_p10), %p475_p0, %p469_p11 }
 0x113   : > { %v158_v12 = vpop.f32.mrb[0].mxu0  ;;  %v231_v16 = vpop.f32.mrb[0].mxu1 }
 0x114   : > { %v159_v14 = vadd.f32 %v334_v11, %v158_v12  ;;  %v352_v15 = vpop.f32.mrb[1].mxu0  ;;  %v359_v17 = vpop.f32.mrb[1].mxu1  ;;  %v232_v18 = vadd.f32 %v335_v13, %v231_v16 }
 0x116   : > { %251 = vrot.lane.b32.xlu0 %v159_v14, %s515_s2  ;;  %v235_v20 = vadd.f32 %v159_v14, %v67_v19  ;;  %v236_v23 = vadd.f32 %v232_v18, %v68_v21 }
 0x118   : > { %v338_v22 = vmul.f32 -1.442695, %v235_v20  ;;  %v339_v24 = vmul.f32 -1.442695, %v236_v23 }
 0x11a   : > { %253 = vrot.lane.b32.xlu0 %v232_v18, %s515_s2  ;;  %390 = vpow2.f32 %v338_v22 }
 0x11b   : > { %392 = vpow2.f32 %v339_v24 }
 0x124   : > { %v391_v25 = vpop.eup %390 }
 0x125   : > { %v243_v26 = vadd.f32 1.0, %v391_v25  ;;  %v393_v27 = vpop.eup %392 }
 0x126   : > { %v244_v28 = vadd.f32 1.0, %v393_v27 }
 0x127   : > { %394 = vrcp.f32 %v243_v26 }
 0x128   : > { %396 = vrcp.f32 %v244_v28 }
 0x131   : > { %v395_v29 = vpop.eup %394 }
 0x132   : > { %v397_v32 = vpop.eup %396  ;;  %v271_v42 = vsub.f32 1.0, %v395_v29 }
 0x133   : > { %v272_v48 = vsub.f32 1.0, %v397_v32 }
 0x188   : > { %v252_v30 = vpop.permute.xlu0 %251 }
 0x189   : > { %v257_v31 = vmul.f32 %v395_v29, %v252_v30 }
 0x18b   : > { %261 = vrot.lane.b32.xlu1 %v257_v31, %s516_s28 }
 0x18c   : > { %v254_v33 = vpop.permute.xlu0 %253 }
 0x18d   : > { %v258_v34 = vmul.f32 %v397_v32, %v254_v33 }
 0x18f   : > { %263 = vrot.lane.b32.xlu1 %v258_v34, %s516_s28 }
 0x1fd   : > { %v262_v35 = vpop.permute.xlu1 %261 }
 0x1fe   : > { %v267_v36 = vadd.f32 %v262_v35, %v67_v19 }
 0x200   : > { %398 = vtanh.f32 %v267_v36 }
 0x201   : > { %v264_v37 = vpop.permute.xlu1 %263 }
 0x202   : > { %v268_v38 = vadd.f32 %v264_v37, %v68_v21 }
 0x204   : > { %400 = vtanh.f32 %v268_v38 }
 0x20a   : > { %v399_v39 = vpop.eup %398 }
 0x20b   : > { %275 = vrot.lane.b32.xlu0 %v399_v39, %s517_s29 }
 0x20e   : > { %v401_v40 = vpop.eup %400 }
 0x20f   : > { %283 = vrot.lane.b32.xlu0 %v69_v9, %s518_s30  ;;  %277 = vrot.lane.b32.xlu1 %v401_v40, %s517_s29 }
 0x213   : > { %285 = vrot.lane.b32.xlu1 %v70_v10, %s518_s30 }
 0x27d   : > { %v276_v41 = vpop.permute.xlu0 %275 }
 0x27e   : > { %v281_v45 = vmul.f32 %v276_v41, %v271_v42 }
 0x281   : > { %v284_v43 = vpop.permute.xlu0 %283  ;;  %v278_v44 = vpop.permute.xlu1 %277 }
 0x282   : > { %v289_v46 = vmul.f32 %v395_v29, %v284_v43  ;;  %v282_v50 = vmul.f32 %v278_v44, %v272_v48 }
 0x284   : > { %v291_v47 = vadd.f32 %v289_v46, %v281_v45 }
 0x285   : > { %v286_v49 = vpop.permute.xlu1 %285 }
 0x286   : > { %v290_v51 = vmul.f32 %v397_v32, %v286_v49  ;;  %295 = vrot.lane.b32.xlu0 %v291_v47, %s517_s29 }
 0x288   : > { %v292_v52 = vadd.f32 %v290_v51, %v282_v50 }
 0x28a   : > { %297 = vrot.lane.b32.xlu1 %v292_v52, %s517_s29 }
 0x2f7   :  { %63 = sbr.rel (!%p61_p10) target bundleno = 57 (0x39), region = 53 }
 0x2f8   : > { %v296_v53 = vpop.permute.xlu0 %295 }
 0x2f9   : > { %301 = vst.msk [vmem:[#allocation2] sm:$0xff] %vm56_vm0, %v296_v53  ;;  %304 = vst.msk [vmem:[%s303_s4] sm:$0xff] %vm56_vm0, %v296_v53 }
 0x2fc   : > { %v298_v54 = vpop.permute.xlu1 %297 }
 0x2fd   : > { %302 = vst.msk [vmem:[#allocation2 + $0x8] sm:$0xff] %vm56_vm0, %v298_v54  ;;  %305 = vst.msk [vmem:[%s303_s4 + $0x8] sm:$0xff] %vm56_vm0, %v298_v54 }
 0x2fe   :  { %479 = shalt.err (!%p476_p1)
}
 0x2ff   :  { %s480_s9 = scalar_lea.hbm %s628_s3, 1536 }
 0x300   :  { %p481_p2 = scmp.ne.s32.totalorder %s628_s3, %s480_s9  ;;  %p484_p3 = scmp.lt.u32.totalorder %s480_s9, %s628_s3 }
 0x302   :  { %p486_p4 = pnand %p484_p3, %p481_p2 }
 0x304   :  { %489 = shalt.err (!%p486_p4)
}
 0x305   :  { %317 = dma.vmem_to_hbm [thread:$0]  %s312_s6, 1536, %s628_s3, [#allocation5], %s506_s24, %s506_s24, %s507_s25  }
 0x306   :  { %498 = dma.done.wait [#allocation5], 1536  }
 0x307   :  { %499 = vsyncadd [#allocation5], 4294965760 }
 0x308   :  { %321 = vsyncpa [#allocation4], 1 }
 0x309   :  { %322 = vsyncpa [#allocation7], 1 }
 0x30a   :  { %323 = vsyncpa [#allocation5], 1 }

// kernel: forward.20
= control target key start
LH: loop header
LB: loop body
LE: loop exit
PB: predicated region body
PF: predicated region fallthrough
CT: control target
= control target key end

     0   :  { %8 = vsyncpa [#allocation3], 0  ;;  %s388_s0 = inlined_call_operand.hbm [shape: f32[16,32], index: 0, kind: input, shape index: {}]   ;;  %s389_s1 = inlined_call_operand.hbm [shape: f32[32,96], index: 1, kind: input, shape index: {}]   ;;  %s390_s2 = inlined_call_operand.hbm [shape: f32[1,96], index: 2, kind: input, shape index: {}]   ;;  %s391_s3 = inlined_call_operand.hbm [shape: f32[16,96], index: 3, kind: output, shape index: {}]  }
   0x1   :  { %9 = vsyncpa [#allocation6], 0 }
   0x2   :  { %10 = vsyncpa [#allocation4], 0  ;;  %s298_s12 = smov [#allocation5]   ;;  %s299_s14 = smov [#allocation2]  }
   0x3   :  { %s28_s13 = sshll.u32 %s298_s12, 4  ;;  %s16_s15 = sshll.u32 %s299_s14, 4  ;;  %s29_s13 = int_to_ptr.vmem [resolvable:$true] %s28_s13  ;;  %s324_s15 = int_to_ptr.vmem [resolvable:$true] %s16_s15 }
   0x4   :  { %s204_s18 = scalar_lea.hbm %s389_s1, 512 }
   0x5   :  { %p205_p0 = scmp.ne.s32.totalorder %s389_s1, %s204_s18  ;;  %p208_p1 = scmp.lt.u32.totalorder %s204_s18, %s389_s1 }
   0x7   :  { %p210_p2 = pnand %p208_p1, %p205_p0 }
   0x9   :  { %213 = shalt.err (!%p210_p2)
}
   0xa   :  { %s214_s23 = scalar_lea.vmem %s29_s13, 512  ;;  %p219_p4 = scmp.lt.s32.totalorder %s29_s13, %s29_s13 }
   0xb   :  { %p215_p3 = scmp.ne.s32.totalorder %s29_s13, %s214_s23  ;;  %p220_p5 = scmp.lt.s32.totalorder %s214_s23, %s214_s23 }
   0xd   :  { %p221_p6 = por %p220_p5, %p219_p4 }
   0xf   :  { %p222_p7 = pnand %p221_p6, %p215_p3 }
  0x11   :  { %225 = shalt.err (!%p222_p7)
}
  0x12   :  { %s300_s24 = smov 128   ;;  %s301_s25 = smov 8  }
  0x13   :  { %34 = dma.hbm_to_vmem [thread:$0]  %s389_s1, 512, %s29_s13, [#allocation6], %s300_s24, %s300_s24, %s301_s25  }
  0x14   :  { %s226_s30 = scalar_lea.hbm %s388_s0, 256 }
  0x15   :  { %p227_p8 = scmp.ne.s32.totalorder %s388_s0, %s226_s30  ;;  %p230_p9 = scmp.lt.u32.totalorder %s226_s30, %s388_s0 }
  0x17   :  { %p232_p10 = pnand %p230_p9, %p227_p8 }
  0x19   :  { %235 = shalt.err (!%p232_p10)
}
  0x1a   :  { %s236_s8 = scalar_lea.vmem %s324_s15, 256  ;;  %p241_p12 = scmp.lt.s32.totalorder %s324_s15, %s324_s15 }
  0x1b   :  { %p237_p11 = scmp.ne.s32.totalorder %s324_s15, %s236_s8  ;;  %p242_p13 = scmp.lt.s32.totalorder %s236_s8, %s236_s8 }
  0x1d   :  { %p243_p0 = por %p242_p13, %p241_p12 }
  0x1f   :  { %p244_p1 = pnand %p243_p0, %p237_p11 }
  0x21   :  { %247 = shalt.err (!%p244_p1)
}
  0x22   :  { %22 = dma.hbm_to_vmem [thread:$0]  %s388_s0, 256, %s324_s15, [#allocation3], %s300_s24, %s300_s24, %s301_s25  }
  0x23   :  { %s302_s10 = smov [#allocation7]   ;;  %s248_s14 = scalar_lea.hbm %s390_s2, 16 }
  0x24   :  { %s41_s11 = sshll.u32 %s302_s10, 4  ;;  %p249_p2 = scmp.ne.s32.totalorder %s390_s2, %s248_s14  ;;  %s42_s11 = int_to_ptr.vmem [resolvable:$true] %s41_s11 }
  0x25   :  { %p252_p3 = scmp.lt.u32.totalorder %s248_s14, %s390_s2 }
  0x27   :  { %p254_p4 = pnand %p252_p3, %p249_p2 }
  0x29   :  { %257 = shalt.err (!%p254_p4)
}
  0x2a   :  { %s258_s20 = scalar_lea.vmem %s42_s11, 16  ;;  %s262_s0 = scalar_lea.vmem %s42_s11, 32 }
  0x2b   :  { %p259_p5 = scmp.ne.s32.totalorder %s42_s11, %s258_s20  ;;  %p263_p6 = scmp.lt.s32.totalorder %s42_s11, %s42_s11 }
  0x2c   :  { %p264_p7 = scmp.lt.s32.totalorder %s262_s0, %s258_s20 }
  0x2e   :  { %p265_p8 = por %p264_p7, %p263_p6 }
  0x30   :  { %p266_p9 = pnand %p265_p8, %p259_p5 }
  0x32   :  { %269 = shalt.err (!%p266_p9)
}
  0x33   :  { %44 = dma.hbm_to_vmem [thread:$0]  %s390_s2, 16, %s42_s11, [#allocation6]  }
  0x34   :  { %292 = dma.done.wait [#allocation3], 256  }
  0x35   :  { %293 = vsyncadd [#allocation3], 4294967040 }
  0x36   :  { %294 = dma.done.wait [#allocation6], 528  }
  0x37   :  { %295 = vsyncadd [#allocation6], 4294966768  ;;  %vm67_vm0 = vcmask 261120   ;;  %v56_v0 = vld [vmem:[#allocation5] sm:$0xff]  ;;  %v57_v1 = vld [vmem:[#allocation5 + $0x8] sm:$0xff]  ;;  %s303_s2 = smov [#allocation8]  }
  0x38   :  { %v58_v2 = vld [vmem:[#allocation5 + $0x10] sm:$0xff]  ;;  %v190_v3 = vpack.c.bf16 %v57_v1, %v56_v0  ;;  %v59_v4 = vld [vmem:[#allocation5 + $0x18] sm:$0xff]  ;;  %v170_v8 = vld [vmem:[#allocation7] ss:$0 sm:$0xff]  ;;  %s157_s22 = sshll.u32 %s303_s2, 4  ;;  %vm149_vm1 = vcmask 785408   ;;  %s158_s22 = int_to_ptr.vmem [resolvable:$true] %s157_s22 }
  0x39   :  { %v54_v5 = vld [vmem:[#allocation2] sm:$0xff]  ;;  %v194_v6 = vpack.c.bf16 %v59_v4, %v58_v2  ;;  %v55_v7 = vld [vmem:[#allocation2 + $0x8] sm:$0xff]  ;;  %s270_s23 = scalar_lea.vmem %s158_s22, 256  ;;  %p275_p11 = scmp.lt.s32.totalorder %s158_s22, %s158_s22 }
  0x3a   :  { %187 = vmatprep.mubr.msk.f32.mxu0 %vm67_vm0, %v54_v5  ;;  %191 = vmatprep.subr.bf16.mxu0 %v190_v3  ;;  %p271_p10 = scmp.ne.s32.totalorder %s158_s22, %s270_s23  ;;  %p276_p12 = scmp.lt.s32.totalorder %s270_s23, %s270_s23 }
  0x3b   :  { %193 = vmatpush3.bf16.msra.mxu0 %v190_v3 }
  0x3c   :  { %195 = vmatprep.subr.bf16.mxu0 %v194_v6  ;;  %p277_p13 = por %p276_p12, %p275_p11 }
  0x3e   :  { %p278_p0 = pnand %p277_p13, %p271_p10 }
  0x3f   :  { %197 = vmatpush3.bf16.msra.mxu0 %v194_v6 }
  0x42   :  { %188 = vmatmul.mubr.msk.f32.vlgmr.msra.gmra.mrb[0].mxu0 %vm67_vm0, %v55_v7 }
 0x115   :  { %v189_v9 = vpop.f32.mrb[0].mxu0 }
 0x116   :  { %v146_v10 = vadd.f32 %v189_v9, %v170_v8  ;;  %v140_v11 = vpop.f32.mrb[1].mxu0 }
 0x117   :  { %v141_v12 = vadd.f32 %v170_v8, %v140_v11 }
 0x118   :  { %151 = vst.msk [vmem:[#allocation8 + $0x8] sm:$0xff] %vm149_vm1, %v146_v10 }
 0x119   :  { %150 = vst.msk [vmem:[#allocation8] sm:$0xff] %vm149_vm1, %v141_v12 }
 0x11a   :  { %281 = shalt.err (!%p278_p0)
}
 0x11b   :  { %s282_s28 = scalar_lea.hbm %s391_s3, 256 }
 0x11c   :  { %p283_p1 = scmp.ne.s32.totalorder %s391_s3, %s282_s28  ;;  %p286_p2 = scmp.lt.u32.totalorder %s282_s28, %s391_s3 }
 0x11e   :  { %p288_p3 = pnand %p286_p2, %p283_p1 }
 0x120   :  { %291 = shalt.err (!%p288_p3)
}
 0x121   :  { %163 = dma.vmem_to_hbm [thread:$0]  %s158_s22, 256, %s391_s3, [#allocation4], %s300_s24, %s300_s24, %s301_s25  }
 0x122   :  { %296 = dma.done.wait [#allocation4], 256  }
 0x123   :  { %297 = vsyncadd [#allocation4], 4294967040 }
 0x124   :  { %167 = vsyncpa [#allocation3], 1 }
 0x125   :  { %168 = vsyncpa [#allocation6], 1 }
 0x126   :  { %169 = vsyncpa [#allocation4], 1 }

// kernel: forward.21
= control target key start
LH: loop header
LB: loop body
LE: loop exit
PB: predicated region body
PF: predicated region fallthrough
CT: control target
= control target key end

     0   :  { %8 = vsyncpa [#allocation4], 0  ;;  %s625_s0 = inlined_call_operand.hbm [shape: f32[5,2,8,48], index: 0, kind: input, shape index: {}]   ;;  %s626_s1 = inlined_call_operand.hbm [shape: f32[2,16,48], index: 1, kind: input, shape index: {}]   ;;  %s627_s2 = inlined_call_operand.hbm [shape: f32[2,1,48], index: 2, kind: input, shape index: {}]   ;;  %s628_s3 = inlined_call_operand.hbm [shape: f32[5,2,8,16], index: 3, kind: output, shape index: {}]  }
   0x1   :  { %9 = vsyncpa [#allocation7], 0 }
   0x2   :  { %10 = vsyncpa [#allocation5], 0  ;;  %s504_s12 = smov [#allocation6]   ;;  %s505_s14 = smov [#allocation3]  }
   0x3   :  { %s28_s13 = sshll.u32 %s504_s12, 4  ;;  %s16_s15 = sshll.u32 %s505_s14, 4  ;;  %s29_s13 = int_to_ptr.vmem [resolvable:$true] %s28_s13  ;;  %s540_s15 = int_to_ptr.vmem [resolvable:$true] %s16_s15 }
   0x4   :  { %s402_s18 = scalar_lea.hbm %s626_s1, 512 }
   0x5   :  { %p403_p0 = scmp.ne.s32.totalorder %s626_s1, %s402_s18  ;;  %p406_p1 = scmp.lt.u32.totalorder %s402_s18, %s626_s1 }
   0x7   :  { %p408_p2 = pnand %p406_p1, %p403_p0 }
   0x9   :  { %411 = shalt.err (!%p408_p2)
}
   0xa   :  { %s412_s23 = scalar_lea.vmem %s29_s13, 512  ;;  %p417_p4 = scmp.lt.s32.totalorder %s29_s13, %s29_s13 }
   0xb   :  { %p413_p3 = scmp.ne.s32.totalorder %s29_s13, %s412_s23  ;;  %p418_p5 = scmp.lt.s32.totalorder %s412_s23, %s412_s23 }
   0xd   :  { %p419_p6 = por %p418_p5, %p417_p4 }
   0xf   :  { %p420_p7 = pnand %p419_p6, %p413_p3 }
  0x11   :  { %423 = shalt.err (!%p420_p7)
}
  0x12   :  { %s506_s24 = smov 128   ;;  %s507_s25 = smov 8  }
  0x13   :  { %34 = dma.hbm_to_vmem [thread:$0]  %s626_s1, 512, %s29_s13, [#allocation7], %s506_s24, %s506_s24, %s507_s25  }
  0x14   :  { %s424_s30 = scalar_lea.hbm %s625_s0, 1280 }
  0x15   :  { %p425_p8 = scmp.ne.s32.totalorder %s625_s0, %s424_s30  ;;  %p428_p9 = scmp.lt.u32.totalorder %s424_s30, %s625_s0 }
  0x17   :  { %p430_p10 = pnand %p428_p9, %p425_p8 }
  0x19   :  { %433 = shalt.err (!%p430_p10)
}
  0x1a   :  { %s434_s8 = scalar_lea.vmem %s540_s15, 1280  ;;  %p439_p12 = scmp.lt.s32.totalorder %s540_s15, %s540_s15 }
  0x1b   :  { %p435_p11 = scmp.ne.s32.totalorder %s540_s15, %s434_s8  ;;  %p440_p13 = scmp.lt.s32.totalorder %s434_s8, %s434_s8 }
  0x1d   :  { %p441_p0 = por %p440_p13, %p439_p12 }
  0x1f   :  { %p442_p1 = pnand %p441_p0, %p435_p11 }
  0x21   :  { %445 = shalt.err (!%p442_p1)
}
  0x22   :  { %22 = dma.hbm_to_vmem [thread:$0]  %s625_s0, 1280, %s540_s15, [#allocation4], %s506_s24, %s506_s24, %s507_s25  }
  0x23   :  { %s508_s10 = smov [#allocation8]   ;;  %s446_s14 = scalar_lea.hbm %s627_s2, 32 }
  0x24   :  { %s40_s11 = sshll.u32 %s508_s10, 4  ;;  %p447_p2 = scmp.ne.s32.totalorder %s627_s2, %s446_s14  ;;  %s41_s11 = int_to_ptr.vmem [resolvable:$true] %s40_s11 }
  0x25   :  { %p450_p3 = scmp.lt.u32.totalorder %s446_s14, %s627_s2 }
  0x27   :  { %p452_p4 = pnand %p450_p3, %p447_p2 }
  0x29   :  { %455 = shalt.err (!%p452_p4)
}
  0x2a   :  { %s456_s20 = scalar_lea.vmem %s41_s11, 32  ;;  %p461_p6 = scmp.lt.s32.totalorder %s41_s11, %s41_s11 }
  0x2b   :  { %p457_p5 = scmp.ne.s32.totalorder %s41_s11, %s456_s20  ;;  %p462_p7 = scmp.lt.s32.totalorder %s456_s20, %s456_s20 }
  0x2d   :  { %p463_p8 = por %p462_p7, %p461_p6 }
  0x2f   :  { %p464_p9 = pnand %p463_p8, %p457_p5 }
  0x31   :  { %467 = shalt.err (!%p464_p9)
}
  0x32   :  { %s509_s0 = smov 16   ;;  %s510_s15 = smov 1  }
  0x33   :  { %46 = dma.hbm_to_vmem [thread:$0]  %s627_s2, 32, %s41_s11, [#allocation7], %s509_s0, %s509_s0, %s510_s15  }
  0x34   :  { %494 = dma.done.wait [#allocation4], 1280  }
  0x35   :  { %495 = vsyncadd [#allocation4], 4294966016 }
  0x36   :  { %496 = dma.done.wait [#allocation7], 544  }
  0x37   :  { %497 = vsyncadd [#allocation7], 4294966752  ;;  %vm56_vm0 = vcmask 130048   ;;  %v511_v0 = vmov 0.0   ;;  %s591_s23 = smov 0  }
  0x38   :  { %57 = vst.msk [vmem:[#allocation2] sm:$0xff] %vm56_vm0, %v511_v0  ;;  %58 = vst.msk [vmem:[#allocation2 + $0x8] sm:$0xff] %vm56_vm0, %v511_v0 }
  0x39 LB: > { %v71_v1 = vld [vmem:[#allocation6] sm:$0xff]  ;;  %v72_v2 = vld [vmem:[#allocation6 + $0x8] sm:$0xff]  ;;  %v512_v3 = vmov 0.0|0.0   ;;  %vm513_vm1 = vmmov 0   ;;  %v514_v5 = vmov 0.0   ;;  %v73_v6 = vld [vmem:[#allocation6 + $0x10] sm:$0xff]  ;;  %s502_s23 = sphi %s591_s23, %s64_s23  }
  0x3a   : > { %360 = vmatprep.subr.bf16.mxu0 %v512_v3  ;;  %v361_v4 = vpack.c.bf16 %v72_v2, %v71_v1  ;;  %350 = vmatprep.mubr.msk.f32.mxu0 %vm513_vm1, %v514_v5  ;;  %v74_v7 = vld [vmem:[#allocation6 + $0x18] sm:$0xff]  ;;  %v334_v11 = vld [vmem:[#allocation8] ss:$0 sm:$0xff]  ;;  %v335_v13 = vld [vmem:[#allocation8 + $0x1] ss:$0 sm:$0xff]  ;;  %s515_s2 = smov 96  }
  0x3b   : > { %363 = vmatprep.subr.bf16.mxu1 %v512_v3  ;;  %v364_v8 = vpack.c.bf16 %v74_v7, %v73_v6  ;;  %357 = vmatprep.mubr.msk.f32.mxu1 %vm513_vm1, %v514_v5  ;;  %s333_s26 = sshll.u32 %s502_s23, 4  ;;  %s516_s28 = smov 32  }
  0x3c   : > { %362 = vmatpush3.bf16.msra.mxu0 %v361_v4  ;;  %s66_s27 = scalar_lea.vmem [#allocation3], %s333_s26  ;;  %s517_s29 = smov 112  }
  0x3d   : > { %365 = vmatpush3.bf16.msra.mxu1 %v364_v8  ;;  %v67_v19 = vld [vmem:[%s66_s27] sm:$0xff]  ;;  %v68_v21 = vld [vmem:[%s66_s27 + $0x8] sm:$0xff]  ;;  %s518_s30 = smov 16   ;;  %s303_s4 = scalar_lea.vmem [#allocation9], %s333_s26 }
  0x3e   : > { %s64_s23 = sadd.s32 1, %s502_s23  }
  0x3f   : > { %v69_v9 = vld [vmem:[#allocation2] sm:$0xff]  ;;  %v70_v10 = vld [vmem:[#allocation2 + $0x8] sm:$0xff]  ;;  %p61_p10 = scmp.ge.s32.totalorder %s64_s23, 5  }
  0x40   : > { %351 = vmatmul.mubr.msk.f32.vlgmr.msra.gmra.mrb[0].mxu0 %vm56_vm0, %v69_v9  ;;  %358 = vmatmul.mubr.msk.f32.vlgmr.msra.gmra.mrb[0].mxu1 %vm56_vm0, %v70_v10  ;;  %s519_s5 = smov (%p61_p10), [#allocation9]  }
  0x41   :  { %s311_s6 = sshll.u32 (%p61_p10), %s519_s5, 4  ;;  %s312_s6 = int_to_ptr.vmem [resolvable:$true] %s311_s6 }
  0x42   :  { %s468_s7 = scalar_lea.vmem (%p61_p10), %s312_s6, 1280  ;;  %p473_p12 = scmp.lt.s32.totalorder (%p61_p10), %s312_s6, %s312_s6 }
  0x43   :  { %p469_p11 = scmp.ne.s32.totalorder (%p61_p10), %s312_s6, %s468_s7  ;;  %p474_p13 = scmp.lt.s32.totalorder (%p61_p10), %s468_s7, %s468_s7 }
  0x45   :  { %p475_p0 = por (%p61_p10), %p474_p13, %p473_p12 }
  0x47   :  { %p476_p1 = pnand (%p61_p10), %p475_p0, %p469_p11 }
 0x113   : > { %v158_v12 = vpop.f32.mrb[0].mxu0  ;;  %v231_v16 = vpop.f32.mrb[0].mxu1 }
 0x114   : > { %v159_v14 = vadd.f32 %v334_v11, %v158_v12  ;;  %v352_v15 = vpop.f32.mrb[1].mxu0  ;;  %v359_v17 = vpop.f32.mrb[1].mxu1  ;;  %v232_v18 = vadd.f32 %v335_v13, %v231_v16 }
 0x116   : > { %251 = vrot.lane.b32.xlu0 %v159_v14, %s515_s2  ;;  %v235_v20 = vadd.f32 %v159_v14, %v67_v19  ;;  %v236_v23 = vadd.f32 %v232_v18, %v68_v21 }
 0x118   : > { %v338_v22 = vmul.f32 -1.442695, %v235_v20  ;;  %v339_v24 = vmul.f32 -1.442695, %v236_v23 }
 0x11a   : > { %253 = vrot.lane.b32.xlu0 %v232_v18, %s515_s2  ;;  %390 = vpow2.f32 %v338_v22 }
 0x11b   : > { %392 = vpow2.f32 %v339_v24 }
 0x124   : > { %v391_v25 = vpop.eup %390 }
 0x125   : > { %v243_v26 = vadd.f32 1.0, %v391_v25  ;;  %v393_v27 = vpop.eup %392 }
 0x126   : > { %v244_v28 = vadd.f32 1.0, %v393_v27 }
 0x127   : > { %394 = vrcp.f32 %v243_v26 }
 0x128   : > { %396 = vrcp.f32 %v244_v28 }
 0x131   : > { %v395_v29 = vpop.eup %394 }
 0x132   : > { %v397_v32 = vpop.eup %396  ;;  %v271_v42 = vsub.f32 1.0, %v395_v29 }
 0x133   : > { %v272_v48 = vsub.f32 1.0, %v397_v32 }
 0x188   : > { %v252_v30 = vpop.permute.xlu0 %251 }
 0x189   : > { %v257_v31 = vmul.f32 %v395_v29, %v252_v30 }
 0x18b   : > { %261 = vrot.lane.b32.xlu1 %v257_v31, %s516_s28 }
 0x18c   : > { %v254_v33 = vpop.permute.xlu0 %253 }
 0x18d   : > { %v258_v34 = vmul.f32 %v397_v32, %v254_v33 }
 0x18f   : > { %263 = vrot.lane.b32.xlu1 %v258_v34, %s516_s28 }
 0x1fd   : > { %v262_v35 = vpop.permute.xlu1 %261 }
 0x1fe   : > { %v267_v36 = vadd.f32 %v262_v35, %v67_v19 }
 0x200   : > { %398 = vtanh.f32 %v267_v36 }
 0x201   : > { %v264_v37 = vpop.permute.xlu1 %263 }
 0x202   : > { %v268_v38 = vadd.f32 %v264_v37, %v68_v21 }
 0x204   : > { %400 = vtanh.f32 %v268_v38 }
 0x20a   : > { %v399_v39 = vpop.eup %398 }
 0x20b   : > { %275 = vrot.lane.b32.xlu0 %v399_v39, %s517_s29 }
 0x20e   : > { %v401_v40 = vpop.eup %400 }
 0x20f   : > { %283 = vrot.lane.b32.xlu0 %v69_v9, %s518_s30  ;;  %277 = vrot.lane.b32.xlu1 %v401_v40, %s517_s29 }
 0x213   : > { %285 = vrot.lane.b32.xlu1 %v70_v10, %s518_s30 }
 0x27d   : > { %v276_v41 = vpop.permute.xlu0 %275 }
 0x27e   : > { %v281_v45 = vmul.f32 %v276_v41, %v271_v42 }
 0x281   : > { %v284_v43 = vpop.permute.xlu0 %283  ;;  %v278_v44 = vpop.permute.xlu1 %277 }
 0x282   : > { %v289_v46 = vmul.f32 %v395_v29, %v284_v43  ;;  %v282_v50 = vmul.f32 %v278_v44, %v272_v48 }
 0x284   : > { %v291_v47 = vadd.f32 %v289_v46, %v281_v45 }
 0x285   : > { %v286_v49 = vpop.permute.xlu1 %285 }
 0x286   : > { %v290_v51 = vmul.f32 %v397_v32, %v286_v49  ;;  %295 = vrot.lane.b32.xlu0 %v291_v47, %s517_s29 }
 0x288   : > { %v292_v52 = vadd.f32 %v290_v51, %v282_v50 }
 0x28a   : > { %297 = vrot.lane.b32.xlu1 %v292_v52, %s517_s29 }
 0x2f7   :  { %63 = sbr.rel (!%p61_p10) target bundleno = 57 (0x39), region = 53 }
 0x2f8   : > { %v296_v53 = vpop.permute.xlu0 %295 }
 0x2f9   : > { %301 = vst.msk [vmem:[#allocation2] sm:$0xff] %vm56_vm0, %v296_v53  ;;  %304 = vst.msk [vmem:[%s303_s4] sm:$0xff] %vm56_vm0, %v296_v53 }
 0x2fc   : > { %v298_v54 = vpop.permute.xlu1 %297 }
 0x2fd   : > { %302 = vst.msk [vmem:[#allocation2 + $0x8] sm:$0xff] %vm56_vm0, %v298_v54  ;;  %305 = vst.msk [vmem:[%s303_s4 + $0x8] sm:$0xff] %vm56_vm0, %v298_v54 }
 0x2fe   :  { %479 = shalt.err (!%p476_p1)
}
 0x2ff   :  { %s480_s9 = scalar_lea.hbm %s628_s3, 1280 }
 0x300   :  { %p481_p2 = scmp.ne.s32.totalorder %s628_s3, %s480_s9  ;;  %p484_p3 = scmp.lt.u32.totalorder %s480_s9, %s628_s3 }
 0x302   :  { %p486_p4 = pnand %p484_p3, %p481_p2 }
 0x304   :  { %489 = shalt.err (!%p486_p4)
}
 0x305   :  { %317 = dma.vmem_to_hbm [thread:$0]  %s312_s6, 1280, %s628_s3, [#allocation5], %s506_s24, %s506_s24, %s507_s25  }
 0x306   :  { %498 = dma.done.wait [#allocation5], 1280  }
 0x307   :  { %499 = vsyncadd [#allocation5], 4294966016 }
 0x308   :  { %321 = vsyncpa [#allocation4], 1 }
 0x309   :  { %322 = vsyncpa [#allocation7], 1 }
 0x30a   :  { %323 = vsyncpa [#allocation5], 1 }

// kernel: forward.22
= control target key start
LH: loop header
LB: loop body
LE: loop exit
PB: predicated region body
PF: predicated region fallthrough
CT: control target
= control target key end

     0   :  { %8 = vsyncpa [#allocation3], 0  ;;  %s319_s0 = inlined_call_operand.hbm [shape: f32[16,32], index: 0, kind: input, shape index: {}]   ;;  %s320_s1 = inlined_call_operand.hbm [shape: f32[1,32], index: 1, kind: input, shape index: {}]   ;;  %s321_s2 = inlined_call_operand.hbm [shape: f32[1,32], index: 2, kind: input, shape index: {}]   ;;  %s322_s3 = inlined_call_operand.hbm [shape: f32[16,32], index: 3, kind: output, shape index: {}]  }
   0x1   :  { %9 = vsyncpa [#allocation6], 0 }
   0x2   :  { %10 = vsyncpa [#allocation4], 0  ;;  %s226_s12 = smov [#allocation5]   ;;  %s227_s14 = smov [#allocation2]  }
   0x3   :  { %s29_s13 = sshll.u32 %s226_s12, 4  ;;  %s16_s15 = sshll.u32 %s227_s14, 4  ;;  %s30_s13 = int_to_ptr.vmem [resolvable:$true] %s29_s13  ;;  %s252_s15 = int_to_ptr.vmem [resolvable:$true] %s16_s15 }
   0x4   :  { %s132_s18 = scalar_lea.hbm %s320_s1, 16 }
   0x5   :  { %p133_p0 = scmp.ne.s32.totalorder %s320_s1, %s132_s18  ;;  %p136_p1 = scmp.lt.u32.totalorder %s132_s18, %s320_s1 }
   0x7   :  { %p138_p2 = pnand %p136_p1, %p133_p0 }
   0x9   :  { %141 = shalt.err (!%p138_p2)
}
   0xa   :  { %s142_s23 = scalar_lea.vmem %s30_s13, 16  ;;  %s146_s24 = scalar_lea.vmem %s30_s13, 32 }
   0xb   :  { %p143_p3 = scmp.ne.s32.totalorder %s30_s13, %s142_s23  ;;  %p147_p4 = scmp.lt.s32.totalorder %s30_s13, %s30_s13 }
   0xc   :  { %p148_p5 = scmp.lt.s32.totalorder %s146_s24, %s142_s23 }
   0xe   :  { %p149_p6 = por %p148_p5, %p147_p4 }
  0x10   :  { %p150_p7 = pnand %p149_p6, %p143_p3 }
  0x12   :  { %153 = shalt.err (!%p150_p7)
}
  0x13   :  { %32 = dma.hbm_to_vmem [thread:$0]  %s320_s1, 16, %s30_s13, [#allocation6]  }
  0x14   :  { %s154_s29 = scalar_lea.hbm %s319_s0, 256 }
  0x15   :  { %p155_p8 = scmp.ne.s32.totalorder %s319_s0, %s154_s29  ;;  %p158_p9 = scmp.lt.u32.totalorder %s154_s29, %s319_s0 }
  0x17   :  { %p160_p10 = pnand %p158_p9, %p155_p8 }
  0x19   :  { %163 = shalt.err (!%p160_p10)
}
  0x1a   :  { %s164_s7 = scalar_lea.vmem %s252_s15, 256  ;;  %p169_p12 = scmp.lt.s32.totalorder %s252_s15, %s252_s15 }
  0x1b   :  { %p165_p11 = scmp.ne.s32.totalorder %s252_s15, %s164_s7  ;;  %p170_p13 = scmp.lt.s32.totalorder %s164_s7, %s164_s7 }
  0x1d   :  { %p171_p0 = por %p170_p13, %p169_p12 }
  0x1f   :  { %p172_p1 = pnand %p171_p0, %p165_p11 }
  0x21   :  { %175 = shalt.err (!%p172_p1)
}
  0x22   :  { %s228_s1 = smov 128   ;;  %s229_s8 = smov 8  }
  0x23   :  { %22 = dma.hbm_to_vmem [thread:$0]  %s319_s0, 256, %s252_s15, [#allocation3], %s228_s1, %s228_s1, %s229_s8  }
  0x24   :  { %s230_s11 = smov [#allocation7]   ;;  %s176_s16 = scalar_lea.hbm %s321_s2, 16 }
  0x25   :  { %s39_s12 = sshll.u32 %s230_s11, 4  ;;  %p177_p2 = scmp.ne.s32.totalorder %s321_s2, %s176_s16  ;;  %s40_s12 = int_to_ptr.vmem [resolvable:$true] %s39_s12 }
  0x26   :  { %p180_p3 = scmp.lt.u32.totalorder %s176_s16, %s321_s2 }
  0x28   :  { %p182_p4 = pnand %p180_p3, %p177_p2 }
  0x2a   :  { %185 = shalt.err (!%p182_p4)
}
  0x2b   :  { %s186_s21 = scalar_lea.vmem %s40_s12, 16  ;;  %s190_s0 = scalar_lea.vmem %s40_s12, 32 }
  0x2c   :  { %p187_p5 = scmp.ne.s32.totalorder %s40_s12, %s186_s21  ;;  %p191_p6 = scmp.lt.s32.totalorder %s40_s12, %s40_s12 }
  0x2d   :  { %p192_p7 = scmp.lt.s32.totalorder %s190_s0, %s186_s21 }
  0x2f   :  { %p193_p8 = por %p192_p7, %p191_p6 }
  0x31   :  { %p194_p9 = pnand %p193_p8, %p187_p5 }
  0x33   :  { %197 = shalt.err (!%p194_p9)
}
  0x34   :  { %42 = dma.hbm_to_vmem [thread:$0]  %s321_s2, 16, %s40_s12, [#allocation6]  }
  0x35   :  { %220 = dma.done.wait [#allocation3], 256  }
  0x36   :  { %221 = vsyncadd [#allocation3], 4294967040 }
  0x37   :  { %222 = dma.done.wait [#allocation6], 32  }
  0x38   :  { %223 = vsyncadd [#allocation6], 4294967264  ;;  %vm54_vm0 = vcmask 261120   ;;  %v52_v0 = vld [vmem:[#allocation2] sm:$0xff]  ;;  %v53_v1 = vld [vmem:[#allocation2 + $0x8] sm:$0xff]  ;;  %s231_s2 = smov [#allocation8]  }
  0x39   :  { %v55_v2 = vsel %vm54_vm0, %v52_v0, 0.0  ;;  %v58_v3 = vsel %vm54_vm0, %v53_v1, 0.0  ;;  %v120_v21 = vld [vmem:[#allocation5] ss:$0 sm:$0xff]  ;;  %v121_v23 = vld [vmem:[#allocation7] ss:$0 sm:$0xff] }
  0x3a   :  { %56 = vadd.xlane.f32.xlu0 %v55_v2  ;;  %s107_s23 = sshll.u32 %s231_s2, 4  ;;  %s108_s23 = int_to_ptr.vmem [resolvable:$true] %s107_s23 }
  0x3b   :  { %s198_s24 = scalar_lea.vmem %s108_s23, 256  ;;  %p203_p11 = scmp.lt.s32.totalorder %s108_s23, %s108_s23 }
  0x3c   :  { %p199_p10 = scmp.ne.s32.totalorder %s108_s23, %s198_s24  ;;  %p204_p12 = scmp.lt.s32.totalorder %s198_s24, %s198_s24 }
  0x3e   :  { %59 = vadd.xlane.f32.xlu0 %v58_v3  ;;  %p205_p13 = por %p204_p12, %p203_p11 }
  0x40   :  { %p206_p0 = pnand %p205_p13, %p199_p10 }
  0xc7   :  { %v57_v4 = vpop.xlane.xlu0 %56 }
  0xc8   :  { %v62_v5 = vmul.f32 0.03125, %v57_v4 }
  0xca   :  { %v64_v6 = vsub.f32 %v52_v0, %v62_v5 }
  0xcb   :  { %v60_v7 = vpop.xlane.xlu0 %59 }
  0xcc   :  { %v63_v8 = vmul.f32 0.03125, %v60_v7  ;;  %v66_v9 = vmul.f32 %v64_v6, %v64_v6 }
  0xce   :  { %v65_v10 = vsub.f32 %v53_v1, %v63_v8  ;;  %v68_v11 = vsel %vm54_vm0, %v66_v9, 0.0 }
  0xcf   :  { %69 = vadd.xlane.f32.xlu1 %v68_v11 }
  0xd0   :  { %v67_v12 = vmul.f32 %v65_v10, %v65_v10 }
  0xd2   :  { %v71_v13 = vsel %vm54_vm0, %v67_v12, 0.0 }
  0xd3   :  { %72 = vadd.xlane.f32.xlu1 %v71_v13 }
 0x15c   :  { %v70_v14 = vpop.xlane.xlu1 %69 }
 0x15d   :  { %v74_v15 = vmul.f32 0.03125, %v70_v14 }
 0x15f   :  { %v76_v16 = vadd.f32 1e-05, %v74_v15 }
 0x160   :  { %v73_v17 = vpop.xlane.xlu1 %72 }
 0x161   :  { %128 = vrsqrt.f32 %v76_v16  ;;  %v75_v18 = vmul.f32 0.03125, %v73_v17 }
 0x163   :  { %v77_v19 = vadd.f32 1e-05, %v75_v18 }
 0x165   :  { %130 = vrsqrt.f32 %v77_v19 }
 0x16b   :  { %v129_v20 = vpop.eup %128 }
 0x16c   :  { %v80_v22 = vmul.f32 %v129_v20, %v64_v6 }
 0x16e   :  { %v89_v24 = vmul.f32 %v120_v21, %v80_v22 }
 0x16f   :  { %v131_v25 = vpop.eup %130 }
 0x170   :  { %v81_v26 = vmul.f32 %v131_v25, %v65_v10  ;;  %v98_v27 = vadd.f32 %v121_v23, %v89_v24 }
 0x172   :  { %v90_v28 = vmul.f32 %v120_v21, %v81_v26  ;;  %100 = vst.msk [vmem:[#allocation8] sm:$0xff] %vm54_vm0, %v98_v27 }
 0x174   :  { %v99_v29 = vadd.f32 %v121_v23, %v90_v28 }
 0x176   :  { %101 = vst.msk [vmem:[#allocation8 + $0x8] sm:$0xff] %vm54_vm0, %v99_v29 }
 0x177   :  { %209 = shalt.err (!%p206_p0)
}
 0x178   :  { %s210_s27 = scalar_lea.hbm %s322_s3, 256 }
 0x179   :  { %p211_p1 = scmp.ne.s32.totalorder %s322_s3, %s210_s27  ;;  %p214_p2 = scmp.lt.u32.totalorder %s210_s27, %s322_s3 }
 0x17b   :  { %p216_p3 = pnand %p214_p2, %p211_p1 }
 0x17d   :  { %219 = shalt.err (!%p216_p3)
}
 0x17e   :  { %113 = dma.vmem_to_hbm [thread:$0]  %s108_s23, 256, %s322_s3, [#allocation4], %s228_s1, %s228_s1, %s229_s8  }
 0x17f   :  { %224 = dma.done.wait [#allocation4], 256  }
 0x180   :  { %225 = vsyncadd [#allocation4], 4294967040 }
 0x181   :  { %117 = vsyncpa [#allocation3], 1 }
 0x182   :  { %118 = vsyncpa [#allocation6], 1 }
 0x183   :  { %119 = vsyncpa [#allocation4], 1 }

// kernel: forward.26
= control target key start
LH: loop header
LB: loop body
LE: loop exit
PB: predicated region body
PF: predicated region fallthrough
CT: control target
= control target key end

     0   :  { %8 = vsyncpa [#allocation3], 0  ;;  %s393_s0 = inlined_call_operand.hbm [shape: f32[16,32], index: 0, kind: input, shape index: {}]   ;;  %s394_s1 = inlined_call_operand.hbm [shape: f32[32,32], index: 1, kind: input, shape index: {}]   ;;  %s395_s2 = inlined_call_operand.hbm [shape: f32[1,32], index: 2, kind: input, shape index: {}]   ;;  %s396_s3 = inlined_call_operand.hbm [shape: f32[16,32], index: 3, kind: output, shape index: {}]  }
   0x1   :  { %9 = vsyncpa [#allocation6], 0 }
   0x2   :  { %10 = vsyncpa [#allocation4], 0  ;;  %s299_s12 = smov [#allocation5]   ;;  %s300_s14 = smov [#allocation2]  }
   0x3   :  { %s28_s13 = sshll.u32 %s299_s12, 4  ;;  %s16_s15 = sshll.u32 %s300_s14, 4  ;;  %s29_s13 = int_to_ptr.vmem [resolvable:$true] %s28_s13  ;;  %s325_s15 = int_to_ptr.vmem [resolvable:$true] %s16_s15 }
   0x4   :  { %s205_s18 = scalar_lea.hbm %s394_s1, 512 }
   0x5   :  { %p206_p0 = scmp.ne.s32.totalorder %s394_s1, %s205_s18  ;;  %p209_p1 = scmp.lt.u32.totalorder %s205_s18, %s394_s1 }
   0x7   :  { %p211_p2 = pnand %p209_p1, %p206_p0 }
   0x9   :  { %214 = shalt.err (!%p211_p2)
}
   0xa   :  { %s215_s23 = scalar_lea.vmem %s29_s13, 512  ;;  %p220_p4 = scmp.lt.s32.totalorder %s29_s13, %s29_s13 }
   0xb   :  { %p216_p3 = scmp.ne.s32.totalorder %s29_s13, %s215_s23  ;;  %p221_p5 = scmp.lt.s32.totalorder %s215_s23, %s215_s23 }
   0xd   :  { %p222_p6 = por %p221_p5, %p220_p4 }
   0xf   :  { %p223_p7 = pnand %p222_p6, %p216_p3 }
  0x11   :  { %226 = shalt.err (!%p223_p7)
}
  0x12   :  { %s301_s24 = smov 128   ;;  %s302_s25 = smov 8  }
  0x13   :  { %34 = dma.hbm_to_vmem [thread:$0]  %s394_s1, 512, %s29_s13, [#allocation6], %s301_s24, %s301_s24, %s302_s25  }
  0x14   :  { %s227_s30 = scalar_lea.hbm %s393_s0, 256 }
  0x15   :  { %p228_p8 = scmp.ne.s32.totalorder %s393_s0, %s227_s30  ;;  %p231_p9 = scmp.lt.u32.totalorder %s227_s30, %s393_s0 }
  0x17   :  { %p233_p10 = pnand %p231_p9, %p228_p8 }
  0x19   :  { %236 = shalt.err (!%p233_p10)
}
  0x1a   :  { %s237_s8 = scalar_lea.vmem %s325_s15, 256  ;;  %p242_p12 = scmp.lt.s32.totalorder %s325_s15, %s325_s15 }
  0x1b   :  { %p238_p11 = scmp.ne.s32.totalorder %s325_s15, %s237_s8  ;;  %p243_p13 = scmp.lt.s32.totalorder %s237_s8, %s237_s8 }
  0x1d   :  { %p244_p0 = por %p243_p13, %p242_p12 }
  0x1f   :  { %p245_p1 = pnand %p244_p0, %p238_p11 }
  0x21   :  { %248 = shalt.err (!%p245_p1)
}
  0x22   :  { %22 = dma.hbm_to_vmem [thread:$0]  %s393_s0, 256, %s325_s15, [#allocation3], %s301_s24, %s301_s24, %s302_s25  }
  0x23   :  { %s303_s10 = smov [#allocation7]   ;;  %s249_s14 = scalar_lea.hbm %s395_s2, 16 }
  0x24   :  { %s41_s11 = sshll.u32 %s303_s10, 4  ;;  %p250_p2 = scmp.ne.s32.totalorder %s395_s2, %s249_s14  ;;  %s42_s11 = int_to_ptr.vmem [resolvable:$true] %s41_s11 }
  0x25   :  { %p253_p3 = scmp.lt.u32.totalorder %s249_s14, %s395_s2 }
  0x27   :  { %p255_p4 = pnand %p253_p3, %p250_p2 }
  0x29   :  { %258 = shalt.err (!%p255_p4)
}
  0x2a   :  { %s259_s20 = scalar_lea.vmem %s42_s11, 16  ;;  %s263_s0 = scalar_lea.vmem %s42_s11, 32 }
  0x2b   :  { %p260_p5 = scmp.ne.s32.totalorder %s42_s11, %s259_s20  ;;  %p264_p6 = scmp.lt.s32.totalorder %s42_s11, %s42_s11 }
  0x2c   :  { %p265_p7 = scmp.lt.s32.totalorder %s263_s0, %s259_s20 }
  0x2e   :  { %p266_p8 = por %p265_p7, %p264_p6 }
  0x30   :  { %p267_p9 = pnand %p266_p8, %p260_p5 }
  0x32   :  { %270 = shalt.err (!%p267_p9)
}
  0x33   :  { %44 = dma.hbm_to_vmem [thread:$0]  %s395_s2, 16, %s42_s11, [#allocation6]  }
  0x34   :  { %293 = dma.done.wait [#allocation3], 256  }
  0x35   :  { %294 = vsyncadd [#allocation3], 4294967040 }
  0x36   :  { %295 = dma.done.wait [#allocation6], 528  }
  0x37   :  { %296 = vsyncadd [#allocation6], 4294966768  ;;  %vm67_vm0 = vcmask 261120   ;;  %v56_v0 = vld [vmem:[#allocation5] sm:$0xff]  ;;  %v57_v1 = vld [vmem:[#allocation5 + $0x8] sm:$0xff]  ;;  %s304_s2 = smov [#allocation8]  }
  0x38   :  { %v58_v2 = vld [vmem:[#allocation5 + $0x10] sm:$0xff]  ;;  %v191_v3 = vpack.c.bf16 %v57_v1, %v56_v0  ;;  %v59_v4 = vld [vmem:[#allocation5 + $0x18] sm:$0xff]  ;;  %v171_v8 = vld [vmem:[#allocation7] ss:$0 sm:$0xff]  ;;  %s158_s22 = sshll.u32 %s304_s2, 4  ;;  %s159_s22 = int_to_ptr.vmem [resolvable:$true] %s158_s22 }
  0x39   :  { %v54_v5 = vld [vmem:[#allocation2] sm:$0xff]  ;;  %v195_v6 = vpack.c.bf16 %v59_v4, %v58_v2  ;;  %v55_v7 = vld [vmem:[#allocation2 + $0x8] sm:$0xff]  ;;  %s271_s23 = scalar_lea.vmem %s159_s22, 256  ;;  %p276_p11 = scmp.lt.s32.totalorder %s159_s22, %s159_s22 }
  0x3a   :  { %188 = vmatprep.mubr.msk.f32.mxu0 %vm67_vm0, %v54_v5  ;;  %192 = vmatprep.subr.bf16.mxu0 %v191_v3  ;;  %p272_p10 = scmp.ne.s32.totalorder %s159_s22, %s271_s23  ;;  %p277_p12 = scmp.lt.s32.totalorder %s271_s23, %s271_s23 }
  0x3b   :  { %194 = vmatpush3.bf16.msra.mxu0 %v191_v3 }
  0x3c   :  { %196 = vmatprep.subr.bf16.mxu0 %v195_v6  ;;  %p278_p13 = por %p277_p12, %p276_p11 }
  0x3e   :  { %p279_p0 = pnand %p278_p13, %p272_p10 }
  0x3f   :  { %198 = vmatpush3.bf16.msra.mxu0 %v195_v6 }
  0x42   :  { %189 = vmatmul.mubr.msk.f32.vlgmr.msra.gmra.mrb[0].mxu0 %vm67_vm0, %v55_v7 }
 0x115   :  { %v190_v9 = vpop.f32.mrb[0].mxu0 }
 0x116   :  { %v146_v10 = vadd.f32 %v190_v9, %v171_v8  ;;  %v140_v11 = vpop.f32.mrb[1].mxu0 }
 0x117   :  { %v141_v12 = vadd.f32 %v171_v8, %v140_v11 }
 0x118   :  { %v150_v13 = vmax.f32 %v146_v10, 0.0 }
 0x119   :  { %v149_v14 = vmax.f32 %v141_v12, 0.0 }
 0x11a   :  { %152 = vst.msk [vmem:[#allocation8 + $0x8] sm:$0xff] %vm67_vm0, %v150_v13 }
 0x11b   :  { %151 = vst.msk [vmem:[#allocation8] sm:$0xff] %vm67_vm0, %v149_v14 }
 0x11c   :  { %282 = shalt.err (!%p279_p0)
}
 0x11d   :  { %s283_s28 = scalar_lea.hbm %s396_s3, 256 }
 0x11e   :  { %p284_p1 = scmp.ne.s32.totalorder %s396_s3, %s283_s28  ;;  %p287_p2 = scmp.lt.u32.totalorder %s283_s28, %s396_s3 }
 0x120   :  { %p289_p3 = pnand %p287_p2, %p284_p1 }
 0x122   :  { %292 = shalt.err (!%p289_p3)
}
 0x123   :  { %164 = dma.vmem_to_hbm [thread:$0]  %s159_s22, 256, %s396_s3, [#allocation4], %s301_s24, %s301_s24, %s302_s25  }
 0x124   :  { %297 = dma.done.wait [#allocation4], 256  }
 0x125   :  { %298 = vsyncadd [#allocation4], 4294967040 }
 0x126   :  { %168 = vsyncpa [#allocation3], 1 }
 0x127   :  { %169 = vsyncpa [#allocation6], 1 }
 0x128   :  { %170 = vsyncpa [#allocation4], 1 }

// kernel: forward.24
= control target key start
LH: loop header
LB: loop body
LE: loop exit
PB: predicated region body
PF: predicated region fallthrough
CT: control target
= control target key end

     0   :  { %10 = vsyncpa [#allocation3], 0  ;;  %s780_s0 = inlined_call_operand.hbm [shape: f32[56,16], index: 0, kind: input, shape index: {}]   ;;  %s781_s1 = inlined_call_operand.hbm [shape: f32[1,16], index: 1, kind: input, shape index: {}]   ;;  %s782_s2 = inlined_call_operand.hbm [shape: f32[1,16], index: 2, kind: input, shape index: {}]   ;;  %s783_s3 = inlined_call_operand.hbm [shape: f32[16,16], index: 3, kind: input, shape index: {}]   ;;  %s784_s4 = inlined_call_operand.hbm [shape: f32[1,16], index: 4, kind: input, shape index: {}]   ;;  %s785_s5 = inlined_call_operand.hbm [shape: f32[56,16], index: 5, kind: output, shape index: {}]  }
   0x1   :  { %11 = vsyncpa [#allocation6], 0 }
   0x2   :  { %12 = vsyncpa [#allocation9], 0 }
   0x3   :  { %13 = vsyncpa [#allocation4], 0  ;;  %s581_s18 = smov [#allocation5]   ;;  %s441_s22 = scalar_lea.hbm %s781_s1, 16 }
   0x4   :  { %s32_s19 = sshll.u32 %s581_s18, 4  ;;  %p442_p0 = scmp.ne.s32.totalorder %s781_s1, %s441_s22  ;;  %s33_s19 = int_to_ptr.vmem [resolvable:$true] %s32_s19 }
   0x5   :  { %p445_p1 = scmp.lt.u32.totalorder %s441_s22, %s781_s1 }
   0x7   :  { %p447_p2 = pnand %p445_p1, %p442_p0 }
   0x9   :  { %450 = shalt.err (!%p447_p2)
}
   0xa   :  { %s451_s27 = scalar_lea.vmem %s33_s19, 16  ;;  %s455_s28 = scalar_lea.vmem %s33_s19, 32 }
   0xb   :  { %p452_p3 = scmp.ne.s32.totalorder %s33_s19, %s451_s27  ;;  %p456_p4 = scmp.lt.s32.totalorder %s33_s19, %s33_s19 }
   0xc   :  { %p457_p5 = scmp.lt.s32.totalorder %s455_s28, %s451_s27 }
   0xe   :  { %p458_p6 = por %p457_p5, %p456_p4 }
  0x10   :  { %p459_p7 = pnand %p458_p6, %p452_p3 }
  0x12   :  { %462 = shalt.err (!%p459_p7)
}
  0x13   :  { %35 = dma.hbm_to_vmem [thread:$0]  %s781_s1, 16, %s33_s19, [#allocation6]  }
  0x14   :  { %s582_s6 = smov [#allocation8]   ;;  %s583_s8 = smov [#allocation2]  }
  0x15   :  { %s51_s7 = sshll.u32 %s582_s6, 4  ;;  %s19_s9 = sshll.u32 %s583_s8, 4  ;;  %s52_s7 = int_to_ptr.vmem [resolvable:$true] %s51_s7  ;;  %s20_s9 = int_to_ptr.vmem [resolvable:$true] %s19_s9 }
  0x16   :  { %s463_s12 = scalar_lea.hbm %s783_s3, 256 }
  0x17   :  { %p464_p8 = scmp.ne.s32.totalorder %s783_s3, %s463_s12  ;;  %p467_p9 = scmp.lt.u32.totalorder %s463_s12, %s783_s3 }
  0x19   :  { %p469_p10 = pnand %p467_p9, %p464_p8 }
  0x1b   :  { %472 = shalt.err (!%p469_p10)
}
  0x1c   :  { %s473_s1 = scalar_lea.vmem %s52_s7, 256  ;;  %p478_p12 = scmp.lt.s32.totalorder %s52_s7, %s52_s7 }
  0x1d   :  { %p474_p11 = scmp.ne.s32.totalorder %s52_s7, %s473_s1  ;;  %p479_p13 = scmp.lt.s32.totalorder %s473_s1, %s473_s1 }
  0x1f   :  { %p480_p0 = por %p479_p13, %p478_p12 }
  0x21   :  { %p481_p1 = pnand %p480_p0, %p474_p11 }
  0x23   :  { %484 = shalt.err (!%p481_p1)
}
  0x24   :  { %s584_s17 = smov 128   ;;  %s585_s18 = smov 8  }
  0x25   :  { %57 = dma.hbm_to_vmem [thread:$0]  %s783_s3, 256, %s52_s7, [#allocation9], %s584_s17, %s584_s17, %s585_s18  }
  0x26   :  { %s485_s23 = scalar_lea.hbm %s780_s0, 896 }
  0x27   :  { %p486_p2 = scmp.ne.s32.totalorder %s780_s0, %s485_s23  ;;  %p489_p3 = scmp.lt.u32.totalorder %s485_s23, %s780_s0 }
  0x29   :  { %p491_p4 = pnand %p489_p3, %p486_p2 }
  0x2b   :  { %494 = shalt.err (!%p491_p4)
}
  0x2c   :  { %s495_s28 = scalar_lea.vmem %s20_s9, 896  ;;  %p500_p6 = scmp.lt.s32.totalorder %s20_s9, %s20_s9 }
  0x2d   :  { %p496_p5 = scmp.ne.s32.totalorder %s20_s9, %s495_s28  ;;  %p501_p7 = scmp.lt.s32.totalorder %s495_s28, %s495_s28 }
  0x2f   :  { %p502_p8 = por %p501_p7, %p500_p6 }
  0x31   :  { %p503_p9 = pnand %p502_p8, %p496_p5 }
  0x33   :  { %506 = shalt.err (!%p503_p9)
}
  0x34   :  { %25 = dma.hbm_to_vmem [thread:$0]  %s780_s0, 896, %s20_s9, [#allocation3], %s584_s17, %s584_s17, %s585_s18  }
  0x35   :  { %s586_s30 = smov [#allocation7]   ;;  %s587_s7 = smov [#allocation10]  }
  0x36   :  { %s42_s6 = sshll.u32 %s586_s30, 4  ;;  %s64_s8 = sshll.u32 %s587_s7, 4  ;;  %s43_s6 = int_to_ptr.vmem [resolvable:$true] %s42_s6  ;;  %s65_s8 = int_to_ptr.vmem [resolvable:$true] %s64_s8 }
  0x37   :  { %s507_s12 = scalar_lea.hbm %s782_s2, 16 }
  0x38   :  { %p508_p10 = scmp.ne.s32.totalorder %s782_s2, %s507_s12  ;;  %p511_p11 = scmp.lt.u32.totalorder %s507_s12, %s782_s2 }
  0x3a   :  { %p513_p12 = pnand %p511_p11, %p508_p10 }
  0x3c   :  { %516 = shalt.err (!%p513_p12)
}
  0x3d   :  { %s517_s0 = scalar_lea.vmem %s43_s6, 16  ;;  %s521_s9 = scalar_lea.vmem %s43_s6, 32 }
  0x3e   :  { %p518_p13 = scmp.ne.s32.totalorder %s43_s6, %s517_s0  ;;  %p522_p0 = scmp.lt.s32.totalorder %s43_s6, %s43_s6 }
  0x3f   :  { %p523_p1 = scmp.lt.s32.totalorder %s521_s9, %s517_s0 }
  0x41   :  { %p524_p2 = por %p523_p1, %p522_p0 }
  0x43   :  { %p525_p3 = pnand %p524_p2, %p518_p13 }
  0x45   :  { %528 = shalt.err (!%p525_p3)
}
  0x46   :  { %45 = dma.hbm_to_vmem [thread:$0]  %s782_s2, 16, %s43_s6, [#allocation6]  }
  0x47   :  { %s529_s22 = scalar_lea.hbm %s784_s4, 16 }
  0x48   :  { %p530_p4 = scmp.ne.s32.totalorder %s784_s4, %s529_s22  ;;  %p533_p5 = scmp.lt.u32.totalorder %s529_s22, %s784_s4 }
  0x4a   :  { %p535_p6 = pnand %p533_p5, %p530_p4 }
  0x4c   :  { %538 = shalt.err (!%p535_p6)
}
  0x4d   :  { %s539_s27 = scalar_lea.vmem %s65_s8, 16  ;;  %s543_s28 = scalar_lea.vmem %s65_s8, 32 }
  0x4e   :  { %p540_p7 = scmp.ne.s32.totalorder %s65_s8, %s539_s27  ;;  %p544_p8 = scmp.lt.s32.totalorder %s65_s8, %s65_s8 }
  0x4f   :  { %p545_p9 = scmp.lt.s32.totalorder %s543_s28, %s539_s27 }
  0x51   :  { %p546_p10 = por %p545_p9, %p544_p8 }
  0x53   :  { %p547_p11 = pnand %p546_p10, %p540_p7 }
  0x55   :  { %550 = shalt.err (!%p547_p11)
}
  0x56   :  { %67 = dma.hbm_to_vmem [thread:$0]  %s784_s4, 16, %s65_s8, [#allocation9]  }
  0x57   :  { %573 = dma.done.wait [#allocation3], 896  }
  0x58   :  { %574 = vsyncadd [#allocation3], 4294966400 }
  0x59   :  { %575 = dma.done.wait [#allocation6], 32  }
  0x5a   :  { %576 = vsyncadd [#allocation6], 4294967264 }
  0x5b   :  { %577 = dma.done.wait [#allocation9], 272  }
  0x5c   :  { %578 = vsyncadd [#allocation9], 4294967024  ;;  %vm90_vm0 = vcmask 130048   ;;  %v83_v0 = vld [vmem:[#allocation2] sm:$0xff]  ;;  %v84_v2 = vld [vmem:[#allocation2 + $0x8] sm:$0xff]  ;;  %v588_v52 = vmov 0.0|0.0  }
  0x5d   :  { %v87_v1 = vld [vmem:[#allocation2 + $0x20] sm:$0xff]  ;;  %v91_v3 = vsel %vm90_vm0, %v83_v0, 0.0  ;;  %v85_v5 = vld [vmem:[#allocation2 + $0x10] sm:$0xff]  ;;  %v94_v6 = vsel %vm90_vm0, %v84_v2, 0.0  ;;  %v88_v8 = vld [vmem:[#allocation2 + $0x28] sm:$0xff]  ;;  %411 = vmatprep.subr.bf16.mxu0 %v588_v52  ;;  %vm589_vm1 = vmmov 0   ;;  %414 = vmatprep.subr.bf16.mxu1 %v588_v52 }
  0x5e   :  { %v103_v4 = vsel %vm90_vm0, %v87_v1, 0.0  ;;  %92 = vadd.xlane.f32.xlu0 %v91_v3  ;;  %v97_v7 = vsel %vm90_vm0, %v85_v5, 0.0  ;;  %v86_v9 = vld [vmem:[#allocation2 + $0x18] sm:$0xff]  ;;  %v106_v10 = vsel %vm90_vm0, %v88_v8, 0.0  ;;  %v89_v12 = vld [vmem:[#allocation2 + $0x30] sm:$0xff]  ;;  %v212_v50 = vld [vmem:[#allocation8 + $0x8] sm:$0xff] }
  0x5f   :  { %104 = vadd.xlane.f32.xlu1 %v103_v4  ;;  %v100_v11 = vsel %vm90_vm0, %v86_v9, 0.0  ;;  %v109_v13 = vsel %vm90_vm0, %v89_v12, 0.0  ;;  %v211_v49 = vld [vmem:[#allocation8] sm:$0xff]  ;;  %v590_v53 = vmov 0.0   ;;  %s591_s4 = smov [#allocation11]  }
  0x60   :  { %v412_v51 = vpack.c.bf16 %v212_v50, %v211_v49  ;;  %390 = vmatprep.mubr.msk.f32.mxu0 %vm589_vm1, %v590_v53  ;;  %402 = vmatprep.mubr.msk.f32.mxu1 %vm589_vm1, %v590_v53  ;;  %s353_s29 = sshll.u32 %s591_s4, 4  ;;  %s354_s29 = int_to_ptr.vmem [resolvable:$true] %s353_s29 }
  0x61   :  { %s551_s30 = scalar_lea.vmem %s354_s29, 896  ;;  %p556_p13 = scmp.lt.s32.totalorder %s354_s29, %s354_s29 }
  0x62   :  { %95 = vadd.xlane.f32.xlu0 %v94_v6  ;;  %413 = vmatpush3.bf16.msra.mxu0 %v412_v51  ;;  %p552_p12 = scmp.ne.s32.totalorder %s354_s29, %s551_s30  ;;  %p557_p0 = scmp.lt.s32.totalorder %s551_s30, %s551_s30 }
  0x63   :  { %98 = vadd.xlane.f32.xlu1 %v97_v7  ;;  %415 = vmatpush3.bf16.msra.mxu1 %v412_v51 }
  0x64   :  { %p558_p1 = por %p557_p0, %p556_p13 }
  0x66   :  { %107 = vadd.xlane.f32.xlu0 %v106_v10  ;;  %p559_p2 = pnand %p558_p1, %p552_p12 }
  0x67   :  { %101 = vadd.xlane.f32.xlu1 %v100_v11 }
  0x6a   :  { %110 = vadd.xlane.f32.xlu0 %v109_v13 }
  0xeb   :  { %v93_v14 = vpop.xlane.xlu0 %92 }
  0xec   :  { %v105_v15 = vpop.xlane.xlu1 %104  ;;  %v113_v16 = vmul.f32 0.0625, %v93_v14  ;;  %v368_v14 = vld [vmem:[#allocation7] ss:$0 sm:$0xff] }
  0xed   :  { %v117_v17 = vmul.f32 0.0625, %v105_v15 }
  0xee   :  { %v695_v18 = vsub.f32 %v83_v0, %v113_v16 }
  0xef   :  { %v697_v19 = vsub.f32 %v87_v1, %v117_v17  ;;  %v96_v20 = vpop.xlane.xlu0 %95 }
  0xf0   :  { %v99_v21 = vpop.xlane.xlu1 %98  ;;  %v114_v22 = vmul.f32 0.0625, %v96_v20  ;;  %v127_v24 = vmul.f32 %v695_v18, %v695_v18 }
  0xf1   :  { %v115_v23 = vmul.f32 0.0625, %v99_v21  ;;  %v131_v25 = vmul.f32 %v697_v19, %v697_v19 }
  0xf2   :  { %v703_v26 = vsub.f32 %v84_v2, %v114_v22  ;;  %v134_v28 = vsel %vm90_vm0, %v127_v24, 0.0 }
  0xf3   :  { %v705_v27 = vsub.f32 %v85_v5, %v115_v23  ;;  %135 = vadd.xlane.f32.xlu1 %v134_v28  ;;  %v108_v29 = vpop.xlane.xlu0 %107  ;;  %v146_v31 = vsel %vm90_vm0, %v131_v25, 0.0 }
  0xf4   :  { %v102_v30 = vpop.xlane.xlu1 %101  ;;  %v118_v32 = vmul.f32 0.0625, %v108_v29  ;;  %v128_v34 = vmul.f32 %v703_v26, %v703_v26 }
  0xf5   :  { %v116_v33 = vmul.f32 0.0625, %v102_v30  ;;  %v129_v35 = vmul.f32 %v705_v27, %v705_v27 }
  0xf6   :  { %v713_v36 = vsub.f32 %v88_v8, %v118_v32  ;;  %v137_v38 = vsel %vm90_vm0, %v128_v34, 0.0 }
  0xf7   :  { %v715_v37 = vsub.f32 %v86_v9, %v116_v33  ;;  %147 = vadd.xlane.f32.xlu1 %v146_v31  ;;  %138 = vadd.xlane.f32.xlu0 %v137_v38  ;;  %v111_v39 = vpop.xlane.xlu0 %110  ;;  %v140_v41 = vsel %vm90_vm0, %v129_v35, 0.0 }
  0xf8   :  { %v119_v40 = vmul.f32 0.0625, %v111_v39  ;;  %v132_v42 = vmul.f32 %v713_v36, %v713_v36 }
  0xf9   :  { %v130_v43 = vmul.f32 %v715_v37, %v715_v37 }
  0xfa   :  { %v723_v44 = vsub.f32 %v89_v12, %v119_v40  ;;  %v149_v45 = vsel %vm90_vm0, %v132_v42, 0.0  ;;  %v367_v12 = vld [vmem:[#allocation5] ss:$0 sm:$0xff]  ;;  %v369_v42 = vld [vmem:[#allocation10] ss:$0 sm:$0xff] }
  0xfb   :  { %141 = vadd.xlane.f32.xlu0 %v140_v41  ;;  %150 = vadd.xlane.f32.xlu1 %v149_v45  ;;  %v143_v46 = vsel %vm90_vm0, %v130_v43, 0.0 }
  0xfc   :  { %v133_v47 = vmul.f32 %v723_v44, %v723_v44 }
  0xfe   :  { %v152_v48 = vsel %vm90_vm0, %v133_v47, 0.0 }
  0xff   :  { %144 = vadd.xlane.f32.xlu0 %v143_v46  ;;  %153 = vadd.xlane.f32.xlu1 %v152_v48 }
 0x180   :  { %v136_v54 = vpop.xlane.xlu1 %135 }
 0x181   :  { %v155_v55 = vmul.f32 0.0625, %v136_v54 }
 0x183   :  { %v162_v56 = vadd.f32 1e-05, %v155_v55 }
 0x184   :  { %v148_v57 = vpop.xlane.xlu1 %147  ;;  %v139_v58 = vpop.xlane.xlu0 %138 }
 0x185   :  { %427 = vrsqrt.f32 %v162_v56  ;;  %v159_v59 = vmul.f32 0.0625, %v148_v57  ;;  %v156_v60 = vmul.f32 0.0625, %v139_v58 }
 0x187   :  { %v166_v61 = vadd.f32 1e-05, %v159_v59  ;;  %v163_v62 = vadd.f32 1e-05, %v156_v60 }
 0x188   :  { %v151_v63 = vpop.xlane.xlu1 %150  ;;  %v142_v0 = vpop.xlane.xlu0 %141 }
 0x189   :  { %429 = vrsqrt.f32 %v166_v61  ;;  %v160_v1 = vmul.f32 0.0625, %v151_v63  ;;  %v157_v2 = vmul.f32 0.0625, %v142_v0 }
 0x18a   :  { %431 = vrsqrt.f32 %v163_v62 }
 0x18b   :  { %v167_v3 = vadd.f32 1e-05, %v160_v1  ;;  %v164_v4 = vadd.f32 1e-05, %v157_v2 }
 0x18c   :  { %v154_v5 = vpop.xlane.xlu1 %153  ;;  %v145_v6 = vpop.xlane.xlu0 %144 }
 0x18d   :  { %433 = vrsqrt.f32 %v167_v3  ;;  %v161_v7 = vmul.f32 0.0625, %v154_v5  ;;  %v158_v8 = vmul.f32 0.0625, %v145_v6 }
 0x18e   :  { %435 = vrsqrt.f32 %v164_v4 }
 0x18f   :  { %v428_v9 = vpop.eup %427  ;;  %v168_v10 = vadd.f32 1e-05, %v161_v7  ;;  %v165_v11 = vadd.f32 1e-05, %v158_v8 }
 0x190   :  { %v176_v13 = vmul.f32 %v428_v9, %v695_v18 }
 0x191   :  { %437 = vrsqrt.f32 %v168_v10 }
 0x192   :  { %439 = vrsqrt.f32 %v165_v11  ;;  %v190_v15 = vmul.f32 %v367_v12, %v176_v13 }
 0x193   :  { %v430_v16 = vpop.eup %429 }
 0x194   :  { %v432_v17 = vpop.eup %431  ;;  %v204_v20 = vadd.f32 %v368_v14, %v190_v15  ;;  %v180_v21 = vmul.f32 %v430_v16, %v697_v19 }
 0x195   :  { %v177_v22 = vmul.f32 %v432_v17, %v703_v26 }
 0x196   :  { %391 = vmatmul.mubr.msk.f32.vlgmr.msra.gmra.mrb[0].mxu0 %vm90_vm0, %v204_v20  ;;  %v194_v23 = vmul.f32 %v367_v12, %v180_v21 }
 0x197   :  { %v434_v24 = vpop.eup %433  ;;  %393 = vmatprep.mubr.msk.f32.mxu0 %vm589_vm1, %v590_v53  ;;  %v191_v25 = vmul.f32 %v367_v12, %v177_v22 }
 0x198   :  { %v436_v18 = vpop.eup %435  ;;  %v208_v28 = vadd.f32 %v368_v14, %v194_v23  ;;  %v181_v29 = vmul.f32 %v434_v24, %v713_v36 }
 0x199   :  { %v205_v30 = vadd.f32 %v368_v14, %v191_v25  ;;  %v178_v31 = vmul.f32 %v436_v18, %v705_v27 }
 0x19a   :  { %403 = vmatmul.mubr.msk.f32.vlgmr.msra.gmra.mrb[0].mxu1 %vm90_vm0, %v208_v28  ;;  %v195_v19 = vmul.f32 %v367_v12, %v181_v29 }
 0x19b   :  { %v438_v32 = vpop.eup %437  ;;  %394 = vmatmul.mubr.msk.f32.gmra.mrb[2].mxu0 %vm90_vm0, %v205_v30  ;;  %405 = vmatprep.mubr.msk.f32.mxu1 %vm589_vm1, %v590_v53  ;;  %v192_v26 = vmul.f32 %v367_v12, %v178_v31 }
 0x19c   :  { %v440_v33 = vpop.eup %439  ;;  %396 = vmatprep.mubr.msk.f32.mxu0 %vm589_vm1, %v590_v53  ;;  %v209_v34 = vadd.f32 %v368_v14, %v195_v19  ;;  %v182_v35 = vmul.f32 %v438_v32, %v723_v44 }
 0x19d   :  { %v206_v36 = vadd.f32 %v368_v14, %v192_v26  ;;  %v179_v27 = vmul.f32 %v440_v33, %v715_v37 }
 0x19e   :  { %406 = vmatmul.mubr.msk.f32.gmra.mrb[2].mxu1 %vm90_vm0, %v209_v34  ;;  %v196_v38 = vmul.f32 %v367_v12, %v182_v35 }
 0x19f   :  { %397 = vmatmul.mubr.msk.f32.gmra.mrb[4].mxu0 %vm90_vm0, %v206_v36  ;;  %408 = vmatprep.mubr.msk.f32.mxu1 %vm589_vm1, %v590_v53  ;;  %v193_v39 = vmul.f32 %v367_v12, %v179_v27 }
 0x1a0   :  { %399 = vmatprep.mubr.msk.f32.mxu0 %vm589_vm1, %v590_v53  ;;  %v210_v40 = vadd.f32 %v368_v14, %v196_v38 }
 0x1a1   :  { %v207_v41 = vadd.f32 %v368_v14, %v193_v39 }
 0x1a2   :  { %409 = vmatmul.mubr.msk.f32.gmra.mrb[4].mxu1 %vm90_vm0, %v210_v40 }
 0x1a3   :  { %400 = vmatmul.mubr.msk.f32.gmra.mrb[6].mxu0 %vm90_vm0, %v207_v41 }
 0x269   :  { %v307_v37 = vpop.f32.mrb[0].mxu0 }
 0x26a   :  { %v308_v43 = vadd.f32 %v369_v42, %v307_v37  ;;  %v392_v44 = vpop.f32.mrb[1].mxu0 }
 0x26c   :  { %341 = vst.msk [vmem:[#allocation11] sm:$0xff] %vm90_vm0, %v308_v43 }
 0x26d   :  { %v327_v45 = vpop.f32.mrb[0].mxu1 }
 0x26e   :  { %v312_v46 = vpop.f32.mrb[2].mxu0  ;;  %v328_v47 = vadd.f32 %v369_v42, %v327_v45  ;;  %v404_v48 = vpop.f32.mrb[1].mxu1 }
 0x26f   :  { %v313_v49 = vadd.f32 %v369_v42, %v312_v46  ;;  %v395_v50 = vpop.f32.mrb[3].mxu0 }
 0x270   :  { %345 = vst.msk [vmem:[#allocation11 + $0x20] sm:$0xff] %vm90_vm0, %v328_v47 }
 0x271   :  { %342 = vst.msk [vmem:[#allocation11 + $0x8] sm:$0xff] %vm90_vm0, %v313_v49  ;;  %v332_v51 = vpop.f32.mrb[2].mxu1 }
 0x272   :  { %v317_v52 = vpop.f32.mrb[4].mxu0  ;;  %v333_v53 = vadd.f32 %v369_v42, %v332_v51  ;;  %v407_v54 = vpop.f32.mrb[3].mxu1 }
 0x273   :  { %v318_v55 = vadd.f32 %v369_v42, %v317_v52  ;;  %v398_v56 = vpop.f32.mrb[5].mxu0 }
 0x274   :  { %346 = vst.msk [vmem:[#allocation11 + $0x28] sm:$0xff] %vm90_vm0, %v333_v53 }
 0x275   :  { %343 = vst.msk [vmem:[#allocation11 + $0x10] sm:$0xff] %vm90_vm0, %v318_v55  ;;  %v337_v57 = vpop.f32.mrb[4].mxu1 }
 0x276   :  { %v322_v58 = vpop.f32.mrb[6].mxu0  ;;  %v338_v59 = vadd.f32 %v369_v42, %v337_v57  ;;  %v410_v60 = vpop.f32.mrb[5].mxu1 }
 0x277   :  { %v323_v61 = vadd.f32 %v369_v42, %v322_v58  ;;  %v401_v62 = vpop.f32.mrb[7].mxu0 }
 0x278   :  { %347 = vst.msk [vmem:[#allocation11 + $0x30] sm:$0xff] %vm90_vm0, %v338_v59 }
 0x279   :  { %344 = vst.msk [vmem:[#allocation11 + $0x18] sm:$0xff] %vm90_vm0, %v323_v61 }
 0x27a   :  { %562 = shalt.err (!%p559_p2)
}
 0x27b   :  { %s563_s8 = scalar_lea.hbm %s785_s5, 896 }
 0x27c   :  { %p564_p3 = scmp.ne.s32.totalorder %s785_s5, %s563_s8  ;;  %p567_p4 = scmp.lt.u32.totalorder %s563_s8, %s785_s5 }
 0x27e   :  { %p569_p5 = pnand %p567_p4, %p564_p3 }
 0x280   :  { %572 = shalt.err (!%p569_p5)
}
 0x281   :  { %359 = dma.vmem_to_hbm [thread:$0]  %s354_s29, 896, %s785_s5, [#allocation4], %s584_s17, %s584_s17, %s585_s18  }
 0x282   :  { %579 = dma.done.wait [#allocation4], 896  }
 0x283   :  { %580 = vsyncadd [#allocation4], 4294966400 }
 0x284   :  { %363 = vsyncpa [#allocation3], 1 }
 0x285   :  { %364 = vsyncpa [#allocation6], 1 }
 0x286   :  { %365 = vsyncpa [#allocation9], 1 }
 0x287   :  { %366 = vsyncpa [#allocation4], 1 }

// kernel: forward.28
= control target key start
LH: loop header
LB: loop body
LE: loop exit
PB: predicated region body
PF: predicated region fallthrough
CT: control target
= control target key end

     0   :  { %s2703_s0 = inlined_call_operand.hbm [shape: f32[2,5,32], index: 0, kind: input, shape index: {}, may-alias: {0,1}]   ;;  %s2704_s1 = inlined_call_operand.hbm [shape: f32[2,5,32], index: 1, kind: input, shape index: {}, may-alias: {0,1}]   ;;  %s2705_s2 = inlined_call_operand.hbm [shape: f32[2,5,5,16], index: 2, kind: input, shape index: {}]   ;;  %s2706_s3 = inlined_call_operand.hbm [shape: f32[32,48], index: 3, kind: input, shape index: {}]   ;;  %s2707_s4 = inlined_call_operand.hbm [shape: f32[32,48], index: 4, kind: input, shape index: {}]   ;;  %s2708_s5 = inlined_call_operand.hbm [shape: f32[16,48], index: 5, kind: input, shape index: {}]   ;;  %s2709_s6 = inlined_call_operand.hbm [shape: f32[1,48], index: 6, kind: input, shape index: {}]   ;;  %s2710_s7 = inlined_call_operand.hbm [shape: f32[1,48], index: 7, kind: input, shape index: {}]   ;;  %s2711_s8 = inlined_call_operand.hbm [shape: f32[2,5,5,16], index: 8, kind: output, shape index: {}]  }
   0x1   :  { %2739 = sst [smem:[#allocation31_spill]] %s2704_s1 }
   0x2   :  { %2740 = sst [smem:[#allocation32_spill]] %s2706_s3 }
   0x3   :  { %2741 = sst [smem:[#allocation33_spill]] %s2708_s5 }
   0x4   :  { %2742 = sst [smem:[#allocation34_spill]] %s2711_s8 }
   0x5   :  { %13 = vsyncpa [#allocation3], 0 }
   0x6   :  { %15 = vsyncpa [#allocation3 + $0x1], 0 }
   0x7   :  { %16 = vsyncpa [#allocation6], 0 }
   0x8   :  { %18 = vsyncpa [#allocation6 + $0x1], 0 }
   0x9   :  { %19 = vsyncpa [#allocation9], 0 }
   0xa   :  { %20 = vsyncpa [#allocation12], 0 }
   0xb   :  { %21 = vsyncpa [#allocation15], 0 }
   0xc   :  { %22 = vsyncpa [#allocation4], 0 }
   0xd   :  { %24 = vsyncpa [#allocation4 + $0x1], 0  ;;  %s2185_s27 = smov 0   ;;  %s2187_s28 = smov 0  }
   0xe   :  { %s2189_s29 = smov 0   ;;  %s2191_s30 = smov 0  }
   0xf   :  { %s2193_s9 = smov 0   ;;  %s2195_s10 = smov 0  }
  0x10 LB: > { %2743 = sst [smem:[#allocation23_spill]] %s2097_s27  ;;  %s2216_s11 = sadd.s32 4294967295, %s2117_s10   ;;  %s2117_s10 = sphi %s2195_s10, %s30_s10   ;;  %s2113_s9 = sphi %s2193_s9, %s2795_s9   ;;  %s2109_s30 = sphi %s2191_s30, %s2794_s30   ;;  %s2105_s29 = sphi %s2189_s29, %s2793_s29   ;;  %s2101_s28 = sphi %s2187_s28, %s2792_s28   ;;  %s2097_s27 = sphi %s2185_s27, %s2791_s27  }
  0x11   : > { %2744 = sst [smem:[#allocation24_spill]] %s2105_s29  ;;  %p1474_p0 = scmp.ge.s32.totalorder %s2117_s10, 1 }
  0x12   : > { %2745 = sst [smem:[#allocation25_spill]] %s2109_s30  ;;  %p2723_p1 = scmp.eq.s32.totalorder %s2216_s11, 0 }
  0x13   : > { %2746 = sst [smem:[#allocation26_spill]] %s2117_s10  ;;  %p262_p2 = scmp.lt.s32.totalorder %s2117_s10, 3 }
  0x14   : > { %s2119_s13 = smov [#allocation8]   ;;  %s2120_s16 = smov [#allocation11]  }
  0x15   : > { %p2221_p3 = pnand %p1474_p0, %p262_p2  ;;  %s274_s14 = sshll.u32 %s2119_s13, 4  ;;  %s2225_s14 = int_to_ptr.vmem [resolvable:$true] %s274_s14 }
  0x16   : > { %s300_s17 = sshll.u32 %s2120_s16, 4  ;;  %s2749_s3 = sld [smem:[#allocation32_spill]]  ;;  %s2236_s17 = int_to_ptr.vmem [resolvable:$true] %s300_s17 }
  0x17   : > { %s2747_s12 = scalar_select %p2221_p3, 1, 0 }
  0x18   : > { %p1652_p4 = pneg %p2221_p3 }
  0x1a   : > { %p2232_p6 = pnand %p1652_p4, %p2723_p1 }
  0x1c   : > { %s2748_s15 = scalar_select %p2232_p6, 1, 0 }
  0x1d   : > { %s1789_s20 = scalar_lea.hbm %s2749_s3, 512  ;;  %p2246_p8 = pneg %p2232_p6 }
  0x1e   : > { %p1790_p7 = scmp.ne.s32.totalorder %s2749_s3, %s1789_s20  ;;  %p1796_p11 = scmp.lt.u32.totalorder %s1789_s20, %s2749_s3 }
  0x1f   : > { %s2750_s23 = scalar_select %p2246_p8, 1, 0 }
  0x20   : > { %p1792_p9 = pnand %p2246_p8, %p1790_p7 }
  0x22   : > { %p1793_p10 = pneg %p1792_p9 }
  0x24   : > { %p1798_p12 = pnand %p1796_p11, %p1793_p10 }
  0x26   : > { %1801 = shalt.err (!%p1798_p12)
}
  0x27   : > { %s1802_s26 = scalar_lea.vmem %s2225_s14, 512  ;;  %p1810_p4 = scmp.lt.s32.totalorder %s2225_s14, %s2225_s14 }
  0x28   : > { %p1803_p13 = scmp.ne.s32.totalorder %s2225_s14, %s1802_s26  ;;  %p1811_p5 = scmp.lt.s32.totalorder %s1802_s26, %s1802_s26 }
  0x2a   : > { %p1805_p0 = pnand %p1803_p13, %p2246_p8  ;;  %p1812_p7 = por %p1811_p5, %p1810_p4 }
  0x2c   : > { %p1806_p2 = pneg %p1805_p0 }
  0x2e   : > { %p1813_p9 = pnand %p1812_p7, %p1806_p2 }
  0x30   : > { %1816 = shalt.err (!%p1813_p9)
}
  0x31   : > { %s2713_s13 = smov 128   ;;  %s2715_s16 = smov 8  }
  0x32   : > { %1655 = dma.hbm_to_vmem [thread:$0]  (!%p2232_p6), %s2749_s3, 512, %s2225_s14, [#allocation9], %s2713_s13, %s2713_s13, %s2715_s16  }
  0x33   : > { %s2751_s5 = sld [smem:[#allocation33_spill]] }
  0x39   : > { %s1817_s22 = scalar_lea.hbm %s2751_s5, 256 }
  0x3a   : > { %p1818_p5 = scmp.ne.s32.totalorder %s2751_s5, %s1817_s22  ;;  %p1824_p12 = scmp.lt.u32.totalorder %s1817_s22, %s2751_s5 }
  0x3c   : > { %p1820_p10 = pnand %p1818_p5, %p2246_p8 }
  0x3e   : > { %p1821_p11 = pneg %p1820_p10 }
  0x40   : > { %p1826_p13 = pnand %p1824_p12, %p1821_p11 }
  0x42   : > { %1829 = shalt.err (!%p1826_p13)
}
  0x43   : > { %s1830_s14 = scalar_lea.vmem %s2236_s17, 256  ;;  %p1838_p7 = scmp.lt.s32.totalorder %s2236_s17, %s2236_s17 }
  0x44   : > { %p1831_p0 = scmp.ne.s32.totalorder %s2236_s17, %s1830_s14  ;;  %p1839_p9 = scmp.lt.s32.totalorder %s1830_s14, %s1830_s14 }
  0x46   : > { %p1833_p2 = pnand %p1831_p0, %p2246_p8  ;;  %p1840_p5 = por %p1839_p9, %p1838_p7 }
  0x48   : > { %p1834_p4 = pneg %p1833_p2 }
  0x4a   : > { %p1841_p10 = pnand %p1840_p5, %p1834_p4 }
  0x4c   : > { %1844 = shalt.err (!%p1841_p10)
}
  0x4d   : > { %1661 = dma.hbm_to_vmem [thread:$0]  (!%p2232_p6), %s2751_s5, 256, %s2236_s17, [#allocation12], %s2713_s13, %s2713_s13, %s2715_s16  }
  0x4e   : > { %s1473_s19 = sadd.s32 4294967294, %s2117_s10   ;;  %s42_s20 = sadd.s32 1, %s2113_s9 }
  0x4f   : > { %p44_p11 = scmp.ge.s32.totalorder %s42_s20, 2  ;;  %s51_s21 = sadd.s32 1, %s2105_s29 }
  0x50   : > { %p58_p12 = scmp.ne.s32.totalorder %s2105_s29, %s2101_s28  ;;  %p59_p13 = scmp.eq.s32.totalorder %s2117_s10, 0 }
  0x51   : > { %s2797_s20 = smov (%p44_p11, %s42_s20), 0  ;;  %p64_p2 = scmp.ne.s32.totalorder %s2101_s28, %s2097_s27 }
  0x52   : > { %2752 = sst [smem:[#allocation27_spill]] %s2797_s20  ;;  %p2304_p0 = por %p59_p13, %p58_p12 }
  0x53   : > { %s46_s17 = ssub.s32 %s2113_s9, %s2797_s20  ;;  %p249_p4 = scmp.eq.s32.totalorder %s2216_s11, 1 }
  0x54   : > { %p49_p7 = scmp.eq.s32.totalorder %s46_s17, 0  ;;  %p2315_p9 = por %p2723_p1, %p64_p2 }
  0x55   : > { %p2319_p5 = por %p249_p4, %p58_p12  ;;  %p255_p10 = scmp.eq.s32.totalorder %s1473_s19, 1 }
  0x56   : > { %s2754_s24 = scalar_select %p2315_p9, 1, 0 }
  0x57   : > { %s2755_s25 = scalar_select %p2319_p5, 1, 0 }
  0x58   : > { %s2324_s26 = scalar_select %p49_p7, %s2105_s29, %s51_s21  }
  0x59   : > { %2756 = sst [smem:[#allocation28_spill]] %s2755_s25  ;;  %p2326_p11 = por %p255_p10, %p64_p2 }
  0x5a   : > { %2757 = sst [smem:[#allocation29_spill]] %s2324_s26  ;;  %p1687_p13 = scmp.lt.s32.totalorder %s2117_s10, 2 }
  0x5b   : > { %s2758_s14 = scalar_select %p2326_p11, 1, 0 }
  0x5c   : > { %s2332_s8 = sand.u32 1, %s2105_s29   ;;  %s2722_s18 = sshll.u32 %s2113_s9, 7 }
  0x5d   : > { %2759 = sst [smem:[#allocation30_spill]] %s2758_s14  ;;  %s2721_s17 = sshll.u32 %s2332_s8, 3 }
  0x5e   : > { %p2338_p12 = pnand %p1687_p13, %p2304_p0  ;;  %s355_s19 = sand.u32 1, %s2117_s10  }
  0x5f   : > { %s2761_s1 = sld [smem:[#allocation31_spill]]  ;;  %s359_s5 = scalar_lea.vmem [#allocation5], %s2721_s17 }
  0x60   : > { %s2760_s13 = scalar_select %p2338_p12, 1, 0 }
  0x61   : > { %s366_s20 = sshll.u32 %s359_s5, 4  ;;  %s1620_s22 = smul.u32 40, %s2332_s8  ;;  %s2352_s20 = int_to_ptr.vmem [resolvable:$true] %s366_s20 }
  0x62   : > { %s2355_s26 = scalar_lea.sflag [#allocation6], %s355_s19  ;;  %p2361_p2 = pneg %p2338_p12 }
  0x64   : > { %s2762_s10 = scalar_select %p2361_p2, 1, 0 }
  0x65   : > { %s2348_s3 = scalar_lea.hbm %s2761_s1, %s2722_s18  ;;  %s1850_s5 = scalar_lea.hbm %s2761_s1, 256 }
  0x66   : > { %s1845_s29 = scalar_lea.hbm %s2348_s3, 128  ;;  %p1851_p10 = scmp.lt.u32.totalorder %s2348_s3, %s2761_s1 }
  0x67   : > { %p1846_p0 = scmp.ne.s32.totalorder %s2348_s3, %s1845_s29  ;;  %p1852_p13 = scmp.lt.u32.totalorder %s1850_s5, %s1845_s29 }
  0x68   : > { %p1854_p11 = scmp.lt.u32.totalorder %s1845_s29, %s2348_s3 }
  0x69   : > { %p1848_p4 = pnand %p2361_p2, %p1846_p0  ;;  %p1853_p1 = por %p1852_p13, %p1851_p10 }
  0x6b   : > { %p1849_p7 = pneg %p1848_p4  ;;  %p1855_p5 = por %p1854_p11, %p1853_p1 }
  0x6d   : > { %p1856_p9 = pnand %p1855_p5, %p1849_p7 }
  0x6f   : > { %1859 = shalt.err (!%p1856_p9)
}
  0x70   : > { %s1860_s19 = scalar_lea.vmem %s2352_s20, 128  ;;  %s2123_s16 = smov [#allocation5]  }
  0x71   : > { %p1861_p0 = scmp.ne.s32.totalorder %s2352_s20, %s1860_s19  ;;  %s1865_s21 = sshll.u32 %s2123_s16, 4  ;;  %s1866_s21 = int_to_ptr.vmem [resolvable:$false] %s1865_s21 }
  0x72   : > { %s1867_s18 = scalar_lea.vmem %s1866_s21, 256  ;;  %p1868_p6 = scmp.lt.s32.totalorder %s2352_s20, %s1866_s21 }
  0x73   : > { %p1863_p4 = pnand %p1861_p0, %p2361_p2  ;;  %p1869_p8 = scmp.lt.s32.totalorder %s1867_s18, %s1860_s19 }
  0x75   : > { %p1864_p3 = pneg %p1863_p4  ;;  %p1870_p10 = por %p1869_p8, %p1868_p6 }
  0x77   : > { %p1871_p13 = pnand %p1870_p10, %p1864_p3 }
  0x79   : > { %1874 = shalt.err (!%p1871_p13)
}
  0x7a   : > { %1674 = dma.hbm_to_vmem [thread:$0]  (!%p2338_p12), %s2348_s3, 128, %s2352_s20, %s2355_s26  }
  0x7b   : > { %s377_s29 = scalar_lea.vmem [#allocation7], %s1620_s22  ;;  %s2124_s5 = smov [#allocation10]  }
  0x7c   : > { %s386_s17 = sshll.u32 %s377_s29, 4  ;;  %s287_s16 = sshll.u32 %s2124_s5, 4  ;;  %s2387_s17 = int_to_ptr.vmem [resolvable:$true] %s386_s17  ;;  %s288_s16 = int_to_ptr.vmem [resolvable:$true] %s287_s16 }
  0x7d   : > { %s1875_s18 = scalar_lea.hbm %s2707_s4, 512  ;;  %p2763_p3 = scmp.ne.s32.totalorder %s2750_s23, 0 }
  0x7e   : > { %p1876_p1 = scmp.ne.s32.totalorder %s2707_s4, %s1875_s18  ;;  %p1882_p9 = scmp.lt.u32.totalorder %s1875_s18, %s2707_s4 }
  0x80   : > { %p1878_p6 = pnand %p1876_p1, %p2763_p3 }
  0x82   : > { %p1879_p8 = pneg %p1878_p6 }
  0x84   : > { %p1884_p5 = pnand %p1882_p9, %p1879_p8 }
  0x86   : > { %1887 = shalt.err (!%p1884_p5)
}
  0x87   : > { %s1888_s22 = scalar_lea.vmem %s288_s16, 512  ;;  %p1896_p4 = scmp.lt.s32.totalorder %s288_s16, %s288_s16 }
  0x88   : > { %p1889_p11 = scmp.ne.s32.totalorder %s288_s16, %s1888_s22  ;;  %p1897_p10 = scmp.lt.s32.totalorder %s1888_s22, %s1888_s22 }
  0x8a   : > { %p1891_p7 = pnand %p1889_p11, %p2763_p3  ;;  %p1898_p13 = por %p1897_p10, %p1896_p4 }
  0x8c   : > { %p1892_p0 = pneg %p1891_p7 }
  0x8e   : > { %p1899_p12 = pnand %p1898_p13, %p1892_p0 }
  0x90   : > { %1902 = shalt.err (!%p1899_p12)
}
  0x91   : > { %p2764_p1 = scmp.ne.s32.totalorder %s2748_s15, 0  ;;  %s2765_s1 = smov 8  }
  0x92   : > { %s2766_s14 = smov 128   ;;  %s2125_s19 = smov [#allocation13]  }
  0x93   : > { %1658 = dma.hbm_to_vmem [thread:$0]  (!%p2764_p1), %s2707_s4, 512, %s288_s16, [#allocation9], %s2766_s14, %s2766_s14, %s2765_s1  }
  0x94   : > { %s314_s21 = sshll.u32 %s2125_s19, 4  ;;  %s2126_s18 = smov [#allocation14]   ;;  %s315_s21 = int_to_ptr.vmem [resolvable:$true] %s314_s21 }
  0x95   : > { %s325_s3 = sshll.u32 %s2126_s18, 4  ;;  %s1903_s27 = scalar_lea.hbm %s2709_s6, 16  ;;  %s2410_s3 = int_to_ptr.vmem [resolvable:$true] %s325_s3 }
  0x96   : > { %p1904_p12 = scmp.ne.s32.totalorder %s2709_s6, %s1903_s27  ;;  %p1910_p9 = scmp.lt.u32.totalorder %s1903_s27, %s2709_s6 }
  0x98   : > { %p1906_p6 = pnand %p1904_p12, %p2763_p3 }
  0x9a   : > { %p1907_p8 = pneg %p1906_p6 }
  0x9c   : > { %p1912_p5 = pnand %p1910_p9, %p1907_p8 }
  0x9e   : > { %1915 = shalt.err (!%p1912_p5)
}
  0x9f   : > { %s1916_s5 = scalar_lea.vmem %s315_s21, 16  ;;  %s1923_s19 = scalar_lea.vmem %s315_s21, 32 }
  0xa0   : > { %p1917_p11 = scmp.ne.s32.totalorder %s315_s21, %s1916_s5  ;;  %p1924_p4 = scmp.lt.s32.totalorder %s315_s21, %s315_s21 }
  0xa1   : > { %p1925_p10 = scmp.lt.s32.totalorder %s1923_s19, %s1916_s5 }
  0xa2   : > { %p1919_p7 = pnand %p1917_p11, %p2763_p3 }
  0xa3   : > { %p1926_p13 = por %p1925_p10, %p1924_p4 }
  0xa4   : > { %p1920_p0 = pneg %p1919_p7 }
  0xa6   : > { %p1927_p2 = pnand %p1926_p13, %p1920_p0 }
  0xa8   : > { %1930 = shalt.err (!%p1927_p2)
}
  0xa9   : > { %1664 = dma.hbm_to_vmem [thread:$0]  (!%p2764_p1), %s2709_s6, 16, %s315_s21, [#allocation12]  }
  0xaa   : > { %s1931_s20 = scalar_lea.hbm %s2710_s7, 16 }
  0xab   : > { %p1932_p12 = scmp.ne.s32.totalorder %s2710_s7, %s1931_s20  ;;  %p1938_p2 = scmp.lt.u32.totalorder %s1931_s20, %s2710_s7 }
  0xad   : > { %p1934_p6 = pnand %p1932_p12, %p2763_p3 }
  0xaf   : > { %p1935_p8 = pneg %p1934_p6 }
  0xb1   : > { %p1940_p9 = pnand %p1938_p2, %p1935_p8 }
  0xb3   : > { %1943 = shalt.err (!%p1940_p9)
}
  0xb4   : > { %s1944_s21 = scalar_lea.vmem %s2410_s3, 16  ;;  %s1951_s19 = scalar_lea.vmem %s2410_s3, 32 }
  0xb5   : > { %p1945_p5 = scmp.ne.s32.totalorder %s2410_s3, %s1944_s21  ;;  %p1952_p0 = scmp.lt.s32.totalorder %s2410_s3, %s2410_s3 }
  0xb6   : > { %p1953_p4 = scmp.lt.s32.totalorder %s1951_s19, %s1944_s21 }
  0xb7   : > { %p1947_p11 = pnand %p1945_p5, %p2763_p3 }
  0xb8   : > { %p1954_p10 = por %p1953_p4, %p1952_p0 }
  0xb9   : > { %p1948_p7 = pneg %p1947_p11 }
  0xbb   : > { %p1955_p13 = pnand %p1954_p10, %p1948_p7 }
  0xbd   : > { %1958 = shalt.err (!%p1955_p13)
}
  0xbe   : > { %1667 = dma.hbm_to_vmem [thread:$0]  (!%p2764_p1), %s2710_s7, 16, %s2410_s3, [#allocation15]  }
  0xbf   : > { %s2767_s23 = sshll.u32 %s2113_s9, 7  ;;  %s2768_s22 = sshll.u32 %s2332_s8, 3 }
  0xc0   : > { %s2459_s20 = scalar_lea.hbm %s2703_s0, %s2767_s23  ;;  %s340_s15 = scalar_lea.vmem [#allocation2], %s2768_s22 }
  0xc1   : > { %s348_s29 = sshll.u32 %s340_s15, 4  ;;  %s1621_s16 = smul.u32 640, %s2113_s9  ;;  %s2463_s29 = int_to_ptr.vmem [resolvable:$true] %s348_s29 }
  0xc2   : > { %s337_s5 = scalar_lea.sflag [#allocation3], %s2332_s8  ;;  %s1959_s21 = scalar_lea.hbm %s2459_s20, 128 }
  0xc3   : > { %p1960_p3 = scmp.ne.s32.totalorder %s2459_s20, %s1959_s21  ;;  %p2769_p1 = scmp.ne.s32.totalorder %s2762_s10, 0 }
  0xc4   : > { %s1964_s30 = scalar_lea.hbm %s2703_s0, 256  ;;  %p1965_p8 = scmp.lt.u32.totalorder %s2459_s20, %s2703_s0 }
  0xc5   : > { %p1962_p12 = pnand %p1960_p3, %p2769_p1  ;;  %p1966_p2 = scmp.lt.u32.totalorder %s1964_s30, %s1959_s21 }
  0xc6   : > { %p1968_p5 = scmp.lt.u32.totalorder %s1959_s21, %s2459_s20 }
  0xc7   : > { %p1963_p6 = pneg %p1962_p12  ;;  %p1967_p9 = por %p1966_p2, %p1965_p8 }
  0xc9   : > { %p1969_p11 = por %p1968_p5, %p1967_p9 }
  0xcb   : > { %p1970_p7 = pnand %p1969_p11, %p1963_p6 }
  0xcd   : > { %1973 = shalt.err (!%p1970_p7)
}
  0xce   : > { %s1974_s8 = scalar_lea.vmem %s2463_s29, 128  ;;  %s2127_s27 = smov [#allocation2]  }
  0xcf   : > { %p1975_p0 = scmp.ne.s32.totalorder %s2463_s29, %s1974_s8  ;;  %s1979_s18 = sshll.u32 %s2127_s27, 4  ;;  %s1980_s18 = int_to_ptr.vmem [resolvable:$false] %s1979_s18 }
  0xd0   : > { %s1981_s22 = scalar_lea.vmem %s1980_s18, 256  ;;  %p1982_p13 = scmp.lt.s32.totalorder %s2463_s29, %s1980_s18 }
  0xd1   : > { %p1977_p4 = pnand %p1975_p0, %p2769_p1  ;;  %p1983_p3 = scmp.lt.s32.totalorder %s1981_s22, %s1974_s8 }
  0xd3   : > { %p1978_p10 = pneg %p1977_p4  ;;  %p1984_p12 = por %p1983_p3, %p1982_p13 }
  0xd5   : > { %p1985_p8 = pnand %p1984_p12, %p1978_p10 }
  0xd7   : > { %1988 = shalt.err (!%p1985_p8)
}
  0xd8   : > { %p2770_p6 = scmp.ne.s32.totalorder %s2760_s13, 0  ;;  %s2493_s3 = scalar_lea.hbm %s2705_s2, %s1621_s16 }
  0xd9   : > { %s1989_s19 = scalar_lea.hbm %s2493_s3, 640  ;;  %s1994_s23 = scalar_lea.hbm %s2705_s2, 1280 }
  0xda   : > { %1671 = dma.hbm_to_vmem [thread:$0]  (!%p2770_p6), %s2459_s20, 128, %s2463_s29, %s337_s5  }
  0xdb   : > { %p1990_p2 = scmp.ne.s32.totalorder %s2493_s3, %s1989_s19  ;;  %p1995_p11 = scmp.lt.u32.totalorder %s2493_s3, %s2705_s2 }
  0xdc   : > { %p1996_p7 = scmp.lt.u32.totalorder %s1994_s23, %s1989_s19  ;;  %p1998_p4 = scmp.lt.u32.totalorder %s1989_s19, %s2493_s3 }
  0xdd   : > { %p1992_p9 = pnand %p1990_p2, %p2769_p1 }
  0xde   : > { %p1997_p0 = por %p1996_p7, %p1995_p11 }
  0xdf   : > { %p1993_p5 = pneg %p1992_p9 }
  0xe0   : > { %p1999_p10 = por %p1998_p4, %p1997_p0 }
  0xe2   : > { %p2000_p13 = pnand %p1999_p10, %p1993_p5 }
  0xe4   : > { %2003 = shalt.err (!%p2000_p13)
}
  0xe5   : > { %s2004_s16 = scalar_lea.vmem %s2387_s17, 640  ;;  %s2128_s5 = smov [#allocation7]  }
  0xe6   : > { %p2005_p3 = scmp.ne.s32.totalorder %s2387_s17, %s2004_s16  ;;  %s2009_s8 = sshll.u32 %s2128_s5, 4  ;;  %s2010_s8 = int_to_ptr.vmem [resolvable:$false] %s2009_s8 }
  0xe7   : > { %s2011_s27 = scalar_lea.vmem %s2010_s8, 1280  ;;  %p2012_p2 = scmp.lt.s32.totalorder %s2387_s17, %s2010_s8 }
  0xe8   : > { %p2007_p12 = pnand %p2005_p3, %p2769_p1  ;;  %p2013_p9 = scmp.lt.s32.totalorder %s2011_s27, %s2004_s16 }
  0xea   : > { %p2008_p8 = pneg %p2007_p12  ;;  %p2014_p11 = por %p2013_p9, %p2012_p2 }
  0xec   : > { %p2015_p7 = pnand %p2014_p11, %p2008_p8 }
  0xee   : > { %2018 = shalt.err (!%p2015_p7)
}
  0xef   : > { %1677 = dma.hbm_to_vmem [thread:$0]  (!%p2770_p6), %s2493_s3, 640, %s2387_s17, %s2355_s26, %s2766_s14, %s2766_s14, %s2765_s1  }
  0xf0   : > { %p2771_p1 = scmp.ne.s32.totalorder %s2747_s12, 0 }
  0xf1   : > { %s2523_s10 = sand.u32 (!%p2771_p1), 1, %s2101_s28   ;;  %p2772_p5 = scmp.ne.s32.totalorder (!%p2771_p1), %s2754_s24, 0 }
  0xf2   : > { %398 = sbr.rel (%p2771_p1) target bundleno = 997 (0x3e5), region = 52  ;;  %s1487_s18 = sshll.u32 (!%p2771_p1), %s2523_s10, 3 }
  0xf3   : > { %s401_s22 = scalar_lea.sflag (!%p2771_p1), [#allocation3], %s2523_s10  ;;  %s2527_s15 = scalar_lea.vmem (!%p2771_p1), [#allocation2], %s1487_s18 }
  0xf9   : > { %2072 = dma.done.wait (%p2772_p5), %s401_s22, 128  }
  0xfa   : > { %2074 = vsyncadd (%p2772_p5), %s401_s22, 4294967168  ;;  %s409_s13 = sand.u32 1, %s2216_s11   ;;  %s2534_s26 = scalar_lea.vmem [#allocation5], %s1487_s18 }
  0xfb   : > { %s410_s12 = scalar_lea.sflag [#allocation6], %s409_s13 }
  0xfc   : > { %2076 = dma.done.wait (%p2772_p5), %s410_s12, 768  }
  0xfd   : > { %2078 = vsyncadd (%p2772_p5), %s410_s12, 4294966528  ;;  %s1622_s17 = smul.u32 40, %s2523_s10  ;;  %p2773_p6 = scmp.eq.s32.totalorder %s2216_s11, 0 }
  0xff   : > { %s2543_s1 = scalar_lea.vmem [#allocation7], %s1622_s17 }
 0x100   : > { %2080 = dma.done.wait (%p2773_p6), [#allocation9], 1024   ;;  %p2774_p0 = pmov %p2773_p6 }
 0x102   : > { %2082 = vsyncadd (%p2774_p0), [#allocation9], 4294966272  ;;  %p2775_p4 = pmov %p2774_p0 }
 0x103   : > { %p2776_p10 = pmov %p2774_p0 }
 0x104   : > { %2084 = dma.done.wait (%p2775_p4), [#allocation12], 272  }
 0x105   : > { %2086 = vsyncadd (%p2776_p10), [#allocation12], 4294967024  ;;  %p2777_p13 = pmov %p2774_p0 }
 0x106   : > { %p2778_p3 = pmov %p2774_p0 }
 0x107   : > { %2088 = dma.done.wait (%p2777_p13), [#allocation15], 16  }
 0x108   : > { %2090 = vsyncadd (%p2778_p3), [#allocation15], 4294967280  ;;  %v2129_v0 = vmov 0.0|0.0   ;;  %vm2130_vm0 = vmmov 0   ;;  %v2131_v1 = vmov 0.0   ;;  %v489_v2 = vld [vmem:[#allocation8] sm:$0xff]  ;;  %v649_v26 = vlaneseq }
 0x109   : > { %1593 = vmatprep.subr.bf16.mxu0 %v2129_v0  ;;  %1599 = vmatprep.subr.bf16.mxu1 %v2129_v0  ;;  %v490_v3 = vld [vmem:[#allocation8 + $0x8] sm:$0xff]  ;;  %v491_v4 = vld [vmem:[#allocation8 + $0x10] sm:$0xff]  ;;  %v492_v6 = vld [vmem:[#allocation8 + $0x18] sm:$0xff]  ;;  %vm493_vm1 = vcmask 261120   ;;  %vm740_vm2 = vcmask 130048   ;;  %s2133_s11 = smov 96  }
 0x10a   : > { %1544 = vmatprep.mubr.msk.f32.mxu0 %vm2130_vm0, %v2131_v1  ;;  %1555 = vmatprep.mubr.msk.f32.mxu1 %vm2130_vm0, %v2131_v1  ;;  %v1594_v5 = vpack.c.bf16 %v490_v3, %v489_v2  ;;  %v567_v7 = vld [vmem:[#allocation10] sm:$0xff]  ;;  %v568_v8 = vld [vmem:[#allocation10 + $0x8] sm:$0xff]  ;;  %v569_v10 = vld [vmem:[#allocation10 + $0x10] sm:$0xff]  ;;  %v1597_v12 = vpack.c.bf16 %v492_v6, %v491_v4  ;;  %v2132_v24 = vmov 1966171168   ;;  %v650_v28 = vshrl.u32 %v649_v26, 7 }
 0x10b   : > { %v1600_v9 = vpack.c.bf16 %v568_v8, %v567_v7  ;;  %v570_v11 = vld [vmem:[#allocation10 + $0x18] sm:$0xff]  ;;  %v731_v14 = vld [vmem:[#allocation11] sm:$0xff]  ;;  %v732_v15 = vld [vmem:[#allocation11 + $0x8] sm:$0xff]  ;;  %v647_v25 = vunpack.c.l.s4 %v2132_v24  ;;  %s2134_s24 = smov 32   ;;  %s2135_s14 = smov 16   ;;  %vm1271_vm3 = vcmask 126976  }
 0x10c   : > { %1595 = vmatpush3.bf16.msra.mxu0 %v1594_v5  ;;  %v1603_v13 = vpack.c.bf16 %v570_v11, %v569_v10  ;;  %v487_v16 = vld [vmem:[%s2527_s15] sm:$0x1f]  ;;  %v1606_v17 = vpack.c.bf16 %v732_v15, %v731_v14  ;;  %v488_v18 = vld [vmem:[%s2534_s26] sm:$0x1f]  ;;  %v2567_v20 = vld [vmem:[%s2543_s1 + $0x8] sm:$0x1f] }
 0x10d   : > { %1596 = vmatprep.subr.bf16.mxu0 %v2129_v0  ;;  %1601 = vmatpush3.bf16.msra.mxu1 %v1600_v9  ;;  %v2563_v19 = vld [vmem:[%s2543_s1] sm:$0x1f]  ;;  %v2573_v21 = vld [vmem:[%s2543_s1 + $0x10] sm:$0x1f]  ;;  %v2579_v22 = vld [vmem:[%s2543_s1 + $0x18] sm:$0x1f]  ;;  %v648_v27 = vunpack.c.0.s8 %v647_v25 }
 0x10e   : > { %1602 = vmatprep.subr.bf16.mxu1 %v2129_v0  ;;  %v2585_v23 = vld [vmem:[%s2543_s1 + $0x20] sm:$0x1f]  ;;  %v686_v33 = vsub.s32 0, %v650_v28  ;;  %s2136_s21 = smov 112   ;;  %s2779_s3 = sld [smem:[#allocation25_spill]] }
 0x10f   : > { %v651_v29 = vsub.s32 %v648_v27, %v650_v28  ;;  %v1497_v39 = vld [vmem:[#allocation14] ss:$0 sm:$0xff]  ;;  %v1496_v6 = vld [vmem:[#allocation13] ss:$0 sm:$0xff]  ;;  %s484_s19 = scalar_lea.vmem [#allocation16], %s1622_s17  ;;  %s2780_s30 = sld [smem:[#allocation28_spill]] }
 0x110   : > { %1598 = vmatpush3.bf16.msra.mxu0 %v1597_v12  ;;  %s1293_s25 = sshll.u32 %s484_s19, 4  ;;  %s2781_s16 = sld [smem:[#allocation34_spill]]  ;;  %s2649_s25 = int_to_ptr.vmem [resolvable:$true] %s1293_s25 }
 0x111   : > { %1605 = vmatprep.subr.bf16.mxu0 %v2129_v0  ;;  %1604 = vmatpush3.bf16.msra.mxu1 %v1603_v13  ;;  %s1278_s8 = scalar_lea.sflag [#allocation4], %s2523_s10  ;;  %s2019_s27 = scalar_lea.vmem %s2649_s25, 640 }
 0x112   : > { %1608 = vmatprep.subr.bf16.mxu1 %v2129_v0  ;;  %p2020_p12 = scmp.ne.s32.totalorder %s2649_s25, %s2019_s27  ;;  %s2137_s18 = smov [#allocation16]  }
 0x113   : > { %1545 = vmatmul.mubr.msk.f32.vlgmr.msra.gmra.mrb[0].mxu0 %vm493_vm1, %v487_v16  ;;  %s2023_s22 = sshll.u32 %s2137_s18, 4  ;;  %s2024_s22 = int_to_ptr.vmem [resolvable:$false] %s2023_s22 }
 0x114   : > { %1607 = vmatpush3.bf16.msra.mxu0 %v1606_v17  ;;  %1562 = vmatprep.mubr.msk.f32.mxu0 %vm2130_vm0, %v2131_v1  ;;  %s1623_s23 = smul.u32 640, %s2779_s3  ;;  %s2025_s15 = scalar_lea.vmem %s2024_s22, 1280 }
 0x115   : > { %1556 = vmatmul.mubr.msk.f32.vlgmr.msra.gmra.mrb[0].mxu1 %vm493_vm1, %v488_v18  ;;  %1611 = vmatprep.subr.bf16.mxu0 %v2129_v0  ;;  %p2782_p8 = scmp.ne.s32.totalorder %s2780_s30, 0  ;;  %p2026_p11 = scmp.lt.s32.totalorder %s2649_s25, %s2024_s22 }
 0x116   : > { %1610 = vmatpush3.bf16.msra.mxu1 %v1606_v17  ;;  %1569 = vmatprep.mubr.msk.f32.mxu1 %vm2130_vm0, %v2131_v1  ;;  %s2654_s5 = scalar_lea.hbm %s2781_s16, %s1623_s23  ;;  %p2027_p7 = scmp.lt.s32.totalorder %s2025_s15, %s2019_s27 }
 0x117   : > { %1563 = vmatmul.mubr.msk.f32.vlgmr.msra.gmra.mrb[2].mxu0 %vm740_vm2, %v2563_v19  ;;  %1614 = vmatprep.subr.bf16.mxu1 %v2129_v0  ;;  %p2021_p2 = pnand %p2020_p12, %p2782_p8 }
 0x118   : > { %1613 = vmatpush3.bf16.msra.mxu0 %v1606_v17  ;;  %1576 = vmatprep.mubr.msk.f32.mxu0 %vm2130_vm0, %v2131_v1  ;;  %p2028_p1 = por %p2027_p7, %p2026_p11 }
 0x119   : > { %1570 = vmatmul.mubr.msk.f32.vlgmr.msra.gmra.mrb[2].mxu1 %vm740_vm2, %v2567_v20  ;;  %1617 = vmatprep.subr.bf16.mxu0 %v2129_v0  ;;  %p2022_p9 = pneg %p2021_p2 }
 0x11a   : > { %1616 = vmatpush3.bf16.msra.mxu1 %v1606_v17  ;;  %1583 = vmatprep.mubr.msk.f32.mxu1 %vm2130_vm0, %v2131_v1 }
 0x11b   : > { %1577 = vmatmul.mubr.msk.f32.vlgmr.msra.gmra.mrb[4].mxu0 %vm740_vm2, %v2573_v21  ;;  %p2029_p5 = pnand %p2028_p1, %p2022_p9 }
 0x11c   : > { %1619 = vmatpush3.bf16.msra.mxu0 %v1606_v17  ;;  %1590 = vmatprep.mubr.msk.f32.mxu0 %vm2130_vm0, %v2131_v1 }
 0x11d   : > { %1584 = vmatmul.mubr.msk.f32.vlgmr.msra.gmra.mrb[4].mxu1 %vm740_vm2, %v2579_v22 }
 0x11f   : > { %1591 = vmatmul.mubr.msk.f32.vlgmr.msra.gmra.mrb[6].mxu0 %vm740_vm2, %v2585_v23 }
 0x1e6   : > { %v563_v30 = vpop.f32.mrb[0].mxu0 }
 0x1e7   : > { %v645_v31 = vcombine.high %v563_v30, %v563_v30  ;;  %v652_v32 = vrot.slane %v563_v30, %v651_v29  ;;  %v1546_v34 = vpop.f32.mrb[1].mxu0 }
 0x1e8   : > { %v640_v35 = vpop.f32.mrb[0].mxu1 }
 0x1e9   : > { %v659_v36 = vrot.slane %v645_v31, %v651_v29  ;;  %v660_v37 = vcombine.high %v652_v32, %v652_v32  ;;  %v667_v38 = vrot.slane %v652_v32, %v651_v29  ;;  %v1557_v40 = vpop.f32.mrb[1].mxu1 }
 0x1ea   : > { %v810_v41 = vpop.f32.mrb[2].mxu0 }
 0x1eb   : > { %v674_v42 = vrot.slane %v659_v36, %v651_v29  ;;  %v681_v43 = vrot.slane %v660_v37, %v651_v29  ;;  %v682_v44 = vcombine.high %v667_v38, %v667_v38  ;;  %v687_v45 = vrot.slane %v667_v38, %v686_v33  ;;  %v1564_v46 = vpop.f32.mrb[3].mxu0 }
 0x1ec   : > { %v811_v47 = vadd.f32 %v1497_v39, %v810_v41  ;;  %v883_v48 = vpop.f32.mrb[2].mxu1 }
 0x1ed   : > { %v683_v49 = vcombine.high %v681_v43, %v681_v43  ;;  %v691_v50 = vrot.slane %v681_v43, %v686_v33  ;;  %v695_v51 = vrot.slane %v682_v44, %v686_v33  ;;  %v703_v52 = vrot.slane %v674_v42, %v686_v33  ;;  %v1571_v53 = vpop.f32.mrb[3].mxu1 }
 0x1ee   : > { %v709_v54 = vadd.f32 %v687_v45, %v640_v35  ;;  %1146 = vrot.lane.b32.xlu0 %v811_v47, %s2133_s11  ;;  %v884_v55 = vadd.f32 %v1497_v39, %v883_v48  ;;  %v956_v56 = vpop.f32.mrb[4].mxu0 }
 0x1ef   : > { %v710_v57 = vadd.f32 %v691_v50, %v640_v35  ;;  %v711_v58 = vadd.f32 %v695_v51, %v640_v35  ;;  %v957_v59 = vadd.f32 %v1497_v39, %v956_v56  ;;  %v1578_v60 = vpop.f32.mrb[5].mxu0  ;;  %v699_v61 = vrot.slane %v683_v49, %v686_v33 }
 0x1f0   : > { %v1029_v62 = vpop.f32.mrb[4].mxu1  ;;  %v713_v63 = vadd.f32 %v703_v52, %v640_v35  ;;  %v2591_v7 = vadd.f32 %v1496_v6, %v709_v54 }
 0x1f1   : > { %1150 = vrot.lane.b32.xlu1 %v957_v59, %s2133_s11  ;;  %v712_v0 = vadd.f32 %v699_v61, %v640_v35  ;;  %v1030_v1 = vadd.f32 %v1497_v39, %v1029_v62  ;;  %v1585_v2 = vpop.f32.mrb[5].mxu1  ;;  %v2593_v8 = vadd.f32 %v1496_v6, %v711_v58  ;;  %v2596_v10 = vadd.f32 %v1496_v6, %v710_v57 }
 0x1f2   : > { %1148 = vrot.lane.b32.xlu0 %v884_v55, %s2133_s11  ;;  %v1102_v3 = vpop.f32.mrb[6].mxu0  ;;  %v1106_v9 = vadd.f32 %v811_v47, %v2591_v7  ;;  %v2602_v15 = vadd.f32 %v1496_v6, %v713_v63 }
 0x1f3   : > { %v1103_v4 = vadd.f32 %v1497_v39, %v1102_v3  ;;  %v1592_v5 = vpop.f32.mrb[7].mxu0  ;;  %v1108_v11 = vadd.f32 %v957_v59, %v2593_v8  ;;  %v2599_v12 = vadd.f32 %v1496_v6, %v712_v0  ;;  %v1107_v14 = vadd.f32 %v884_v55, %v2596_v10 }
 0x1f4   : > { %v1503_v13 = vmul.f32 -1.442695, %v1106_v9 }
 0x1f5   : > { %1152 = vrot.lane.b32.xlu1 %v1030_v1, %s2133_s11  ;;  %v1505_v16 = vmul.f32 -1.442695, %v1108_v11  ;;  %v1109_v17 = vadd.f32 %v1030_v1, %v2599_v12  ;;  %v1504_v18 = vmul.f32 -1.442695, %v1107_v14  ;;  %v1110_v24 = vadd.f32 %v1103_v4, %v2602_v15 }
 0x1f6   : > { %1154 = vrot.lane.b32.xlu0 %v1103_v4, %s2133_s11  ;;  %1759 = vpow2.f32 %v1503_v13 }
 0x1f7   : > { %1761 = vpow2.f32 %v1505_v16  ;;  %v1506_v25 = vmul.f32 -1.442695, %v1109_v17  ;;  %v1507_v26 = vmul.f32 -1.442695, %v1110_v24 }
 0x1f8   : > { %1763 = vpow2.f32 %v1504_v18 }
 0x1f9   : > { %1765 = vpow2.f32 %v1506_v25 }
 0x1fa   : > { %1767 = vpow2.f32 %v1507_v26 }
 0x200   : > { %v1760_v27 = vpop.eup %1759 }
 0x201   : > { %v1762_v28 = vpop.eup %1761  ;;  %v1126_v29 = vadd.f32 1.0, %v1760_v27 }
 0x202   : > { %v1764_v30 = vpop.eup %1763  ;;  %v1128_v31 = vadd.f32 1.0, %v1762_v28 }
 0x203   : > { %v1766_v32 = vpop.eup %1765  ;;  %1769 = vrcp.f32 %v1126_v29  ;;  %v1127_v33 = vadd.f32 1.0, %v1764_v30 }
 0x204   : > { %v1768_v34 = vpop.eup %1767  ;;  %1771 = vrcp.f32 %v1128_v31  ;;  %v1129_v35 = vadd.f32 1.0, %v1766_v32 }
 0x205   : > { %1773 = vrcp.f32 %v1127_v33  ;;  %v1130_v36 = vadd.f32 1.0, %v1768_v34 }
 0x206   : > { %1775 = vrcp.f32 %v1129_v35 }
 0x207   : > { %1777 = vrcp.f32 %v1130_v36 }
 0x20d   : > { %v1770_v37 = vpop.eup %1769 }
 0x20e   : > { %v2606_v40 = vpop.eup %1771  ;;  %v1216_v2 = vsub.f32 1.0, %v1770_v37 }
 0x20f   : > { %v2608_v42 = vpop.eup %1773 }
 0x210   : > { %v2612_v46 = vpop.eup %1775  ;;  %v1217_v9 = vsub.f32 1.0, %v2608_v42 }
 0x211   : > { %v2614_v48 = vpop.eup %1777  ;;  %v1219_v18 = vsub.f32 1.0, %v2612_v46 }
 0x212   : > { %v1220_v24 = vsub.f32 1.0, %v2614_v48 }
 0x260   : > { %v1147_v38 = vpop.permute.xlu0 %1146 }
 0x261   : > { %v1161_v39 = vmul.f32 %v1770_v37, %v1147_v38 }
 0x263   : > { %1171 = vrot.lane.b32.xlu1 %v1161_v39, %s2134_s24  ;;  %v1151_v41 = vpop.permute.xlu1 %1150 }
 0x264   : > { %v1149_v43 = vpop.permute.xlu0 %1148  ;;  %v1163_v44 = vmul.f32 %v2606_v40, %v1151_v41 }
 0x265   : > { %v1162_v45 = vmul.f32 %v2608_v42, %v1149_v43 }
 0x267   : > { %1175 = vrot.lane.b32.xlu1 %v1163_v44, %s2134_s24  ;;  %1173 = vrot.lane.b32.xlu0 %v1162_v45, %s2134_s24  ;;  %v1153_v47 = vpop.permute.xlu1 %1152 }
 0x268   : > { %v1164_v49 = vmul.f32 %v2612_v46, %v1153_v47  ;;  %v1155_v50 = vpop.permute.xlu0 %1154 }
 0x269   : > { %v1165_v51 = vmul.f32 %v2614_v48, %v1155_v50 }
 0x26b   : > { %1177 = vrot.lane.b32.xlu0 %v1164_v49, %s2134_s24  ;;  %1179 = vrot.lane.b32.xlu1 %v1165_v51, %s2134_s24 }
 0x26f   : > { %1196 = vrot.lane.b32.xlu0 %v2563_v19, %s2135_s14  ;;  %1198 = vrot.lane.b32.xlu1 %v2567_v20, %s2135_s14 }
 0x273   : > { %1200 = vrot.lane.b32.xlu0 %v2573_v21, %s2135_s14  ;;  %1202 = vrot.lane.b32.xlu1 %v2579_v22, %s2135_s14 }
 0x277   : > { %1204 = vrot.lane.b32.xlu0 %v2585_v23, %s2135_s14 }
 0x2d5   : > { %v1172_v52 = vpop.permute.xlu1 %1171 }
 0x2d6   : > { %v1186_v53 = vadd.f32 %v1172_v52, %v2591_v7 }
 0x2d8   : > { %1779 = vtanh.f32 %v1186_v53 }
 0x2d9   : > { %v1176_v54 = vpop.permute.xlu1 %1175  ;;  %v1174_v55 = vpop.permute.xlu0 %1173 }
 0x2da   : > { %v1188_v56 = vadd.f32 %v1176_v54, %v2593_v8  ;;  %v1187_v57 = vadd.f32 %v1174_v55, %v2596_v10  ;;  %v1218_v8 = vsub.f32 1.0, %v2606_v40 }
 0x2dc   : > { %1781 = vtanh.f32 %v1188_v56 }
 0x2dd   : > { %1783 = vtanh.f32 %v1187_v57  ;;  %v1178_v19 = vpop.permute.xlu0 %1177  ;;  %v1180_v20 = vpop.permute.xlu1 %1179 }
 0x2de   : > { %v1189_v21 = vadd.f32 %v1178_v19, %v2599_v12  ;;  %v1190_v22 = vadd.f32 %v1180_v20, %v2602_v15 }
 0x2e0   : > { %1785 = vtanh.f32 %v1189_v21 }
 0x2e1   : > { %1787 = vtanh.f32 %v1190_v22  ;;  %v1197_v62 = vpop.permute.xlu0 %1196  ;;  %v1199_v63 = vpop.permute.xlu1 %1198 }
 0x2e2   : > { %v1780_v23 = vpop.eup %1779  ;;  %v1211_v4 = vmul.f32 %v1770_v37, %v1197_v62  ;;  %v1212_v14 = vmul.f32 %v2608_v42, %v1199_v63 }
 0x2e3   : > { %1226 = vrot.lane.b32.xlu1 %v1780_v23, %s2136_s21 }
 0x2e5   : > { %v1201_v0 = vpop.permute.xlu0 %1200  ;;  %v1203_v1 = vpop.permute.xlu1 %1202 }
 0x2e6   : > { %v1782_v58 = vpop.eup %1781  ;;  %v1213_v11 = vmul.f32 %v2606_v40, %v1201_v0  ;;  %v1214_v27 = vmul.f32 %v2612_v46, %v1203_v1 }
 0x2e7   : > { %v1784_v59 = vpop.eup %1783  ;;  %1230 = vrot.lane.b32.xlu1 %v1782_v58, %s2136_s21 }
 0x2e8   : > { %1228 = vrot.lane.b32.xlu0 %v1784_v59, %s2136_s21 }
 0x2e9   : > { %v1205_v5 = vpop.permute.xlu0 %1204 }
 0x2ea   : > { %v1786_v60 = vpop.eup %1785  ;;  %v1215_v28 = vmul.f32 %v2614_v48, %v1205_v5 }
 0x2eb   : > { %v1788_v61 = vpop.eup %1787 }
 0x2ec   : > { %1232 = vrot.lane.b32.xlu0 %v1786_v60, %s2136_s21  ;;  %1234 = vrot.lane.b32.xlu1 %v1788_v61, %s2136_s21 }
 0x355   : > { %v1227_v3 = vpop.permute.xlu1 %1226 }
 0x356   : > { %v1241_v6 = vmul.f32 %v1227_v3, %v1216_v2 }
 0x358   : > { %v1246_v7 = vadd.f32 %v1241_v6, %v1211_v4 }
 0x359   : > { %v1231_v10 = vpop.permute.xlu1 %1230 }
 0x35a   : > { %v1229_v12 = vpop.permute.xlu0 %1228  ;;  %v1243_v13 = vmul.f32 %v1231_v10, %v1218_v8  ;;  %1256 = vrot.lane.b32.xlu0 %v1246_v7, %s2136_s21 }
 0x35b   : > { %v1242_v15 = vmul.f32 %v1229_v12, %v1217_v9 }
 0x35c   : > { %v1248_v16 = vadd.f32 %v1243_v13, %v1213_v11 }
 0x35d   : > { %v1247_v17 = vadd.f32 %v1242_v15, %v1212_v14 }
 0x35e   : > { %v1233_v25 = vpop.permute.xlu0 %1232  ;;  %v1235_v26 = vpop.permute.xlu1 %1234  ;;  %1260 = vrot.lane.b32.xlu0 %v1248_v16, %s2136_s21 }
 0x35f   : > { %v1244_v29 = vmul.f32 %v1233_v25, %v1219_v18  ;;  %v1245_v30 = vmul.f32 %v1235_v26, %v1220_v24  ;;  %1258 = vrot.lane.b32.xlu1 %v1247_v17, %s2136_s21 }
 0x361   : > { %v1249_v31 = vadd.f32 %v1244_v29, %v1214_v27  ;;  %v1250_v32 = vadd.f32 %v1245_v30, %v1215_v28 }
 0x363   : > { %1262 = vrot.lane.b32.xlu1 %v1249_v31, %s2136_s21  ;;  %1264 = vrot.lane.b32.xlu0 %v1250_v32, %s2136_s21 }
 0x3cc   : > { %v1257_v33 = vpop.permute.xlu0 %1256 }
 0x3cd   : > { %1272 = vst.msk [vmem:[%s484_s19] sm:$0x1f] %vm1271_vm3, %v1257_v33 }
 0x3d0   : > { %v1261_v34 = vpop.permute.xlu0 %1260 }
 0x3d1   : > { %1274 = vst.msk [vmem:[%s484_s19 + $0x10] sm:$0x1f] %vm1271_vm3, %v1261_v34  ;;  %v1259_v35 = vpop.permute.xlu1 %1258 }
 0x3d2   : > { %1273 = vst.msk [vmem:[%s484_s19 + $0x8] sm:$0x1f] %vm1271_vm3, %v1259_v35 }
 0x3d5   : > { %v1265_v36 = vpop.permute.xlu0 %1264  ;;  %v1263_v37 = vpop.permute.xlu1 %1262 }
 0x3d6   : > { %1276 = vst.msk [vmem:[%s484_s19 + $0x20] sm:$0x1f] %vm1271_vm3, %v1265_v36  ;;  %1275 = vst.msk [vmem:[%s484_s19 + $0x18] sm:$0x1f] %vm1271_vm3, %v1263_v37 }
 0x3d7   : > { %2032 = shalt.err (!%p2029_p5)
}
 0x3d8   : > { %s2033_s13 = scalar_lea.hbm %s2654_s5, 640  ;;  %s2037_s17 = scalar_lea.hbm %s2781_s16, 1280 }
 0x3d9   : > { %p2034_p6 = scmp.ne.s32.totalorder %s2654_s5, %s2033_s13  ;;  %p2038_p10 = scmp.lt.u32.totalorder %s2654_s5, %s2781_s16 }
 0x3da   : > { %p2039_p13 = scmp.lt.u32.totalorder %s2037_s17, %s2033_s13  ;;  %p2041_p12 = scmp.lt.u32.totalorder %s2033_s13, %s2654_s5 }
 0x3db   : > { %p2035_p0 = pnand %p2034_p6, %p2782_p8 }
 0x3dc   : > { %p2040_p3 = por %p2039_p13, %p2038_p10 }
 0x3dd   : > { %p2036_p4 = pneg %p2035_p0 }
 0x3de   : > { %p2042_p2 = por %p2041_p12, %p2040_p3 }
 0x3e0   : > { %p2043_p9 = pnand %p2042_p2, %p2036_p4 }
 0x3e2   : > { %2046 = shalt.err (!%p2043_p9)
}
 0x3e3   : > { %s2138_s24 = smov 128   ;;  %s2139_s14 = smov 8  }
 0x3e4   : > { %1650 = dma.vmem_to_hbm [thread:$0]  (%p2782_p8), %s2649_s25, 640, %s2654_s5, %s1278_s8, %s2138_s24, %s2138_s24, %s2139_s14  }
 0x3e5 PF: > { %s2783_s21 = sld [smem:[#allocation23_spill]]  ;;  %s2784_s3 = sld [smem:[#allocation30_spill]] }
 0x3e6   : > { %s2785_s19 = sld [smem:[#allocation26_spill]] }
 0x3eb   : > { %s1308_s23 = sand.u32 1, %s2783_s21   ;;  %p2786_p11 = scmp.ne.s32.totalorder %s2784_s3, 0 }
 0x3ec   : > { %p2787_p7 = scmp.ge.s32.totalorder %s2785_s19, 2  ;;  %s1309_s20 = scalar_lea.sflag [#allocation4], %s1308_s23 }
 0x3ee   : > { %p1679_p1 = pnand %p2787_p7, %p2786_p11 }
 0x3f0   : > { %2092 = dma.done.wait (!%p1679_p1), %s1309_s20, 640  }
 0x3f1   : > { %2094 = vsyncadd (!%p1679_p1), %s1309_s20, 4294966656  ;;  %s30_s10 = sadd.s32 1, %s2785_s19   ;;  %s2788_s29 = sld [smem:[#allocation24_spill]] }
 0x3f2   : > { %p27_p5 = scmp.ge.s32.totalorder %s30_s10, 4   ;;  %s2789_s18 = sld [smem:[#allocation29_spill]] }
 0x3f3   : > { %s2790_s22 = sld [smem:[#allocation27_spill]]  ;;  %s2791_s27 = smov %s2101_s28 }
 0x3f4   : > { %s2794_s30 = smov %s2113_s9  ;;  %29 = sbr.rel (!%p27_p5) target bundleno = 16 (0x10), region = 141 }
 0x3f7   : > { %s2792_s28 = smov %s2788_s29 }
 0x3f8   : > { %s2793_s29 = smov %s2789_s18 }
 0x3f9   : > { %s2795_s9 = smov %s2790_s22 }
 0x3fb   :  { %1314 = vsyncpa [#allocation3], 1 }
 0x3fc   :  { %1316 = vsyncpa [#allocation3 + $0x1], 1 }
 0x3fd   :  { %1317 = vsyncpa [#allocation6], 1 }
 0x3fe   :  { %1319 = vsyncpa [#allocation6 + $0x1], 1 }
 0x3ff   :  { %1320 = vsyncpa [#allocation9], 1 }
 0x400   :  { %1321 = vsyncpa [#allocation12], 1 }
 0x401   :  { %1322 = vsyncpa [#allocation15], 1 }
 0x402   :  { %1323 = vsyncpa [#allocation4], 1 }
 0x403   :  { %1325 = vsyncpa [#allocation4 + $0x1], 1 }

// kernel: forward.35
= control target key start
LH: loop header
LB: loop body
LE: loop exit
PB: predicated region body
PF: predicated region fallthrough
CT: control target
= control target key end

     0   :  { %10 = vsyncpa [#allocation3], 0  ;;  %s845_s0 = inlined_call_operand.hbm [shape: f32[56,32], index: 0, kind: input, shape index: {}]   ;;  %s846_s1 = inlined_call_operand.hbm [shape: f32[32,32], index: 1, kind: input, shape index: {}]   ;;  %s847_s2 = inlined_call_operand.hbm [shape: f32[1,32], index: 2, kind: input, shape index: {}]   ;;  %s848_s3 = inlined_call_operand.hbm [shape: f32[32,6], index: 3, kind: input, shape index: {}]   ;;  %s849_s4 = inlined_call_operand.hbm [shape: f32[1,6], index: 4, kind: input, shape index: {}]   ;;  %s850_s5 = inlined_call_operand.hbm [shape: f32[56,6], index: 5, kind: output, shape index: {}]  }
   0x1   :  { %11 = vsyncpa [#allocation6], 0 }
   0x2   :  { %12 = vsyncpa [#allocation9], 0 }
   0x3   :  { %13 = vsyncpa [#allocation4], 0  ;;  %s664_s18 = smov [#allocation5]   ;;  %s665_s20 = smov [#allocation8]  }
   0x4   :  { %s31_s19 = sshll.u32 %s664_s18, 4  ;;  %s53_s21 = sshll.u32 %s665_s20, 4  ;;  %s32_s19 = int_to_ptr.vmem [resolvable:$true] %s31_s19  ;;  %s705_s21 = int_to_ptr.vmem [resolvable:$true] %s53_s21 }
   0x5   :  { %s524_s24 = scalar_lea.hbm %s846_s1, 512 }
   0x6   :  { %p525_p0 = scmp.ne.s32.totalorder %s846_s1, %s524_s24  ;;  %p528_p1 = scmp.lt.u32.totalorder %s524_s24, %s846_s1 }
   0x8   :  { %p530_p2 = pnand %p528_p1, %p525_p0 }
   0xa   :  { %533 = shalt.err (!%p530_p2)
}
   0xb   :  { %s534_s29 = scalar_lea.vmem %s32_s19, 512  ;;  %p539_p4 = scmp.lt.s32.totalorder %s32_s19, %s32_s19 }
   0xc   :  { %p535_p3 = scmp.ne.s32.totalorder %s32_s19, %s534_s29  ;;  %p540_p5 = scmp.lt.s32.totalorder %s534_s29, %s534_s29 }
   0xe   :  { %p541_p6 = por %p540_p5, %p539_p4 }
  0x10   :  { %p542_p7 = pnand %p541_p6, %p535_p3 }
  0x12   :  { %545 = shalt.err (!%p542_p7)
}
  0x13   :  { %s666_s30 = smov 128   ;;  %s667_s6 = smov 8  }
  0x14   :  { %37 = dma.hbm_to_vmem [thread:$0]  %s846_s1, 512, %s32_s19, [#allocation6], %s666_s30, %s666_s30, %s667_s6  }
  0x15   :  { %s546_s11 = scalar_lea.hbm %s848_s3, 512 }
  0x16   :  { %p547_p8 = scmp.ne.s32.totalorder %s848_s3, %s546_s11  ;;  %p550_p9 = scmp.lt.u32.totalorder %s546_s11, %s848_s3 }
  0x18   :  { %p552_p10 = pnand %p550_p9, %p547_p8 }
  0x1a   :  { %555 = shalt.err (!%p552_p10)
}
  0x1b   :  { %s556_s16 = scalar_lea.vmem %s705_s21, 512  ;;  %p561_p12 = scmp.lt.s32.totalorder %s705_s21, %s705_s21 }
  0x1c   :  { %p557_p11 = scmp.ne.s32.totalorder %s705_s21, %s556_s16  ;;  %p562_p13 = scmp.lt.s32.totalorder %s556_s16, %s556_s16 }
  0x1e   :  { %p563_p0 = por %p562_p13, %p561_p12 }
  0x20   :  { %p564_p1 = pnand %p563_p0, %p557_p11 }
  0x22   :  { %567 = shalt.err (!%p564_p1)
}
  0x23   :  { %59 = dma.hbm_to_vmem [thread:$0]  %s848_s3, 512, %s705_s21, [#allocation9], %s666_s30, %s666_s30, %s667_s6  }
  0x24   :  { %s668_s18 = smov [#allocation2]   ;;  %s669_s20 = smov [#allocation7]  }
  0x25   :  { %s19_s19 = sshll.u32 %s668_s18, 4  ;;  %s44_s22 = sshll.u32 %s669_s20, 4  ;;  %s20_s19 = int_to_ptr.vmem [resolvable:$true] %s19_s19  ;;  %s45_s22 = int_to_ptr.vmem [resolvable:$true] %s44_s22 }
  0x26   :  { %s568_s25 = scalar_lea.hbm %s845_s0, 896 }
  0x27   :  { %p569_p2 = scmp.ne.s32.totalorder %s845_s0, %s568_s25  ;;  %p572_p3 = scmp.lt.u32.totalorder %s568_s25, %s845_s0 }
  0x29   :  { %p574_p4 = pnand %p572_p3, %p569_p2 }
  0x2b   :  { %577 = shalt.err (!%p574_p4)
}
  0x2c   :  { %s578_s3 = scalar_lea.vmem %s20_s19, 896  ;;  %p583_p6 = scmp.lt.s32.totalorder %s20_s19, %s20_s19 }
  0x2d   :  { %p579_p5 = scmp.ne.s32.totalorder %s20_s19, %s578_s3  ;;  %p584_p7 = scmp.lt.s32.totalorder %s578_s3, %s578_s3 }
  0x2f   :  { %p585_p8 = por %p584_p7, %p583_p6 }
  0x31   :  { %p586_p9 = pnand %p585_p8, %p579_p5 }
  0x33   :  { %589 = shalt.err (!%p586_p9)
}
  0x34   :  { %25 = dma.hbm_to_vmem [thread:$0]  %s845_s0, 896, %s20_s19, [#allocation3], %s666_s30, %s666_s30, %s667_s6  }
  0x35   :  { %s590_s10 = scalar_lea.hbm %s847_s2, 16 }
  0x36   :  { %p591_p10 = scmp.ne.s32.totalorder %s847_s2, %s590_s10  ;;  %p594_p11 = scmp.lt.u32.totalorder %s590_s10, %s847_s2 }
  0x38   :  { %p596_p12 = pnand %p594_p11, %p591_p10 }
  0x3a   :  { %599 = shalt.err (!%p596_p12)
}
  0x3b   :  { %s600_s15 = scalar_lea.vmem %s45_s22, 16  ;;  %s604_s16 = scalar_lea.vmem %s45_s22, 32 }
  0x3c   :  { %p601_p13 = scmp.ne.s32.totalorder %s45_s22, %s600_s15  ;;  %p605_p0 = scmp.lt.s32.totalorder %s45_s22, %s45_s22 }
  0x3d   :  { %p606_p1 = scmp.lt.s32.totalorder %s604_s16, %s600_s15 }
  0x3f   :  { %p607_p2 = por %p606_p1, %p605_p0 }
  0x41   :  { %p608_p3 = pnand %p607_p2, %p601_p13 }
  0x43   :  { %611 = shalt.err (!%p608_p3)
}
  0x44   :  { %47 = dma.hbm_to_vmem [thread:$0]  %s847_s2, 16, %s45_s22, [#allocation6]  }
  0x45   :  { %s670_s17 = smov [#allocation10]   ;;  %s612_s23 = scalar_lea.hbm %s849_s4, 16 }
  0x46   :  { %s66_s18 = sshll.u32 %s670_s17, 4  ;;  %p613_p4 = scmp.ne.s32.totalorder %s849_s4, %s612_s23  ;;  %s67_s18 = int_to_ptr.vmem [resolvable:$true] %s66_s18 }
  0x47   :  { %p616_p5 = scmp.lt.u32.totalorder %s612_s23, %s849_s4 }
  0x49   :  { %p618_p6 = pnand %p616_p5, %p613_p4 }
  0x4b   :  { %621 = shalt.err (!%p618_p6)
}
  0x4c   :  { %s622_s28 = scalar_lea.vmem %s67_s18, 16  ;;  %s626_s2 = scalar_lea.vmem %s67_s18, 32 }
  0x4d   :  { %p623_p7 = scmp.ne.s32.totalorder %s67_s18, %s622_s28  ;;  %p627_p8 = scmp.lt.s32.totalorder %s67_s18, %s67_s18 }
  0x4e   :  { %p628_p9 = scmp.lt.s32.totalorder %s626_s2, %s622_s28 }
  0x50   :  { %p629_p10 = por %p628_p9, %p627_p8 }
  0x52   :  { %p630_p11 = pnand %p629_p10, %p623_p7 }
  0x54   :  { %633 = shalt.err (!%p630_p11)
}
  0x55   :  { %69 = dma.hbm_to_vmem [thread:$0]  %s849_s4, 16, %s67_s18, [#allocation9]  }
  0x56   :  { %656 = dma.done.wait [#allocation3], 896  }
  0x57   :  { %657 = vsyncadd [#allocation3], 4294966400 }
  0x58   :  { %658 = dma.done.wait [#allocation6], 528  }
  0x59   :  { %659 = vsyncadd [#allocation6], 4294966768 }
  0x5a   :  { %660 = dma.done.wait [#allocation9], 528  }
  0x5b   :  { %661 = vsyncadd [#allocation9], 4294966768  ;;  %v671_v0 = vmov 0.0|0.0   ;;  %vm672_vm0 = vmmov 0   ;;  %v673_v1 = vmov 0.0   ;;  %v92_v2 = vld [vmem:[#allocation5] sm:$0xff] }
  0x5c   :  { %487 = vmatprep.subr.bf16.mxu0 %v671_v0  ;;  %437 = vmatprep.mubr.msk.f32.mxu0 %vm672_vm0, %v673_v1  ;;  %v93_v3 = vld [vmem:[#allocation5 + $0x8] sm:$0xff]  ;;  %v94_v4 = vld [vmem:[#allocation5 + $0x10] sm:$0xff]  ;;  %v95_v6 = vld [vmem:[#allocation5 + $0x18] sm:$0xff]  ;;  %vm103_vm1 = vcmask 261120   ;;  %vm364_vm2 = vcmask 48128   ;;  %s674_s4 = smov [#allocation11]  }
  0x5d   :  { %493 = vmatprep.subr.bf16.mxu1 %v671_v0  ;;  %466 = vmatprep.mubr.msk.f32.mxu1 %vm672_vm0, %v673_v1  ;;  %v488_v5 = vpack.c.bf16 %v93_v3, %v92_v2  ;;  %v491_v7 = vpack.c.bf16 %v95_v6, %v94_v4  ;;  %v85_v8 = vld [vmem:[#allocation2] sm:$0xff]  ;;  %v86_v9 = vld [vmem:[#allocation2 + $0x8] sm:$0xff]  ;;  %v87_v10 = vld [vmem:[#allocation2 + $0x10] sm:$0xff]  ;;  %s377_s3 = sshll.u32 %s674_s4, 4  ;;  %s378_s3 = int_to_ptr.vmem [resolvable:$true] %s377_s3 }
  0x5e   :  { %v88_v11 = vld [vmem:[#allocation2 + $0x18] sm:$0xff]  ;;  %v89_v12 = vld [vmem:[#allocation2 + $0x20] sm:$0xff]  ;;  %v90_v13 = vld [vmem:[#allocation2 + $0x28] sm:$0xff]  ;;  %s634_s21 = scalar_lea.vmem %s378_s3, 896  ;;  %p639_p13 = scmp.lt.s32.totalorder %s378_s3, %s378_s3 }
  0x5f   :  { %489 = vmatpush3.bf16.msra.mxu0 %v488_v5  ;;  %v91_v14 = vld [vmem:[#allocation2 + $0x30] sm:$0xff]  ;;  %v232_v15 = vld [vmem:[#allocation8] sm:$0xff]  ;;  %v233_v16 = vld [vmem:[#allocation8 + $0x8] sm:$0xff]  ;;  %p635_p12 = scmp.ne.s32.totalorder %s378_s3, %s634_s21  ;;  %p640_p0 = scmp.lt.s32.totalorder %s634_s21, %s634_s21 }
  0x60   :  { %490 = vmatprep.subr.bf16.mxu0 %v671_v0  ;;  %v494_v17 = vpack.c.bf16 %v233_v16, %v232_v15  ;;  %v234_v18 = vld [vmem:[#allocation8 + $0x10] sm:$0xff]  ;;  %v235_v19 = vld [vmem:[#allocation8 + $0x18] sm:$0xff]  ;;  %v399_v50 = vld [vmem:[#allocation10] ss:$0 sm:$0xff] }
  0x61   :  { %v497_v20 = vpack.c.bf16 %v235_v19, %v234_v18  ;;  %v391_v21 = vld [vmem:[#allocation7] ss:$0 sm:$0xff]  ;;  %p641_p1 = por %p640_p0, %p639_p13 }
  0x62   :  { %495 = vmatpush3.bf16.msra.mxu1 %v494_v17 }
  0x63   :  { %492 = vmatpush3.bf16.msra.mxu0 %v491_v7  ;;  %496 = vmatprep.subr.bf16.mxu1 %v671_v0  ;;  %p642_p2 = pnand %p641_p1, %p635_p12 }
  0x66   :  { %438 = vmatmul.mubr.msk.f32.vlgmr.msra.gmra.mrb[0].mxu0 %vm103_vm1, %v85_v8  ;;  %498 = vmatpush3.bf16.msra.mxu1 %v497_v20 }
  0x67   :  { %440 = vmatprep.mubr.msk.f32.mxu0 %vm672_vm0, %v673_v1 }
  0x6a   :  { %441 = vmatmul.mubr.msk.f32.gmra.mrb[2].mxu0 %vm103_vm1, %v86_v9 }
  0x6b   :  { %443 = vmatprep.mubr.msk.f32.mxu0 %vm672_vm0, %v673_v1 }
  0x6e   :  { %444 = vmatmul.mubr.msk.f32.gmra.mrb[4].mxu0 %vm103_vm1, %v87_v10 }
  0x6f   :  { %446 = vmatprep.mubr.msk.f32.mxu0 %vm672_vm0, %v673_v1 }
  0x72   :  { %447 = vmatmul.mubr.msk.f32.gmra.mrb[6].mxu0 %vm103_vm1, %v88_v11 }
  0x73   :  { %449 = vmatprep.mubr.msk.f32.mxu0 %vm672_vm0, %v673_v1 }
  0x76   :  { %450 = vmatmul.mubr.msk.f32.gmra.mrb[8].mxu0 %vm103_vm1, %v89_v12 }
  0x77   :  { %452 = vmatprep.mubr.msk.f32.mxu0 %vm672_vm0, %v673_v1 }
  0x7a   :  { %453 = vmatmul.mubr.msk.f32.gmra.mrb[10].mxu0 %vm103_vm1, %v90_v13 }
  0x7b   :  { %455 = vmatprep.mubr.msk.f32.mxu0 %vm672_vm0, %v673_v1 }
  0x7e   :  { %456 = vmatmul.mubr.msk.f32.gmra.mrb[12].mxu0 %vm103_vm1, %v91_v14 }
 0x139   :  { %v191_v22 = vpop.f32.mrb[0].mxu0 }
 0x13a   :  { %v192_v23 = vadd.f32 %v391_v21, %v191_v22  ;;  %v439_v24 = vpop.f32.mrb[1].mxu0 }
 0x13c   :  { %510 = vtanh.f32 %v192_v23 }
 0x13d   :  { %v196_v25 = vpop.f32.mrb[2].mxu0 }
 0x13e   :  { %v197_v26 = vadd.f32 %v391_v21, %v196_v25  ;;  %v442_v27 = vpop.f32.mrb[3].mxu0 }
 0x140   :  { %512 = vtanh.f32 %v197_v26 }
 0x141   :  { %v201_v28 = vpop.f32.mrb[4].mxu0 }
 0x142   :  { %v202_v29 = vadd.f32 %v391_v21, %v201_v28  ;;  %v445_v30 = vpop.f32.mrb[5].mxu0 }
 0x144   :  { %514 = vtanh.f32 %v202_v29 }
 0x145   :  { %v206_v31 = vpop.f32.mrb[6].mxu0 }
 0x146   :  { %v511_v32 = vpop.eup %510  ;;  %v207_v33 = vadd.f32 %v391_v21, %v206_v31  ;;  %v448_v34 = vpop.f32.mrb[7].mxu0 }
 0x147   :  { %467 = vmatmul.mubr.msk.f32.vlgmr.msra.gmra.mrb[0].mxu1 %vm103_vm1, %v511_v32 }
 0x148   :  { %516 = vtanh.f32 %v207_v33  ;;  %469 = vmatprep.mubr.msk.f32.mxu1 %vm672_vm0, %v673_v1 }
 0x149   :  { %v211_v35 = vpop.f32.mrb[8].mxu0 }
 0x14a   :  { %v513_v36 = vpop.eup %512  ;;  %v212_v37 = vadd.f32 %v391_v21, %v211_v35  ;;  %v451_v38 = vpop.f32.mrb[9].mxu0 }
 0x14b   :  { %470 = vmatmul.mubr.msk.f32.gmra.mrb[2].mxu1 %vm103_vm1, %v513_v36 }
 0x14c   :  { %518 = vtanh.f32 %v212_v37  ;;  %472 = vmatprep.mubr.msk.f32.mxu1 %vm672_vm0, %v673_v1 }
 0x14d   :  { %v216_v39 = vpop.f32.mrb[10].mxu0 }
 0x14e   :  { %v515_v40 = vpop.eup %514  ;;  %v217_v41 = vadd.f32 %v391_v21, %v216_v39  ;;  %v454_v42 = vpop.f32.mrb[11].mxu0 }
 0x14f   :  { %473 = vmatmul.mubr.msk.f32.gmra.mrb[4].mxu1 %vm103_vm1, %v515_v40 }
 0x150   :  { %520 = vtanh.f32 %v217_v41  ;;  %475 = vmatprep.mubr.msk.f32.mxu1 %vm672_vm0, %v673_v1 }
 0x151   :  { %v221_v43 = vpop.f32.mrb[12].mxu0 }
 0x152   :  { %v517_v44 = vpop.eup %516  ;;  %v222_v45 = vadd.f32 %v391_v21, %v221_v43  ;;  %v457_v46 = vpop.f32.mrb[13].mxu0 }
 0x153   :  { %476 = vmatmul.mubr.msk.f32.gmra.mrb[6].mxu1 %vm103_vm1, %v517_v44 }
 0x154   :  { %522 = vtanh.f32 %v222_v45  ;;  %478 = vmatprep.mubr.msk.f32.mxu1 %vm672_vm0, %v673_v1 }
 0x156   :  { %v519_v47 = vpop.eup %518 }
 0x157   :  { %479 = vmatmul.mubr.msk.f32.gmra.mrb[8].mxu1 %vm103_vm1, %v519_v47 }
 0x158   :  { %481 = vmatprep.mubr.msk.f32.mxu1 %vm672_vm0, %v673_v1 }
 0x15a   :  { %v521_v48 = vpop.eup %520 }
 0x15b   :  { %482 = vmatmul.mubr.msk.f32.gmra.mrb[10].mxu1 %vm103_vm1, %v521_v48 }
 0x15c   :  { %484 = vmatprep.mubr.msk.f32.mxu1 %vm672_vm0, %v673_v1 }
 0x15e   :  { %v523_v49 = vpop.eup %522 }
 0x15f   :  { %485 = vmatmul.mubr.msk.f32.gmra.mrb[12].mxu1 %vm103_vm1, %v523_v49 }
 0x21a   :  { %v330_v51 = vpop.f32.mrb[0].mxu1 }
 0x21b   :  { %v331_v52 = vadd.f32 %v399_v50, %v330_v51  ;;  %v468_v53 = vpop.f32.mrb[1].mxu1 }
 0x21d   :  { %365 = vst.msk [vmem:[#allocation11] sm:$0xff] %vm364_vm2, %v331_v52 }
 0x21e   :  { %v335_v54 = vpop.f32.mrb[2].mxu1 }
 0x21f   :  { %v336_v55 = vadd.f32 %v399_v50, %v335_v54  ;;  %v471_v56 = vpop.f32.mrb[3].mxu1 }
 0x221   :  { %366 = vst.msk [vmem:[#allocation11 + $0x8] sm:$0xff] %vm364_vm2, %v336_v55 }
 0x222   :  { %v340_v57 = vpop.f32.mrb[4].mxu1 }
 0x223   :  { %v341_v58 = vadd.f32 %v399_v50, %v340_v57  ;;  %v474_v59 = vpop.f32.mrb[5].mxu1 }
 0x225   :  { %367 = vst.msk [vmem:[#allocation11 + $0x10] sm:$0xff] %vm364_vm2, %v341_v58 }
 0x226   :  { %v345_v60 = vpop.f32.mrb[6].mxu1 }
 0x227   :  { %v346_v61 = vadd.f32 %v399_v50, %v345_v60  ;;  %v477_v62 = vpop.f32.mrb[7].mxu1 }
 0x229   :  { %368 = vst.msk [vmem:[#allocation11 + $0x18] sm:$0xff] %vm364_vm2, %v346_v61 }
 0x22a   :  { %v350_v63 = vpop.f32.mrb[8].mxu1 }
 0x22b   :  { %v351_v0 = vadd.f32 %v399_v50, %v350_v63  ;;  %v480_v1 = vpop.f32.mrb[9].mxu1 }
 0x22d   :  { %369 = vst.msk [vmem:[#allocation11 + $0x20] sm:$0xff] %vm364_vm2, %v351_v0 }
 0x22e   :  { %v355_v2 = vpop.f32.mrb[10].mxu1 }
 0x22f   :  { %v356_v3 = vadd.f32 %v399_v50, %v355_v2  ;;  %v483_v4 = vpop.f32.mrb[11].mxu1 }
 0x231   :  { %370 = vst.msk [vmem:[#allocation11 + $0x28] sm:$0xff] %vm364_vm2, %v356_v3 }
 0x232   :  { %v360_v5 = vpop.f32.mrb[12].mxu1 }
 0x233   :  { %v361_v6 = vadd.f32 %v399_v50, %v360_v5  ;;  %v486_v7 = vpop.f32.mrb[13].mxu1 }
 0x235   :  { %371 = vst.msk [vmem:[#allocation11 + $0x30] sm:$0xff] %vm364_vm2, %v361_v6 }
 0x236   :  { %645 = shalt.err (!%p642_p2)
}
 0x237   :  { %s646_s9 = scalar_lea.hbm %s850_s5, 896 }
 0x238   :  { %p647_p3 = scmp.ne.s32.totalorder %s850_s5, %s646_s9  ;;  %p650_p4 = scmp.lt.u32.totalorder %s646_s9, %s850_s5 }
 0x23a   :  { %p652_p5 = pnand %p650_p4, %p647_p3 }
 0x23c   :  { %655 = shalt.err (!%p652_p5)
}
 0x23d   :  { %383 = dma.vmem_to_hbm [thread:$0]  %s378_s3, 896, %s850_s5, [#allocation4], %s666_s30, %s666_s30, %s667_s6  }
 0x23e   :  { %662 = dma.done.wait [#allocation4], 896  }
 0x23f   :  { %663 = vsyncadd [#allocation4], 4294966400 }
 0x240   :  { %387 = vsyncpa [#allocation3], 1 }
 0x241   :  { %388 = vsyncpa [#allocation6], 1 }
 0x242   :  { %389 = vsyncpa [#allocation9], 1 }
 0x243   :  { %390 = vsyncpa [#allocation4], 1 }

// kernel: forward.25
= control target key start
LH: loop header
LB: loop body
LE: loop exit
PB: predicated region body
PF: predicated region fallthrough
CT: control target
= control target key end

     0   :  { %s4814_s0 = inlined_call_operand.hbm [shape: f32[2,4,5,8], index: 0, kind: input, shape index: {}]   ;;  %s4815_s1 = inlined_call_operand.hbm [shape: f32[2,4,5,8], index: 1, kind: input, shape index: {}]   ;;  %s4816_s2 = inlined_call_operand.hbm [shape: f32[2,4,5,8], index: 2, kind: input, shape index: {}]   ;;  %s4817_s3 = inlined_call_operand.hbm [shape: f32[2,5,5,16], index: 3, kind: input, shape index: {}]   ;;  %s4818_s4 = inlined_call_operand.hbm [shape: f32[2,1,1,5], index: 4, kind: input, shape index: {}]   ;;  %s4819_s5 = inlined_call_operand.hbm [shape: f32[2,4,5,8], index: 5, kind: output, shape index: {}]  }
   0x1   :  { %4832 = sst [smem:[#allocation21_spill]] %s4814_s0 }
   0x2   :  { %4833 = sst [smem:[#allocation22_spill]] %s4815_s1 }
   0x3   :  { %4834 = sst [smem:[#allocation23_spill]] %s4816_s2 }
   0x4   :  { %4835 = sst [smem:[#allocation24_spill]] %s4817_s3 }
   0x5   :  { %10 = vsyncpa [#allocation3], 0 }
   0x6   :  { %12 = vsyncpa [#allocation3 + $0x1], 0 }
   0x7   :  { %13 = vsyncpa [#allocation6], 0 }
   0x8   :  { %15 = vsyncpa [#allocation6 + $0x1], 0 }
   0x9   :  { %16 = vsyncpa [#allocation9], 0 }
   0xa   :  { %18 = vsyncpa [#allocation9 + $0x1], 0 }
   0xb   :  { %19 = vsyncpa [#allocation4], 0 }
   0xc   :  { %21 = vsyncpa [#allocation4 + $0x1], 0  ;;  %s4231_s18 = smov 0   ;;  %s4233_s19 = smov 0  }
   0xd   :  { %s4235_s20 = smov 0   ;;  %s4237_s21 = smov 0  }
   0xe   :  { %s4239_s22 = smov 0   ;;  %s4241_s23 = smov 0  }
   0xf LB: > { %4836 = sst [smem:[#allocation16_spill]] %s4164_s18  ;;  %s4262_s24 = sadd.s32 4294967295, %s4184_s23   ;;  %s4184_s23 = sphi %s4241_s23, %s27_s23   ;;  %s4180_s22 = sphi %s4239_s22, %s4871_s22   ;;  %s4176_s21 = sphi %s4237_s21, %s4870_s21   ;;  %s4172_s20 = sphi %s4235_s20, %s4866_s20   ;;  %s4168_s19 = sphi %s4233_s19, %s4869_s19   ;;  %s4164_s18 = sphi %s4231_s18, %s4868_s18  }
  0x10   : > { %4837 = sst [smem:[#allocation17_spill]] %s4172_s20  ;;  %s3648_s25 = sadd.s32 4294967294, %s4184_s23  }
  0x11   : > { %s39_s26 = sadd.s32 1, %s4180_s22  ;;  %s48_s27 = sadd.s32 1, %s4172_s20 }
  0x12   : > { %p41_p0 = scmp.ge.s32.totalorder %s39_s26, 2  ;;  %p55_p1 = scmp.ne.s32.totalorder %s4172_s20, %s4168_s19 }
  0x13   : > { %p56_p2 = scmp.eq.s32.totalorder %s4184_s23, 0  ;;  %p61_p3 = scmp.ne.s32.totalorder %s4168_s19, %s4164_s18 }
  0x14   : > { %s4873_s26 = smov (%p41_p0, %s39_s26), 0  ;;  %p62_p5 = scmp.eq.s32.totalorder %s4262_s24, 0 }
  0x15   : > { %4838 = sst [smem:[#allocation18_spill]] %s4873_s26  ;;  %p4274_p4 = por %p56_p2, %p55_p1 }
  0x16   : > { %s43_s29 = ssub.s32 %s4180_s22, %s4873_s26  ;;  %p193_p6 = scmp.eq.s32.totalorder %s4262_s24, 1 }
  0x17   : > { %p46_p7 = scmp.eq.s32.totalorder %s43_s29, 0  ;;  %p4282_p8 = por %p62_p5, %p61_p3 }
  0x18   : > { %p4286_p9 = por %p193_p6, %p55_p1  ;;  %p199_p10 = scmp.eq.s32.totalorder %s3648_s25, 1 }
  0x19   : > { %s4840_s30 = scalar_select %p4282_p8, 1, 0 }
  0x1a   : > { %s4841_s6 = scalar_select %p4286_p9, 1, 0 }
  0x1b   : > { %s4291_s7 = scalar_select %p46_p7, %s4172_s20, %s48_s27  }
  0x1c   : > { %p4293_p11 = por %p199_p10, %p61_p3  ;;  %p3869_p13 = scmp.lt.s32.totalorder %s4184_s23, 2 }
  0x1d   : > { %4842 = sst [smem:[#allocation19_spill]] %s4291_s7  ;;  %s4300_s9 = sand.u32 1, %s4172_s20  }
  0x1e   : > { %s4843_s8 = scalar_select %p4293_p11, 1, 0 }
  0x1f   : > { %s4303_s10 = sshll.u32 %s4300_s9, 5  ;;  %s4306_s11 = sshll.u32 %s4180_s22, 9 }
  0x20   : > { %4844 = sst [smem:[#allocation20_spill]] %s4843_s8  ;;  %p4310_p0 = pnand %p3869_p13, %p4274_p4 }
  0x21   : > { %s4821_s13 = sand.u32 1, %s4184_s23   ;;  %s4846_s1 = sld [smem:[#allocation22_spill]] }
  0x22   : > { %s4845_s12 = scalar_select %p4310_p0, 1, 0 }
  0x23   : > { %s245_s17 = scalar_lea.vmem [#allocation5], %s4303_s10  ;;  %s4328_s27 = scalar_lea.sflag [#allocation6], %s4821_s13 }
  0x24   : > { %s252_s25 = sshll.u32 %s245_s17, 4  ;;  %p4334_p4 = pneg %p4310_p0  ;;  %s4323_s25 = int_to_ptr.vmem [resolvable:$true] %s252_s25 }
  0x27   : > { %s4319_s16 = scalar_lea.hbm %s4846_s1, %s4306_s11  ;;  %s3949_s17 = scalar_lea.hbm %s4846_s1, 1024 }
  0x28   : > { %s3944_s28 = scalar_lea.hbm %s4319_s16, 512  ;;  %p3950_p7 = scmp.lt.u32.totalorder %s4319_s16, %s4846_s1 }
  0x29   : > { %p3945_p3 = scmp.ne.s32.totalorder %s4319_s16, %s3944_s28  ;;  %p3951_p10 = scmp.lt.u32.totalorder %s3949_s17, %s3944_s28 }
  0x2a   : > { %p3953_p12 = scmp.lt.u32.totalorder %s3944_s28, %s4319_s16 }
  0x2b   : > { %p3947_p5 = pnand %p4334_p4, %p3945_p3  ;;  %p3952_p13 = por %p3951_p10, %p3950_p7 }
  0x2d   : > { %p3948_p6 = pneg %p3947_p5  ;;  %p3954_p1 = por %p3953_p12, %p3952_p13 }
  0x2f   : > { %p3955_p2 = pnand %p3954_p1, %p3948_p6 }
  0x31   : > { %3958 = shalt.err (!%p3955_p2)
}
  0x32   : > { %s3959_s13 = scalar_lea.vmem %s4323_s25, 512  ;;  %s4186_s14 = smov [#allocation5]  }
  0x33   : > { %p3960_p3 = scmp.ne.s32.totalorder %s4323_s25, %s3959_s13  ;;  %s3964_s15 = sshll.u32 %s4186_s14, 4  ;;  %s3965_s15 = int_to_ptr.vmem [resolvable:$false] %s3964_s15 }
  0x34   : > { %s3966_s26 = scalar_lea.vmem %s3965_s15, 1024  ;;  %p3967_p9 = scmp.lt.s32.totalorder %s4323_s25, %s3965_s15 }
  0x35   : > { %p3962_p5 = pnand %p3960_p3, %p4334_p4  ;;  %p3968_p8 = scmp.lt.s32.totalorder %s3966_s26, %s3959_s13 }
  0x37   : > { %p3963_p11 = pneg %p3962_p5  ;;  %p3969_p7 = por %p3968_p8, %p3967_p9 }
  0x39   : > { %p3970_p10 = pnand %p3969_p7, %p3963_p11 }
  0x3b   : > { %3973 = shalt.err (!%p3970_p10)
}
  0x3c   : > { %s4826_s7 = smov 128   ;;  %s4828_s28 = smov 8  }
  0x3d   : > { %3855 = dma.hbm_to_vmem [thread:$0]  (!%p4310_p0), %s4319_s16, 512, %s4323_s25, %s4328_s27, %s4826_s7, %s4826_s7, %s4828_s28  }
  0x3e   : > { %p4848_p8 = scmp.lt.s32.totalorder %s4184_s23, 3  ;;  %p4849_p9 = scmp.ge.s32.totalorder %s4184_s23, 1 }
  0x3f   : > { %s3834_s17 = smul.u32 40, %s4300_s9  ;;  %s4851_s3 = sld [smem:[#allocation24_spill]] }
  0x40   : > { %p4365_p11 = pnand %p4849_p9, %p4848_p8  ;;  %s3835_s14 = smul.u32 640, %s4180_s22 }
  0x41   : > { %s287_s20 = scalar_lea.vmem [#allocation8], %s3834_s17  ;;  %s4852_s16 = sand.u32 1, %s4184_s23  }
  0x42   : > { %s4850_s13 = scalar_select %p4365_p11, 1, 0 }
  0x43   : > { %s296_s8 = sshll.u32 %s287_s20, 4  ;;  %s4380_s25 = scalar_lea.sflag [#allocation9], %s4852_s16  ;;  %s4376_s8 = int_to_ptr.vmem [resolvable:$true] %s296_s8 }
  0x45   : > { %s4374_s1 = scalar_lea.hbm %s4851_s3, %s3835_s14  ;;  %s3979_s14 = scalar_lea.hbm %s4851_s3, 1280 }
  0x46   : > { %s3974_s7 = scalar_lea.hbm %s4374_s1, 640  ;;  %p3980_p6 = scmp.lt.u32.totalorder %s4374_s1, %s4851_s3 }
  0x47   : > { %p3975_p12 = scmp.ne.s32.totalorder %s4374_s1, %s3974_s7  ;;  %p3981_p13 = scmp.lt.u32.totalorder %s3979_s14, %s3974_s7 }
  0x48   : > { %p3983_p5 = scmp.lt.u32.totalorder %s3974_s7, %s4374_s1 }
  0x49   : > { %p3977_p1 = pnand %p3975_p12, %p4334_p4  ;;  %p3982_p3 = por %p3981_p13, %p3980_p6 }
  0x4b   : > { %p3978_p2 = pneg %p3977_p1  ;;  %p3984_p7 = por %p3983_p5, %p3982_p3 }
  0x4d   : > { %p3985_p10 = pnand %p3984_p7, %p3978_p2 }
  0x4f   : > { %3988 = shalt.err (!%p3985_p10)
}
  0x50   : > { %s3989_s20 = scalar_lea.vmem %s4376_s8, 640  ;;  %s4189_s28 = smov [#allocation8]  }
  0x51   : > { %p3990_p8 = scmp.ne.s32.totalorder %s4376_s8, %s3989_s20  ;;  %s3994_s17 = sshll.u32 %s4189_s28, 4  ;;  %s3995_s17 = int_to_ptr.vmem [resolvable:$false] %s3994_s17 }
  0x52   : > { %s3996_s18 = scalar_lea.vmem %s3995_s17, 1280  ;;  %p3997_p1 = scmp.lt.s32.totalorder %s4376_s8, %s3995_s17 }
  0x53   : > { %p3992_p9 = pnand %p3990_p8, %p4334_p4  ;;  %p3998_p11 = scmp.lt.s32.totalorder %s3996_s18, %s3989_s20 }
  0x55   : > { %p3993_p12 = pneg %p3992_p9  ;;  %p3999_p6 = por %p3998_p11, %p3997_p1 }
  0x57   : > { %p4000_p13 = pnand %p3999_p6, %p3993_p12 }
  0x59   : > { %4003 = shalt.err (!%p4000_p13)
}
  0x5a   : > { %s4853_s7 = smov 8   ;;  %s4854_s16 = smov 128  }
  0x5b   : > { %3861 = dma.hbm_to_vmem [thread:$0]  (!%p4310_p0), %s4374_s1, 640, %s4376_s8, %s4380_s25, %s4854_s16, %s4854_s16, %s4853_s7  }
  0x5c   : > { %s4855_s0 = sld [smem:[#allocation21_spill]]  ;;  %s223_s20 = scalar_lea.vmem [#allocation2], %s4303_s10 }
  0x5d   : > { %s231_s28 = sshll.u32 %s223_s20, 4  ;;  %s220_s17 = scalar_lea.sflag [#allocation3], %s4300_s9  ;;  %s4414_s28 = int_to_ptr.vmem [resolvable:$true] %s231_s28 }
  0x62   : > { %s4411_s26 = scalar_lea.hbm %s4855_s0, %s4306_s11  ;;  %s4009_s15 = scalar_lea.hbm %s4855_s0, 1024 }
  0x63   : > { %s4004_s18 = scalar_lea.hbm %s4411_s26, 512  ;;  %p4010_p5 = scmp.lt.u32.totalorder %s4411_s26, %s4855_s0 }
  0x64   : > { %p4005_p11 = scmp.ne.s32.totalorder %s4411_s26, %s4004_s18  ;;  %p4011_p7 = scmp.lt.u32.totalorder %s4009_s15, %s4004_s18 }
  0x65   : > { %p4013_p8 = scmp.lt.u32.totalorder %s4004_s18, %s4411_s26 }
  0x66   : > { %p4007_p2 = pnand %p4005_p11, %p4334_p4  ;;  %p4012_p10 = por %p4011_p7, %p4010_p5 }
  0x68   : > { %p4008_p3 = pneg %p4007_p2  ;;  %p4014_p9 = por %p4013_p8, %p4012_p10 }
  0x6a   : > { %p4015_p12 = pnand %p4014_p9, %p4008_p3 }
  0x6c   : > { %4018 = shalt.err (!%p4015_p12)
}
  0x6d   : > { %s4019_s20 = scalar_lea.vmem %s4414_s28, 512  ;;  %s4190_s1 = smov [#allocation2]  }
  0x6e   : > { %p4020_p1 = scmp.ne.s32.totalorder %s4414_s28, %s4019_s20  ;;  %s4024_s8 = sshll.u32 %s4190_s1, 4  ;;  %s4025_s8 = int_to_ptr.vmem [resolvable:$false] %s4024_s8 }
  0x6f   : > { %s4026_s3 = scalar_lea.vmem %s4025_s8, 1024  ;;  %p4027_p11 = scmp.lt.s32.totalorder %s4414_s28, %s4025_s8 }
  0x70   : > { %p4022_p6 = pnand %p4020_p1, %p4334_p4  ;;  %p4028_p2 = scmp.lt.s32.totalorder %s4026_s3, %s4019_s20 }
  0x72   : > { %p4023_p13 = pneg %p4022_p6  ;;  %p4029_p5 = por %p4028_p2, %p4027_p11 }
  0x74   : > { %p4030_p7 = pnand %p4029_p5, %p4023_p13 }
  0x76   : > { %4033 = shalt.err (!%p4030_p7)
}
  0x77   : > { %3852 = dma.hbm_to_vmem [thread:$0]  (!%p4310_p0), %s4411_s26, 512, %s4414_s28, %s220_s17, %s4854_s16, %s4854_s16, %s4853_s7  }
  0x78   : > { %s4856_s2 = sld [smem:[#allocation23_spill]]  ;;  %s266_s20 = scalar_lea.vmem [#allocation7], %s4303_s10 }
  0x79   : > { %s273_s1 = sshll.u32 %s266_s20, 4  ;;  %s4450_s1 = int_to_ptr.vmem [resolvable:$true] %s273_s1 }
  0x7e   : > { %s4447_s14 = scalar_lea.hbm %s4856_s2, %s4306_s11  ;;  %s4039_s28 = scalar_lea.hbm %s4856_s2, 1024 }
  0x7f   : > { %s4034_s8 = scalar_lea.hbm %s4447_s14, 512  ;;  %p4040_p9 = scmp.lt.u32.totalorder %s4447_s14, %s4856_s2 }
  0x80   : > { %p4035_p3 = scmp.ne.s32.totalorder %s4447_s14, %s4034_s8  ;;  %p4041_p12 = scmp.lt.u32.totalorder %s4039_s28, %s4034_s8 }
  0x81   : > { %p4043_p6 = scmp.lt.u32.totalorder %s4034_s8, %s4447_s14 }
  0x82   : > { %p4037_p10 = pnand %p4035_p3, %p4334_p4  ;;  %p4042_p1 = por %p4041_p12, %p4040_p9 }
  0x84   : > { %p4038_p8 = pneg %p4037_p10  ;;  %p4044_p13 = por %p4043_p6, %p4042_p1 }
  0x86   : > { %p4045_p11 = pnand %p4044_p13, %p4038_p8 }
  0x88   : > { %4048 = shalt.err (!%p4045_p11)
}
  0x89   : > { %s4049_s10 = scalar_lea.vmem %s4450_s1, 512  ;;  %s4191_s18 = smov [#allocation7]  }
  0x8a   : > { %p4050_p2 = scmp.ne.s32.totalorder %s4450_s1, %s4049_s10  ;;  %s4054_s15 = sshll.u32 %s4191_s18, 4  ;;  %s4055_s15 = int_to_ptr.vmem [resolvable:$false] %s4054_s15 }
  0x8b   : > { %s4056_s20 = scalar_lea.vmem %s4055_s15, 1024  ;;  %p4057_p3 = scmp.lt.s32.totalorder %s4450_s1, %s4055_s15 }
  0x8c   : > { %p4052_p5 = pnand %p4050_p2, %p4334_p4  ;;  %p4058_p10 = scmp.lt.s32.totalorder %s4056_s20, %s4049_s10 }
  0x8e   : > { %p4053_p7 = pneg %p4052_p5  ;;  %p4059_p9 = por %p4058_p10, %p4057_p3 }
  0x90   : > { %p4060_p12 = pnand %p4059_p9, %p4053_p7 }
  0x92   : > { %4063 = shalt.err (!%p4060_p12)
}
  0x93   : > { %3858 = dma.hbm_to_vmem [thread:$0]  (!%p4310_p0), %s4447_s14, 512, %s4450_s1, %s4328_s27, %s4854_s16, %s4854_s16, %s4853_s7  }
  0x94   : > { %s3661_s8 = sshll.u32 %s4180_s22, 4  ;;  %s309_s3 = scalar_lea.vmem [#allocation10], %s4300_s9 }
  0x95   : > { %s316_s26 = sshll.u32 %s309_s3, 4  ;;  %s314_s11 = scalar_lea.hbm %s4818_s4, %s3661_s8  ;;  %s317_s26 = int_to_ptr.vmem [resolvable:$true] %s316_s26 }
  0x96   : > { %s4064_s10 = scalar_lea.hbm %s314_s11, 16  ;;  %s4069_s20 = scalar_lea.hbm %s4818_s4, 32 }
  0x97   : > { %p4065_p8 = scmp.ne.s32.totalorder %s314_s11, %s4064_s10  ;;  %p4070_p13 = scmp.lt.u32.totalorder %s314_s11, %s4818_s4 }
  0x98   : > { %p4071_p11 = scmp.lt.u32.totalorder %s4069_s20, %s4064_s10  ;;  %p4073_p5 = scmp.lt.u32.totalorder %s4064_s10, %s314_s11 }
  0x99   : > { %p4067_p1 = pnand %p4065_p8, %p4334_p4 }
  0x9a   : > { %p4072_p2 = por %p4071_p11, %p4070_p13 }
  0x9b   : > { %p4068_p6 = pneg %p4067_p1 }
  0x9c   : > { %p4074_p7 = por %p4073_p5, %p4072_p2 }
  0x9e   : > { %p4075_p3 = pnand %p4074_p7, %p4068_p6 }
  0xa0   : > { %4078 = shalt.err (!%p4075_p3)
}
  0xa1   : > { %s4079_s9 = scalar_lea.vmem %s317_s26, 16  ;;  %s4192_s27 = smov [#allocation10]  }
  0xa2   : > { %p4080_p10 = scmp.ne.s32.totalorder %s317_s26, %s4079_s9  ;;  %s4084_s7 = sshll.u32 %s4192_s27, 4  ;;  %s4085_s7 = int_to_ptr.vmem [resolvable:$false] %s4084_s7 }
  0xa3   : > { %s4086_s16 = scalar_lea.vmem %s4085_s7, 32  ;;  %p4087_p8 = scmp.lt.s32.totalorder %s317_s26, %s4085_s7 }
  0xa4   : > { %p4082_p9 = pnand %p4080_p10, %p4334_p4  ;;  %p4088_p1 = scmp.lt.s32.totalorder %s4086_s16, %s4079_s9 }
  0xa6   : > { %p4083_p12 = pneg %p4082_p9  ;;  %p4089_p0 = por %p4088_p1, %p4087_p8 }
  0xa8   : > { %p4090_p11 = pnand %p4089_p0, %p4083_p12 }
  0xaa   : > { %4093 = shalt.err (!%p4090_p11)
}
  0xab   : > { %p4857_p13 = scmp.ne.s32.totalorder %s4845_s12, 0  ;;  %p4858_p6 = scmp.ne.s32.totalorder %s4850_s13, 0 }
  0xac   : > { %s4498_s0 = sand.u32 (!%p4858_p6), 1, %s4168_s19   ;;  %p4859_p0 = scmp.ne.s32.totalorder (!%p4858_p6), %s4840_s30, 0 }
  0xad   : > { %3864 = dma.hbm_to_vmem [thread:$0]  (!%p4857_p13), %s314_s11, 16, %s317_s26, %s4380_s25  }
  0xae   : > { %325 = sbr.rel (%p4858_p6) target bundleno = 1828 (0x724), region = 40  ;;  %s4501_s2 = sshll.u32 (!%p4858_p6), %s4498_s0, 5 }
  0xaf   : > { %s328_s29 = scalar_lea.sflag (!%p4858_p6), [#allocation3], %s4498_s0  ;;  %s331_s14 = scalar_lea.vmem (!%p4858_p6), [#allocation2], %s4501_s2 }
  0xb5   : > { %4147 = dma.done.wait (%p4859_p0), %s328_s29, 512  }
  0xb6   : > { %4149 = vsyncadd (%p4859_p0), %s328_s29, 4294966784  ;;  %s336_s12 = sand.u32 1, %s4262_s24   ;;  %s4511_s25 = scalar_lea.vmem [#allocation5], %s4501_s2 }
  0xb7   : > { %s337_s13 = scalar_lea.sflag [#allocation6], %s336_s12 }
  0xb8   : > { %4151 = dma.done.wait (%p4859_p0), %s337_s13, 1024  }
  0xb9   : > { %4153 = vsyncadd (%p4859_p0), %s337_s13, 4294966272  ;;  %s3836_s1 = smul.u32 40, %s4498_s0  ;;  %s4519_s8 = scalar_lea.vmem [#allocation7], %s4501_s2 }
  0xba   : > { %s355_s3 = scalar_lea.sflag [#allocation9], %s336_s12 }
  0xbb   : > { %s4521_s26 = scalar_lea.vmem [#allocation8], %s3836_s1 }
  0xbc   : > { %4155 = dma.done.wait (%p4859_p0), %s355_s3, 656  }
  0xbd   : > { %4157 = vsyncadd (%p4859_p0), %s355_s3, 4294966640  ;;  %v415_v0 = vld [vmem:[%s331_s14 + $0x10] sm:$0x1f]  ;;  %v413_v1 = vld [vmem:[%s331_s14] sm:$0x1f]  ;;  %v4193_v8 = vmov 0.0   ;;  %v568_v11 = vlaneseq }
  0xbe   : > { %v416_v2 = vld [vmem:[%s331_s14 + $0x18] sm:$0x1f]  ;;  %v4527_v3 = vmul.f32 0.35355338, %v415_v0  ;;  %v4529_v4 = vmul.f32 0.35355338, %v413_v1  ;;  %3744 = vmatprep.subr.mxu0 %v4193_v8  ;;  %3749 = vmatprep.subr.mxu1 %v4193_v8 }
  0xbf   : > { %v414_v5 = vld [vmem:[%s331_s14 + $0x8] sm:$0x1f]  ;;  %v4533_v6 = vmul.f32 0.35355338, %v416_v2  ;;  %v4194_v9 = vmov 1983009808  }
  0xc0   : > { %499 = vxpose.xlu1.b32.start.end [1/1] (short) (narrow) %v4527_v3, 8  ;;  %435 = vxpose.xlu0.b32.start.end [1/1] (short) (narrow) %v4529_v4, 8  ;;  %v4535_v7 = vmul.f32 0.35355338, %v414_v5  ;;  %v566_v10 = vunpack.c.l.s4 %v4194_v9  ;;  %v569_v13 = vshrl.u32 %v568_v11, 7  ;;  %vm4196_vm0 = vmmov 0  }
  0xc1   : > { %v4195_v14 = vmov 1934713408   ;;  %3746 = vmatprep.mubr.msk.f32.mxu0 %vm4196_vm0, %v4193_v8  ;;  %3751 = vmatprep.mubr.msk.f32.mxu1 %vm4196_vm0, %v4193_v8  ;;  %vm1004_vm1 = vcmask 64512   ;;  %s366_s24 = scalar_lea.vmem [#allocation10], %s4498_s0  ;;  %vm1902_vm2 = vcmask 36864   ;;  %s4197_s30 = smov 120  }
  0xc2   : > { %v567_v12 = vunpack.c.0.s8 %v566_v10  ;;  %v598_v15 = vunpack.c.l.s4 %v4195_v14  ;;  %vm2416_vm3 = vcmask 1044480   ;;  %vm2412_vm4 = vcmask 39936   ;;  %s3707_s28 = sshll.u32 %s4176_s21, 9  ;;  %s411_s17 = scalar_lea.vmem [#allocation11], %s4501_s2 }
  0xc3   : > { %s3476_s11 = sshll.u32 %s411_s17, 4  ;;  %vm3456_vm5 = vcmask 61440   ;;  %s4763_s15 = scalar_lea.hbm %s4819_s5, %s3707_s28  ;;  %s4765_s11 = int_to_ptr.vmem [resolvable:$true] %s3476_s11 }
  0xc4   : > { %531 = vxpose.xlu1.b32.start.end [1/1] (short) (narrow) %v4533_v6, 8  ;;  %467 = vxpose.xlu0.b32.start.end [1/1] (short) (narrow) %v4535_v7, 8  ;;  %v4541_v18 = vsub.s32 %v567_v12, %v569_v13  ;;  %v599_v20 = vunpack.c.0.s8 %v598_v15  ;;  %s3462_s21 = scalar_lea.sflag [#allocation4], %s4498_s0  ;;  %s4094_s20 = scalar_lea.vmem %s4765_s11, 512 }
  0xc5   : > { %p4095_p4 = scmp.ne.s32.totalorder %s4765_s11, %s4094_s20  ;;  %p4860_p2 = scmp.ne.s32.totalorder %s4841_s6, 0 }
  0xc6   : > { %v4545_v28 = vsub.s32 %v599_v20, %v569_v13  ;;  %v4573_v20 = vld [vmem:[%s4521_s26] sm:$0x1f]  ;;  %s4198_s9 = smov [#allocation11]  }
  0xc7   : > { %p4096_p5 = pnand %p4095_p4, %p4860_p2  ;;  %s4098_s27 = sshll.u32 %s4198_s9, 4  ;;  %s4099_s27 = int_to_ptr.vmem [resolvable:$false] %s4098_s27 }
  0xc8   : > { %s4100_s7 = scalar_lea.vmem %s4099_s27, 1024  ;;  %p4101_p3 = scmp.lt.s32.totalorder %s4765_s11, %s4099_s27 }
  0xc9   : > { %p4097_p7 = pneg %p4096_p5  ;;  %p4102_p10 = scmp.lt.s32.totalorder %s4100_s7, %s4094_s20 }
  0xcb   : > { %p4103_p9 = por %p4102_p10, %p4101_p3 }
  0xcd   : > { %p4104_p12 = pnand %p4103_p9, %p4097_p7 }
 0x140   : > { %v515_v16 = vpop.trf.xlu1  ;;  %v451_v17 = vpop.trf.xlu0 }
 0x141   : > { %v563_v19 = vcombine.low %v451_v17, %v515_v16  ;;  %v564_v25 = vcombine.high %v451_v17, %v515_v16 }
 0x143   : > { %v571_v26 = vrot.slane %v563_v19, %v4541_v18  ;;  %v578_v32 = vrot.slane %v564_v25, %v4541_v18 }
 0x144   : > { %v547_v21 = vpop.trf.xlu1  ;;  %v483_v22 = vpop.trf.xlu0 }
 0x145   : > { %v579_v23 = vcombine.low %v483_v22, %v547_v21  ;;  %v580_v24 = vcombine.high %v483_v22, %v547_v21  ;;  %v4576_v21 = vld [vmem:[%s4521_s26 + $0x8] sm:$0x1f] }
 0x147   : > { %v587_v27 = vrot.slane %v579_v23, %v4541_v18  ;;  %v594_v29 = vrot.slane %v580_v24, %v4541_v18 }
 0x149   : > { %v595_v30 = vcombine.low %v571_v26, %v587_v27  ;;  %v596_v31 = vcombine.high %v571_v26, %v587_v27  ;;  %v611_v36 = vcombine.low %v578_v32, %v594_v29  ;;  %v612_v39 = vcombine.high %v578_v32, %v594_v29  ;;  %v4588_v27 = vld [vmem:[%s4521_s26 + $0x10] sm:$0x1f]  ;;  %v4591_v29 = vld [vmem:[%s4521_s26 + $0x18] sm:$0x1f] }
 0x14a   : > { %v421_v32 = vld [vmem:[%s4511_s25] sm:$0x1f] }
 0x14b   : > { %v603_v33 = vrot.slane %v595_v30, %v4545_v28  ;;  %v610_v35 = vrot.slane %v596_v31, %v4545_v28  ;;  %v619_v38 = vrot.slane %v611_v36, %v4545_v28  ;;  %v626_v41 = vrot.slane %v612_v39, %v4545_v28  ;;  %v4603_v31 = vld [vmem:[%s4521_s26 + $0x20] sm:$0x1f] }
 0x14d   : > { %631 = vxpose.xlu0.b32.start.end [1/1] (short) (narrow) %v603_v33, 8  ;;  %v627_v34 = vcombine.high %v603_v33, %v4193_v8  ;;  %v628_v37 = vcombine.high %v610_v35, %v4193_v8  ;;  %v629_v40 = vcombine.high %v619_v38, %v4193_v8  ;;  %v630_v42 = vcombine.high %v626_v41, %v4193_v8  ;;  %v422_v33 = vld [vmem:[%s4511_s25 + $0x8] sm:$0x1f] }
 0x14f   : > { %663 = vxpose.xlu1.b32.start.end [1/1] (short) (narrow) %v627_v34, 8  ;;  %v423_v34 = vld [vmem:[%s4511_s25 + $0x10] sm:$0x1f] }
 0x151   : > { %695 = vxpose.xlu0.b32.start.end [1/1] (short) (narrow) %v610_v35, 8  ;;  %v424_v35 = vld [vmem:[%s4511_s25 + $0x18] sm:$0x1f] }
 0x153   : > { %727 = vxpose.xlu1.b32.start.end [1/1] (short) (narrow) %v628_v37, 8 }
 0x155   : > { %759 = vxpose.xlu0.b32.start.end [1/1] (short) (narrow) %v619_v38, 8 }
 0x157   : > { %791 = vxpose.xlu1.b32.start.end [1/1] (short) (narrow) %v629_v40, 8 }
 0x159   : > { %823 = vxpose.xlu0.b32.start.end [1/1] (short) (narrow) %v626_v41, 8 }
 0x15b   : > { %855 = vxpose.xlu1.b32.start.end [1/1] (short) (narrow) %v630_v42, 8 }
 0x1cd   : > { %v647_v43 = vpop.trf.xlu0 }
 0x1cf   : > { %v679_v44 = vpop.trf.xlu1 }
 0x1d1   : > { %v711_v45 = vpop.trf.xlu0 }
 0x1d2   : > { %v887_v49 = vcombine.low %v647_v43, %v711_v45  ;;  %v888_v60 = vcombine.high %v647_v43, %v711_v45 }
 0x1d3   : > { %v743_v46 = vpop.trf.xlu1 }
 0x1d4   : > { %v903_v48 = vcombine.low %v679_v44, %v743_v46  ;;  %v895_v54 = vrot.slane %v887_v49, %v4541_v18  ;;  %v904_v56 = vcombine.high %v679_v44, %v743_v46  ;;  %v902_v11 = vrot.slane %v888_v60, %v4541_v18 }
 0x1d5   : > { %v775_v47 = vpop.trf.xlu0 }
 0x1d6   : > { %v911_v52 = vrot.slane %v903_v48, %v4541_v18  ;;  %v918_v1 = vrot.slane %v904_v56, %v4541_v18 }
 0x1d7   : > { %v807_v50 = vpop.trf.xlu1 }
 0x1d8   : > { %v951_v0 = vcombine.low %v895_v54, %v911_v52  ;;  %v952_v10 = vcombine.high %v895_v54, %v911_v52  ;;  %v967_v16 = vcombine.low %v902_v11, %v918_v1  ;;  %v3680_v11 = vld [vmem:[%s366_s24] ss:$0 sm:$0xff] }
 0x1d9   : > { %v839_v51 = vpop.trf.xlu0 }
 0x1da   : > { %v919_v53 = vcombine.low %v775_v47, %v839_v51  ;;  %v920_v57 = vcombine.high %v775_v47, %v839_v51  ;;  %v959_v13 = vrot.slane %v951_v0, %v4545_v28  ;;  %v966_v22 = vrot.slane %v952_v10, %v4545_v28 }
 0x1db   : > { %v871_v55 = vpop.trf.xlu1  ;;  %v974_v26 = vrot.slane %v967_v16, %v4545_v28 }
 0x1dc   : > { %v935_v58 = vcombine.low %v807_v50, %v871_v55  ;;  %v936_v59 = vcombine.high %v807_v50, %v871_v55  ;;  %v927_v61 = vrot.slane %v919_v53, %v4541_v18  ;;  %v934_v2 = vrot.slane %v920_v57, %v4541_v18 }
 0x1de   : > { %v943_v62 = vrot.slane %v935_v58, %v4541_v18  ;;  %v950_v63 = vrot.slane %v936_v59, %v4541_v18 }
 0x1e0   : > { %v976_v5 = vcombine.high %v927_v61, %v943_v62  ;;  %v975_v9 = vcombine.low %v927_v61, %v943_v62  ;;  %v991_v12 = vcombine.low %v934_v2, %v950_v63 }
 0x1e2   : > { %v983_v14 = vrot.slane %v975_v9, %v4545_v28  ;;  %v990_v15 = vrot.slane %v976_v5, %v4545_v28  ;;  %v998_v23 = vrot.slane %v991_v12, %v4545_v28 }
 0x1e4   : > { %v999_v17 = vcombine.low %v959_v13, %v983_v14  ;;  %v1000_v19 = vcombine.high %v959_v13, %v983_v14  ;;  %v1001_v24 = vcombine.low %v966_v22, %v990_v15  ;;  %v1002_v25 = vcombine.high %v966_v22, %v990_v15 }
 0x1e5   : > { %v1003_v30 = vcombine.low %v974_v26, %v998_v23 }
 0x1e6   : > { %3745 = vmatpush3.msra.mxu0 %v999_v17  ;;  %3750 = vmatpush3.msra.mxu1 %v1000_v19 }
 0x1e7   : > { %3747 = vmatmul.mubr.msk.f32.vlgmr.msra.gmra.mrb[0].mxu0 %vm1004_vm1, %v4573_v20  ;;  %3752 = vmatmul.mubr.msk.f32.vlgmr.msra.gmra.mrb[0].mxu1 %vm1004_vm1, %v4576_v21 }
 0x1e8   : > { %3754 = vmatprep.subr.mxu0 %v4193_v8  ;;  %3759 = vmatprep.subr.mxu1 %v4193_v8 }
 0x1e9   : > { %3755 = vmatpush3.msra.mxu0 %v1001_v24  ;;  %3760 = vmatpush3.msra.mxu1 %v1002_v25 }
 0x1ea   : > { %3756 = vmatprep.mubr.msk.f32.mxu0 %vm4196_vm0, %v4193_v8  ;;  %3761 = vmatprep.mubr.msk.f32.mxu1 %vm4196_vm0, %v4193_v8 }
 0x1eb   : > { %3764 = vmatprep.subr.mxu0 %v4193_v8  ;;  %3757 = vmatmul.mubr.msk.f32.vlgmr.msra.gmra.mrb[2].mxu0 %vm1004_vm1, %v4588_v27 }
 0x1ec   : > { %3762 = vmatmul.mubr.msk.f32.vlgmr.msra.gmra.mrb[2].mxu1 %vm1004_vm1, %v4591_v29  ;;  %3765 = vmatpush3.msra.mxu0 %v1003_v30 }
 0x1ed   : > { %3766 = vmatprep.mubr.msk.f32.mxu0 %vm4196_vm0, %v4193_v8  ;;  %3769 = vmatprep.subr.mxu1 %v4193_v8 }
 0x1ee   : > { %3774 = vmatprep.subr.mxu0 %v4193_v8  ;;  %3771 = vmatprep.mubr.msk.f32.mxu1 %vm4196_vm0, %v4193_v8 }
 0x1ef   : > { %3767 = vmatmul.mubr.msk.f32.vlgmr.msra.gmra.mrb[4].mxu0 %vm1004_vm1, %v4603_v31 }
 0x1f0   : > { %3770 = vmatpush3.xpose.msk.msra.mxu1 %vm1004_vm1, %v421_v32  ;;  %3776 = vmatprep.mubr.msk.f32.mxu0 %vm4196_vm0, %v4193_v8 }
 0x1f1   : > { %3779 = vmatprep.subr.mxu1 %v4193_v8 }
 0x1f3   : > { %3775 = vmatpush3.xpose.msk.msra.mxu0 %vm1004_vm1, %v422_v33  ;;  %3772 = vmatmul.mubr.msk.f32.vlgmr.msra.gmra.mrb[4].mxu1 %vm1004_vm1, %v4529_v4 }
 0x1f4   : > { %3784 = vmatprep.subr.mxu0 %v4193_v8  ;;  %3780 = vmatpush3.xpose.msk.msra.mxu1 %vm1004_vm1, %v423_v34 }
 0x1f5   : > { %3781 = vmatprep.mubr.msk.f32.mxu1 %vm4196_vm0, %v4193_v8  ;;  %3789 = vmatprep.subr.mxu1 %v4193_v8 }
 0x1f6   : > { %3777 = vmatmul.mubr.msk.f32.vlgmr.msra.gmra.mrb[6].mxu0 %vm1004_vm1, %v4535_v7 }
 0x1f7   : > { %3785 = vmatpush3.xpose.msk.msra.mxu0 %vm1004_vm1, %v424_v35  ;;  %3786 = vmatprep.mubr.msk.f32.mxu0 %vm4196_vm0, %v4193_v8 }
 0x1f8   : > { %3782 = vmatmul.mubr.msk.f32.vlgmr.msra.gmra.mrb[6].mxu1 %vm1004_vm1, %v4527_v3  ;;  %3794 = vmatprep.subr.mxu0 %v4193_v8 }
 0x1f9   : > { %3791 = vmatprep.mubr.msk.f32.mxu1 %vm4196_vm0, %v4193_v8 }
 0x1fa   : > { %3787 = vmatmul.mubr.msk.f32.vlgmr.msra.gmra.mrb[8].mxu0 %vm1004_vm1, %v4533_v6 }
 0x1fb   : > { %3796 = vmatprep.mubr.msk.f32.mxu0 %vm4196_vm0, %v4193_v8 }
 0x2ba   : > { %v1074_v4 = vpop.f32.mrb[0].mxu0  ;;  %v1147_v7 = vpop.f32.mrb[0].mxu1 }
 0x2bb   : > { %1402 = vxpose.xlu1.b32.start.end [1/1] (short) (narrow) %v1147_v7, 8  ;;  %v3753_v36 = vpop.f32.mrb[1].mxu1  ;;  %1370 = vxpose.xlu0.b32.start.end [1/1] (short) (narrow) %v1074_v4, 8  ;;  %v3748_v37 = vpop.f32.mrb[1].mxu0 }
 0x2be   : > { %v1220_v38 = vpop.f32.mrb[2].mxu0 }
 0x2bf   : > { %v1293_v39 = vpop.f32.mrb[2].mxu1  ;;  %1434 = vxpose.xlu0.b32.start.end [1/1] (short) (narrow) %v1220_v38, 8  ;;  %v3758_v3 = vpop.f32.mrb[3].mxu0 }
 0x2c0   : > { %1466 = vxpose.xlu1.b32.start.end [1/1] (short) (narrow) %v1293_v39, 8  ;;  %v3763_v40 = vpop.f32.mrb[3].mxu1 }
 0x2c2   : > { %v1366_v41 = vpop.f32.mrb[4].mxu0 }
 0x2c3   : > { %1498 = vxpose.xlu0.b32.start.end [1/1] (short) (narrow) %v1366_v41, 8  ;;  %v3768_v42 = vpop.f32.mrb[5].mxu0 }
 0x2c6   : > { %v1660_v43 = vpop.f32.mrb[4].mxu1 }
 0x2c7   : > { %v3773_v6 = vpop.f32.mrb[5].mxu1 }
 0x2c9   : > { %v1736_v44 = vpop.f32.mrb[6].mxu0 }
 0x2ca   : > { %v3778_v45 = vpop.f32.mrb[7].mxu0 }
 0x2cb   : > { %v1812_v46 = vpop.f32.mrb[6].mxu1 }
 0x2cc   : > { %v3783_v47 = vpop.f32.mrb[7].mxu1 }
 0x2cd   : > { %v1888_v48 = vpop.f32.mrb[8].mxu0 }
 0x2ce   : > { %v3788_v49 = vpop.f32.mrb[9].mxu0 }
 0x33b   : > { %v1418_v50 = vpop.trf.xlu1  ;;  %v1386_v51 = vpop.trf.xlu0 }
 0x33f   : > { %v1450_v52 = vpop.trf.xlu0 }
 0x340   : > { %v1482_v53 = vpop.trf.xlu1  ;;  %v1530_v54 = vcombine.low %v1386_v51, %v1450_v52 }
 0x341   : > { %v1538_v55 = vcombine.low %v1418_v50, %v1482_v53 }
 0x342   : > { %v1537_v56 = vrot.slane %v1530_v54, %v4541_v18 }
 0x343   : > { %v1545_v57 = vrot.slane %v1538_v55, %v4541_v18  ;;  %v1514_v58 = vpop.trf.xlu0 }
 0x344   : > { %v1552_v59 = vrot.slane %v1514_v58, %v4541_v18 }
 0x345   : > { %v1553_v60 = vcombine.low %v1537_v56, %v1545_v57  ;;  %v1554_v61 = vcombine.high %v1537_v56, %v1545_v57 }
 0x346   : > { %v1569_v62 = vcombine.high %v1552_v59, %v4193_v8  ;;  %v1576_v63 = vrot.slane %v1552_v59, %v4545_v28 }
 0x347   : > { %v1561_v0 = vrot.slane %v1553_v60, %v4545_v28  ;;  %v1568_v1 = vrot.slane %v1554_v61, %v4545_v28 }
 0x348   : > { %v1583_v2 = vrot.slane %v1569_v62, %v4545_v28 }
 0x349   : > { %v1584_v5 = vcombine.low %v1561_v0, %v1576_v63  ;;  %v1585_v9 = vcombine.high %v1561_v0, %v1576_v63 }
 0x34a   : > { %v1586_v10 = vcombine.low %v1568_v1, %v1583_v2  ;;  %v1587_v14 = vcombine.high %v1568_v1, %v1583_v2 }
 0x34b   : > { %v1661_v12 = vadd.f32 %v1660_v43, %v1584_v5  ;;  %v1737_v13 = vadd.f32 %v1736_v44, %v1585_v9 }
 0x34c   : > { %v1813_v15 = vadd.f32 %v1812_v46, %v1586_v10  ;;  %v1889_v19 = vadd.f32 %v1888_v48, %v1587_v14 }
 0x34d   : > { %v1898_v16 = vadd.f32 %v3680_v11, %v1661_v12  ;;  %v1899_v17 = vadd.f32 %v3680_v11, %v1737_v13 }
 0x34e   : > { %v1900_v24 = vadd.f32 %v3680_v11, %v1813_v15  ;;  %v1901_v26 = vadd.f32 %v3680_v11, %v1889_v19 }
 0x34f   : > { %v1903_v22 = vsel %vm1902_vm2, %v1898_v16, -inf  ;;  %v1906_v23 = vsel %vm1902_vm2, %v1899_v17, -inf }
 0x350   : > { %1904 = vmax.xlane.f32.xlu1 %v1903_v22  ;;  %1907 = vmax.xlane.f32.xlu0 %v1906_v23  ;;  %v1909_v25 = vsel %vm1902_vm2, %v1900_v24, -inf  ;;  %v1912_v30 = vsel %vm1902_vm2, %v1901_v26, -inf }
 0x354   : > { %1910 = vmax.xlane.f32.xlu1 %v1909_v25 }
 0x358   : > { %1913 = vmax.xlane.f32.xlu1 %v1912_v30 }
 0x369   : > { %2377 = vrot.lane.b32.xlu1 %v4573_v20, %s4197_s30 }
 0x3dd   : > { %v1905_v32 = vpop.xlane.xlu1 %1904  ;;  %v1908_v33 = vpop.xlane.xlu0 %1907 }
 0x3de   : > { %v1915_v34 = vsub.f32 %v1898_v16, %v1905_v32  ;;  %v1916_v35 = vsub.f32 %v1899_v17, %v1908_v33 }
 0x3e0   : > { %v1919_v4 = vmul.f32 1.442695, %v1915_v34  ;;  %v1921_v7 = vmul.f32 1.442695, %v1916_v35 }
 0x3e1   : > { %v1911_v36 = vpop.xlane.xlu1 %1910 }
 0x3e2   : > { %3928 = vpow2.f32 %v1919_v4  ;;  %v1917_v37 = vsub.f32 %v1900_v24, %v1911_v36 }
 0x3e3   : > { %3930 = vpow2.f32 %v1921_v7 }
 0x3e4   : > { %v1923_v38 = vmul.f32 1.442695, %v1917_v37 }
 0x3e5   : > { %v1914_v39 = vpop.xlane.xlu1 %1913 }
 0x3e6   : > { %3932 = vpow2.f32 %v1923_v38  ;;  %v1918_v3 = vsub.f32 %v1901_v26, %v1914_v39 }
 0x3e8   : > { %v1925_v40 = vmul.f32 1.442695, %v1918_v3 }
 0x3e9   : > { %v2378_v47 = vpop.permute.xlu1 %2377 }
 0x3ea   : > { %3934 = vpow2.f32 %v1925_v40 }
 0x3ec   : > { %v3929_v41 = vpop.eup %3928 }
 0x3ed   : > { %v3931_v42 = vpop.eup %3930  ;;  %v1927_v20 = vsel %vm1902_vm2, %v3929_v41, 0.0 }
 0x3ee   : > { %v1930_v43 = vsel %vm1902_vm2, %v3931_v42, 0.0  ;;  %1928 = vadd.xlane.f32.xlu1 %v1927_v20 }
 0x3ef   : > { %1931 = vadd.xlane.f32.xlu0 %v1930_v43 }
 0x3f0   : > { %v3933_v6 = vpop.eup %3932 }
 0x3f1   : > { %v1933_v44 = vsel %vm1902_vm2, %v3933_v6, 0.0 }
 0x3f2   : > { %1934 = vadd.xlane.f32.xlu1 %v1933_v44 }
 0x3f4   : > { %v3935_v45 = vpop.eup %3934 }
 0x3f5   : > { %v1936_v46 = vsel %vm1902_vm2, %v3935_v45, 0.0 }
 0x3f6   : > { %1937 = vadd.xlane.f32.xlu0 %v1936_v46 }
 0x47b   : > { %v1929_v48 = vpop.xlane.xlu1 %1928 }
 0x47c   : > { %v1932_v49 = vpop.xlane.xlu0 %1931  ;;  %3936 = vrcp.f32 %v1929_v48 }
 0x47d   : > { %3938 = vrcp.f32 %v1932_v49 }
 0x47f   : > { %v1935_v50 = vpop.xlane.xlu1 %1934 }
 0x480   : > { %3940 = vrcp.f32 %v1935_v50 }
 0x483   : > { %v1938_v51 = vpop.xlane.xlu0 %1937 }
 0x484   : > { %3942 = vrcp.f32 %v1938_v51 }
 0x486   : > { %v3937_v52 = vpop.eup %3936 }
 0x487   : > { %v3939_v53 = vpop.eup %3938  ;;  %v4662_v54 = vmul.f32 %v3937_v52, %v3929_v41 }
 0x488   : > { %v4664_v55 = vmul.f32 %v3939_v53, %v3931_v42 }
 0x489   : > { %1947 = vxpose.xlu0.b32.start.end [1/1] (short) (narrow) %v4662_v54, 8 }
 0x48a   : > { %v3941_v56 = vpop.eup %3940  ;;  %1979 = vxpose.xlu1.b32.start.end [1/1] (short) (narrow) %v4664_v55, 8 }
 0x48b   : > { %v4668_v57 = vmul.f32 %v3941_v56, %v3933_v6 }
 0x48d   : > { %2011 = vxpose.xlu0.b32.start.end [1/1] (short) (narrow) %v4668_v57, 8 }
 0x48e   : > { %v3943_v58 = vpop.eup %3942 }
 0x48f   : > { %v4671_v59 = vmul.f32 %v3943_v58, %v3935_v45 }
 0x491   : > { %2043 = vxpose.xlu0.b32.start.end [1/1] (short) (narrow) %v4671_v59, 8 }
 0x4a8   : > { %2601 = vrot.lane.b32.xlu1 %v4588_v27, %s4197_s30 }
 0x4ac   : > { %2712 = vrot.lane.b32.xlu1 %v4591_v29, %s4197_s30 }
 0x4b0   : > { %2823 = vrot.lane.b32.xlu1 %v4603_v31, %s4197_s30 }
 0x4ba   : > { %2490 = vrot.lane.b32.xlu0 %v4576_v21, %s4197_s30 }
 0x509   : > { %v1963_v60 = vpop.trf.xlu0 }
 0x50a   : > { %v1995_v62 = vpop.trf.xlu1 }
 0x50d   : > { %v2027_v61 = vpop.trf.xlu0 }
 0x50e   : > { %v2075_v63 = vcombine.low %v1963_v60, %v2027_v61  ;;  %v2076_v11 = vcombine.high %v1963_v60, %v2027_v61  ;;  %v425_v60 = vld [vmem:[%s4519_s8] sm:$0x1f] }
 0x510   : > { %v2083_v2 = vrot.slane %v2075_v63, %v4541_v18  ;;  %v2090_v14 = vrot.slane %v2076_v11, %v4541_v18  ;;  %v427_v63 = vld [vmem:[%s4519_s8 + $0x10] sm:$0x1f] }
 0x511   : > { %v2059_v0 = vpop.trf.xlu0 }
 0x512   : > { %v2091_v1 = vcombine.low %v1995_v62, %v2059_v0  ;;  %v2092_v9 = vcombine.high %v1995_v62, %v2059_v0  ;;  %v426_v62 = vld [vmem:[%s4519_s8 + $0x8] sm:$0x1f]  ;;  %v428_v0 = vld [vmem:[%s4519_s8 + $0x18] sm:$0x1f] }
 0x514   : > { %v2099_v5 = vrot.slane %v2091_v1, %v4541_v18  ;;  %v2106_v12 = vrot.slane %v2092_v9, %v4541_v18 }
 0x516   : > { %v2107_v27 = vcombine.low %v2083_v2, %v2099_v5  ;;  %v2108_v10 = vcombine.high %v2083_v2, %v2099_v5  ;;  %v2123_v17 = vcombine.low %v2090_v14, %v2106_v12 }
 0x518   : > { %v2115_v29 = vrot.slane %v2107_v27, %v4545_v28  ;;  %v2122_v13 = vrot.slane %v2108_v10, %v4545_v28  ;;  %v2132_v19 = vrot.slane %v2123_v17, %v4545_v28 }
 0x51a   : > { %2133 = vxpose.xlu0.b32.start.end [1/1] (short) (narrow) %v2115_v29, 8  ;;  %v2124_v31 = vcombine.high %v2115_v29, %v4193_v8  ;;  %v2602_v21 = vpop.permute.xlu1 %2601  ;;  %v2125_v16 = vcombine.high %v2122_v13, %v4193_v8 }
 0x51c   : > { %2165 = vxpose.xlu1.b32.start.end [1/1] (short) (narrow) %v2124_v31, 8 }
 0x51e   : > { %2197 = vxpose.xlu0.b32.start.end [1/1] (short) (narrow) %v2122_v13, 8  ;;  %v2713_v15 = vpop.permute.xlu1 %2712 }
 0x520   : > { %2380 = vxpose.xlu1.b32.start.end [1/1] (short) (narrow) %v2378_v47, 8 }
 0x522   : > { %2229 = vxpose.xlu0.b32.start.end [1/1] (short) (narrow) %v2125_v16, 8  ;;  %v2824_v22 = vpop.permute.xlu1 %2823 }
 0x524   : > { %2604 = vxpose.xlu1.b32.start.end [1/1] (short) (narrow) %v2602_v21, 8 }
 0x526   : > { %2261 = vxpose.xlu0.b32.start.end [1/1] (short) (narrow) %v2132_v19, 8 }
 0x528   : > { %2826 = vxpose.xlu1.b32.start.end [1/1] (short) (narrow) %v2824_v22, 8 }
 0x52c   : > { %v2491_v23 = vpop.permute.xlu0 %2490 }
 0x52d   : > { %2493 = vxpose.xlu0.b32.start.end [1/1] (short) (narrow) %v2491_v23, 8 }
 0x531   : > { %2715 = vxpose.xlu0.b32.start.end [1/1] (short) (narrow) %v2713_v15, 8 }
 0x59a   : > { %v2149_v24 = vpop.trf.xlu0 }
 0x59c   : > { %v2181_v26 = vpop.trf.xlu1 }
 0x59e   : > { %v2213_v25 = vpop.trf.xlu0 }
 0x59f   : > { %v2293_v30 = vcombine.low %v2149_v24, %v2213_v25  ;;  %v2294_v35 = vcombine.high %v2149_v24, %v2213_v25 }
 0x5a0   : > { %v2396_v41 = vpop.trf.xlu1 }
 0x5a1   : > { %v2301_v4 = vrot.slane %v2293_v30, %v4541_v18  ;;  %v2308_v40 = vrot.slane %v2294_v35, %v4541_v18 }
 0x5a2   : > { %v2245_v32 = vpop.trf.xlu0 }
 0x5a3   : > { %v2309_v33 = vcombine.low %v2181_v26, %v2245_v32  ;;  %v2310_v34 = vcombine.high %v2181_v26, %v2245_v32 }
 0x5a4   : > { %v2620_v52 = vpop.trf.xlu1 }
 0x5a5   : > { %v2317_v7 = vrot.slane %v2309_v33, %v4541_v18  ;;  %v2324_v36 = vrot.slane %v2310_v34, %v4541_v18 }
 0x5a6   : > { %v2277_v37 = vpop.trf.xlu0 }
 0x5a7   : > { %v2332_v38 = vcombine.low %v2301_v4, %v2317_v7  ;;  %v2333_v39 = vcombine.high %v2301_v4, %v2317_v7  ;;  %v2331_v3 = vrot.slane %v2277_v37, %v4541_v18  ;;  %v2348_v43 = vcombine.low %v2308_v40, %v2324_v36 }
 0x5a8   : > { %v2371_v53 = vcombine.high %v2277_v37, %v4193_v8  ;;  %v2842_v61 = vpop.trf.xlu1 }
 0x5a9   : > { %v2340_v42 = vrot.slane %v2332_v38, %v4545_v28  ;;  %v2356_v20 = vcombine.high %v2331_v3, %v4193_v8  ;;  %v2363_v6 = vrot.slane %v2331_v3, %v4545_v28  ;;  %v2347_v44 = vrot.slane %v2333_v39, %v4545_v28 }
 0x5aa   : > { %v2355_v51 = vrot.slane %v2348_v43, %v4545_v28 }
 0x5ab   : > { %v2370_v45 = vrot.slane %v2356_v20, %v4545_v28  ;;  %v2372_v46 = vcombine.low %v2340_v42, %v2363_v6  ;;  %v2373_v47 = vcombine.high %v2340_v42, %v2363_v6 }
 0x5ac   : > { %v2376_v58 = vcombine.low %v2355_v51, %v2371_v53 }
 0x5ad   : > { %v2374_v48 = vcombine.low %v2347_v44, %v2370_v45  ;;  %v2375_v49 = vcombine.high %v2347_v44, %v2370_v45  ;;  %v2509_v50 = vpop.trf.xlu0  ;;  %3790 = vmatpush3.msk.msra.mxu1 %vm2416_vm3, %v2372_v46  ;;  %3795 = vmatpush3.msk.msra.mxu0 %vm2416_vm3, %v2373_v47 }
 0x5ae   : > { %3792 = vmatmul.mubr.msk.f32.vlgmr.msra.gmra.mrb[8].mxu1 %vm2412_vm4, %v2396_v41  ;;  %3797 = vmatmul.mubr.msk.f32.vlgmr.msra.gmra.mrb[10].mxu0 %vm2412_vm4, %v2509_v50 }
 0x5af   : > { %3799 = vmatprep.subr.mxu1 %v4193_v8  ;;  %3804 = vmatprep.subr.mxu0 %v4193_v8 }
 0x5b0   : > { %3800 = vmatpush3.msk.msra.mxu1 %vm2416_vm3, %v2374_v48  ;;  %3805 = vmatpush3.msk.msra.mxu0 %vm2416_vm3, %v2375_v49 }
 0x5b1   : > { %v2731_v56 = vpop.trf.xlu0  ;;  %3801 = vmatprep.mubr.msk.f32.mxu1 %vm4196_vm0, %v4193_v8  ;;  %3806 = vmatprep.mubr.msk.f32.mxu0 %vm4196_vm0, %v4193_v8 }
 0x5b2   : > { %3809 = vmatprep.subr.mxu1 %v4193_v8  ;;  %3802 = vmatmul.mubr.msk.f32.vlgmr.msra.gmra.mrb[10].mxu1 %vm2412_vm4, %v2620_v52 }
 0x5b3   : > { %3807 = vmatmul.mubr.msk.f32.vlgmr.msra.gmra.mrb[12].mxu0 %vm2412_vm4, %v2731_v56  ;;  %3810 = vmatpush3.msk.msra.mxu1 %vm2416_vm3, %v2376_v58 }
 0x5b4   : > { %3814 = vmatprep.subr.mxu0 %v4193_v8  ;;  %3811 = vmatprep.mubr.msk.f32.mxu1 %vm4196_vm0, %v4193_v8 }
 0x5b5   : > { %3815 = vmatpush3.msk.msra.mxu0 %vm2416_vm3, %v425_v60  ;;  %3816 = vmatprep.mubr.msk.f32.mxu0 %vm4196_vm0, %v4193_v8 }
 0x5b6   : > { %3812 = vmatmul.mubr.msk.f32.vlgmr.msra.gmra.mrb[12].mxu1 %vm2412_vm4, %v2842_v61  ;;  %3819 = vmatprep.subr.mxu1 %v4193_v8 }
 0x5b7   : > { %3817 = vmatmul.mubr.msk.f32.vlgmr.msra.gmra.mrb[14].mxu0 %vm2412_vm4, %v4662_v54  ;;  %3824 = vmatprep.subr.mxu0 %v4193_v8 }
 0x5b8   : > { %3820 = vmatpush3.msk.msra.mxu1 %vm2416_vm3, %v426_v62  ;;  %3821 = vmatprep.mubr.msk.f32.mxu1 %vm4196_vm0, %v4193_v8 }
 0x5b9   : > { %3825 = vmatpush3.msk.msra.mxu0 %vm2416_vm3, %v427_v63  ;;  %3826 = vmatprep.mubr.msk.f32.mxu0 %vm4196_vm0, %v4193_v8 }
 0x5ba   : > { %3822 = vmatmul.mubr.msk.f32.vlgmr.msra.gmra.mrb[14].mxu1 %vm2412_vm4, %v4664_v55  ;;  %3829 = vmatprep.subr.mxu1 %v4193_v8 }
 0x5bb   : > { %3827 = vmatmul.mubr.msk.f32.vlgmr.msra.gmra.mrb[16].mxu0 %vm2412_vm4, %v4668_v57  ;;  %3830 = vmatpush3.msk.msra.mxu1 %vm2416_vm3, %v428_v0 }
 0x5bc   : > { %3831 = vmatprep.mubr.msk.f32.mxu1 %vm4196_vm0, %v4193_v8 }
 0x5be   : > { %3832 = vmatmul.mubr.msk.f32.vlgmr.msra.gmra.mrb[16].mxu1 %vm2412_vm4, %v4671_v59 }
 0x681   : > { %v2486_v54 = vpop.f32.mrb[8].mxu1  ;;  %v2597_v1 = vpop.f32.mrb[10].mxu0 }
 0x682   : > { %2934 = vxpose.xlu0.b32.start.end [1/1] (short) (narrow) %v2486_v54, 8  ;;  %2966 = vxpose.xlu1.b32.start.end [1/1] (short) (narrow) %v2597_v1, 8  ;;  %v3793_v2 = vpop.f32.mrb[9].mxu1  ;;  %v3798_v5 = vpop.f32.mrb[11].mxu0 }
 0x685   : > { %v2708_v55 = vpop.f32.mrb[10].mxu1 }
 0x686   : > { %v2819_v27 = vpop.f32.mrb[12].mxu0  ;;  %2998 = vxpose.xlu0.b32.start.end [1/1] (short) (narrow) %v2708_v55, 8  ;;  %v3803_v9 = vpop.f32.mrb[11].mxu1 }
 0x687   : > { %3030 = vxpose.xlu1.b32.start.end [1/1] (short) (narrow) %v2819_v27, 8  ;;  %v3808_v57 = vpop.f32.mrb[13].mxu0 }
 0x689   : > { %v2930_v29 = vpop.f32.mrb[12].mxu1 }
 0x68a   : > { %v3224_v10 = vpop.f32.mrb[14].mxu0  ;;  %3062 = vxpose.xlu0.b32.start.end [1/1] (short) (narrow) %v2930_v29, 8  ;;  %v3813_v11 = vpop.f32.mrb[13].mxu1 }
 0x68b   : > { %v3818_v31 = vpop.f32.mrb[15].mxu0 }
 0x68d   : > { %v3300_v21 = vpop.f32.mrb[14].mxu1 }
 0x68e   : > { %v3376_v12 = vpop.f32.mrb[16].mxu0  ;;  %v3823_v59 = vpop.f32.mrb[15].mxu1 }
 0x68f   : > { %v3828_v13 = vpop.f32.mrb[17].mxu0 }
 0x691   : > { %v3452_v14 = vpop.f32.mrb[16].mxu1 }
 0x692   : > { %v3833_v15 = vpop.f32.mrb[17].mxu1 }
 0x702   : > { %v2950_v16 = vpop.trf.xlu0  ;;  %v2982_v17 = vpop.trf.xlu1 }
 0x706   : > { %v3014_v19 = vpop.trf.xlu0 }
 0x707   : > { %v3094_v22 = vcombine.low %v2950_v16, %v3014_v19  ;;  %v3046_v23 = vpop.trf.xlu1 }
 0x708   : > { %v3102_v24 = vcombine.low %v2982_v17, %v3046_v23 }
 0x709   : > { %v3101_v25 = vrot.slane %v3094_v22, %v4541_v18 }
 0x70a   : > { %v3109_v26 = vrot.slane %v3102_v24, %v4541_v18  ;;  %v3078_v30 = vpop.trf.xlu0 }
 0x70b   : > { %v3116_v32 = vrot.slane %v3078_v30, %v4541_v18 }
 0x70c   : > { %v3117_v33 = vcombine.low %v3101_v25, %v3109_v26  ;;  %v3118_v34 = vcombine.high %v3101_v25, %v3109_v26 }
 0x70d   : > { %v3133_v35 = vcombine.high %v3116_v32, %v4193_v8  ;;  %v3140_v4 = vrot.slane %v3116_v32, %v4545_v28 }
 0x70e   : > { %v3125_v7 = vrot.slane %v3117_v33, %v4545_v28  ;;  %v3132_v36 = vrot.slane %v3118_v34, %v4545_v28 }
 0x70f   : > { %v3147_v37 = vrot.slane %v3133_v35, %v4545_v28 }
 0x710   : > { %v3148_v38 = vcombine.low %v3125_v7, %v3140_v4  ;;  %v3149_v39 = vcombine.high %v3125_v7, %v3140_v4 }
 0x711   : > { %v3150_v18 = vcombine.low %v3132_v36, %v3147_v37  ;;  %v3151_v3 = vcombine.high %v3132_v36, %v3147_v37 }
 0x712   : > { %v3225_v40 = vadd.f32 %v3224_v10, %v3148_v38  ;;  %v3301_v8 = vadd.f32 %v3300_v21, %v3149_v39 }
 0x713   : > { %v3377_v28 = vadd.f32 %v3376_v12, %v3150_v18  ;;  %v3453_v41 = vadd.f32 %v3452_v14, %v3151_v3 }
 0x714   : > { %3457 = vst.msk [vmem:[%s411_s17] sm:$0x1f] %vm3456_vm5, %v3225_v40  ;;  %3458 = vst.msk [vmem:[%s411_s17 + $0x8] sm:$0x1f] %vm3456_vm5, %v3301_v8 }
 0x715   : > { %3459 = vst.msk [vmem:[%s411_s17 + $0x10] sm:$0x1f] %vm3456_vm5, %v3377_v28  ;;  %3460 = vst.msk [vmem:[%s411_s17 + $0x18] sm:$0x1f] %vm3456_vm5, %v3453_v41 }
 0x716   : > { %4107 = shalt.err (!%p4104_p12)
}
 0x717   : > { %s4108_s16 = scalar_lea.hbm %s4763_s15, 512  ;;  %s4112_s14 = scalar_lea.hbm %s4819_s5, 1024 }
 0x718   : > { %p4109_p8 = scmp.ne.s32.totalorder %s4763_s15, %s4108_s16  ;;  %p4113_p13 = scmp.lt.u32.totalorder %s4763_s15, %s4819_s5 }
 0x719   : > { %p4114_p6 = scmp.lt.u32.totalorder %s4112_s14, %s4108_s16  ;;  %p4116_p4 = scmp.lt.u32.totalorder %s4108_s16, %s4763_s15 }
 0x71a   : > { %p4110_p1 = pnand %p4109_p8, %p4860_p2 }
 0x71b   : > { %p4115_p0 = por %p4114_p6, %p4113_p13 }
 0x71c   : > { %p4111_p11 = pneg %p4110_p1 }
 0x71d   : > { %p4117_p5 = por %p4116_p4, %p4115_p0 }
 0x71f   : > { %p4118_p7 = pnand %p4117_p5, %p4111_p11 }
 0x721   : > { %4121 = shalt.err (!%p4118_p7)
}
 0x722   : > { %s4199_s25 = smov 128   ;;  %s4200_s1 = smov 8  }
 0x723   : > { %3847 = dma.vmem_to_hbm [thread:$0]  (%p4860_p2), %s4765_s11, 512, %s4763_s15, %s3462_s21, %s4199_s25, %s4199_s25, %s4200_s1  }
 0x724 PF: > { %s4861_s8 = sld [smem:[#allocation16_spill]]  ;;  %s4862_s3 = sld [smem:[#allocation20_spill]] }
 0x725   : > { %p4864_p10 = scmp.ge.s32.totalorder %s4184_s23, 2 }
 0x72a   : > { %s3491_s26 = sand.u32 1, %s4861_s8   ;;  %p4863_p3 = scmp.ne.s32.totalorder %s4862_s3, 0 }
 0x72b   : > { %s3492_s24 = scalar_lea.sflag [#allocation4], %s3491_s26 }
 0x72c   : > { %p3866_p9 = pnand %p4864_p10, %p4863_p3 }
 0x72e   : > { %4159 = dma.done.wait (!%p3866_p9), %s3492_s24, 512  }
 0x72f   : > { %4161 = vsyncadd (!%p3866_p9), %s3492_s24, 4294966784  ;;  %s27_s23 = sadd.s32 1, %s4184_s23   ;;  %s4865_s30 = sld [smem:[#allocation17_spill]] }
 0x730   : > { %p24_p12 = scmp.ge.s32.totalorder %s27_s23, 4   ;;  %s4866_s20 = sld [smem:[#allocation19_spill]] }
 0x731   : > { %s4867_s6 = sld [smem:[#allocation18_spill]]  ;;  %s4868_s18 = smov %s4168_s19 }
 0x732   : > { %s4870_s21 = smov %s4180_s22  ;;  %26 = sbr.rel (!%p24_p12) target bundleno = 15 (0xf), region = 133 }
 0x735   : > { %s4869_s19 = smov %s4865_s30 }
 0x737   : > { %s4871_s22 = smov %s4867_s6 }
 0x739   :  { %3497 = vsyncpa [#allocation3], 1 }
 0x73a   :  { %3499 = vsyncpa [#allocation3 + $0x1], 1 }
 0x73b   :  { %3500 = vsyncpa [#allocation6], 1 }
 0x73c   :  { %3502 = vsyncpa [#allocation6 + $0x1], 1 }
 0x73d   :  { %3503 = vsyncpa [#allocation9], 1 }
 0x73e   :  { %3505 = vsyncpa [#allocation9 + $0x1], 1 }
 0x73f   :  { %3506 = vsyncpa [#allocation4], 1 }
 0x740   :  { %3508 = vsyncpa [#allocation4 + $0x1], 1 }

</bundles_post_ra>
